<compile_context>
chip_gen: v6e
topology: v6e:2x2x1
jax: 0.10.0
libtpu: 0.0.40
codegen_flags: <defaults>
</compile_context>

<pallas_src>
import jax
import jax.numpy as jnp
from jax.experimental import pallas as pl
from jax.experimental.pallas import tpu as pltpu

BN_EPS = 1e-5


# --------------------------- pass 1: conv + stats ---------------------------

def _make_conv_stats_kernel(TH, W, C):
    WP = W + 2            # padded row width
    TP = TH * WP          # conv-output rows per tile (padded-column layout)

    def kernel(x_ref, w_ref, mask_ref, y_ref, stats_ref):
        # x_ref:     (1, (TH+2)*WP + 2, C) bf16  flattened reflect-padded tile
        # w_ref:     (9, C, C)             bf16  per-tap weight matrices (resident)
        # mask_ref:  (TP, 1)               f32   1.0 real column / 0.0 junk (resident)
        # y_ref:     (1, TP, C)            f32   conv output (junk cols kept)
        # stats_ref: (1, 2, C)             f32   per-tile [sum; sum-of-squares]
        acc = jnp.zeros((TP, C), jnp.float32)
        for dy in range(3):
            for dx in range(3):
                off = dy * WP + dx
                lhs = x_ref[0, pl.ds(off, TP), :]                 # bf16 (TP, C)
                acc = acc + jnp.dot(lhs, w_ref[3 * dy + dx],
                                    preferred_element_type=jnp.float32)
        y_ref[0] = acc
        a = acc * mask_ref[...]        # zero the 2 junk columns per image row
        stats_ref[0, 0:1, :] = jnp.sum(a, axis=0, keepdims=True)
        stats_ref[0, 1:2, :] = jnp.sum(a * acc, axis=0, keepdims=True)

    return kernel


def _conv_pass1(x_tiles, w9, col_mask, TH, W, C):
    NT, L, _ = x_tiles.shape
    TP = TH * (W + 2)
    kernel = _make_conv_stats_kernel(TH, W, C)
    return pl.pallas_call(
        kernel,
        out_shape=(jax.ShapeDtypeStruct((NT, TP, C), jnp.float32),
                   jax.ShapeDtypeStruct((NT, 2, C), jnp.float32)),
        grid=(NT,),
        in_specs=[pl.BlockSpec((1, L, C), lambda m: (m, 0, 0)),
                  pl.BlockSpec((9, C, C), lambda m: (0, 0, 0)),    # resident
                  pl.BlockSpec((TP, 1), lambda m: (0, 0))],        # resident
        out_specs=(pl.BlockSpec((1, TP, C), lambda m: (m, 0, 0)),
                   pl.BlockSpec((1, 2, C), lambda m: (m, 0, 0))),
        compiler_params=pltpu.CompilerParams(
            dimension_semantics=("parallel",),
            vmem_limit_bytes=64 * 1024 * 1024),
    )(x_tiles, w9, col_mask)


# ----------------------- pass 2: BN + ReLU (+ residual) ----------------------

def _make_bn_relu_kernel(W, with_residual):
    def kernel(*refs):
        if with_residual:
            y_ref, scale_ref, shift_ref, res_ref, o_ref = refs
        else:
            y_ref, scale_ref, shift_ref, o_ref = refs
        v = y_ref[0, :, 0:W, :]                      # drop the 2 junk columns
        out = jnp.maximum(v * scale_ref[...] + shift_ref[...], 0.0)
        if with_residual:
            out = out + res_ref[0]
        o_ref[0] = out

    return kernel


def _bn_relu_pass2(y_pad4, scale, shift, residual):
    NT, TH, WP, C = y_pad4.shape
    W = WP - 2
    with_residual = residual is not None
    kernel = _make_bn_relu_kernel(W, with_residual)
    in_specs = [pl.BlockSpec((1, TH, WP, C), lambda m: (m, 0, 0, 0)),
                pl.BlockSpec((1, 1, C), lambda m: (0, 0, 0)),      # resident
                pl.BlockSpec((1, 1, C), lambda m: (0, 0, 0))]      # resident
    args = [y_pad4, scale, shift]
    if with_residual:
        in_specs.append(pl.BlockSpec((1, TH, W, C), lambda m: (m, 0, 0, 0)))
        args.append(residual)
    return pl.pallas_call(
        kernel,
        out_shape=jax.ShapeDtypeStruct((NT, TH, W, C), jnp.float32),
        grid=(NT,),
        in_specs=in_specs,
        out_specs=pl.BlockSpec((1, TH, W, C), lambda m: (m, 0, 0, 0)),
        compiler_params=pltpu.CompilerParams(
            dimension_semantics=("parallel",),
            vmem_limit_bytes=64 * 1024 * 1024),
    )(*args)


# --------------------------------- JAX glue ----------------------------------

def _pick_tile_h(H, W, C):
    """Largest divisor of H whose f32 conv-output tile stays within ~2 MiB."""
    budget = 2 * 1024 * 1024
    best = 1
    for th in range(1, H + 1):
        if H % th == 0 and th * (W + 2) * C * 4 <= budget:
            best = th
    return best


def _build_tiles(x_nhwc, TH):
    """Reflect-pad by 1 and gather overlapping H-tiles, flattened per tile.

    Returns (N * H // TH, (TH + 2) * (W + 2) + 2, C) in bf16.  The trailing 2
    zero rows keep every shifted in-kernel matmul slice in bounds; they only
    feed junk columns that are masked out of the BN stats and dropped in pass 2.
    """
    N, H, W, C = x_nhwc.shape
    nT = H // TH
    refl_h = jnp.concatenate(
        [jnp.array([1], jnp.int32), jnp.arange(H, dtype=jnp.int32),
         jnp.array([H - 2], jnp.int32)])
    refl_w = jnp.concatenate(
        [jnp.array([1], jnp.int32), jnp.arange(W, dtype=jnp.int32),
         jnp.array([W - 2], jnp.int32)])
    row_src = refl_h[jnp.arange(nT, dtype=jnp.int32)[:, None] * TH
                     + jnp.arange(TH + 2, dtype=jnp.int32)[None, :]]
    t = x_nhwc[:, row_src]             # (N, nT, TH+2, W, C)
    t = t[:, :, :, refl_w, :]          # (N, nT, TH+2, W+2, C)
    t = t.reshape(N * nT, (TH + 2) * (W + 2), C)
    t = jnp.pad(t, ((0, 0), (0, 2), (0, 0)))
    return t.astype(jnp.bfloat16)


def resblock_forward(x_nchw, w1, w2, g1, b1, g2, b2):
    N, C, H, W = x_nchw.shape
    x = jnp.transpose(x_nchw, (0, 2, 3, 1)).astype(jnp.float32)     # NHWC
    TH = _pick_tile_h(H, W, C)
    nT = H // TH
    NT = N * nT
    WP = W + 2
    TP = TH * WP

    # Per-tap (C_in, C_out) weight matrices, bf16 for the MXU.
    w9_1 = jnp.transpose(w1, (2, 3, 1, 0)).reshape(9, C, C).astype(jnp.bfloat16)
    w9_2 = jnp.transpose(w2, (2, 3, 1, 0)).reshape(9, C, C).astype(jnp.bfloat16)

    # Column-validity mask for the padded-column layout (2 junk cols per row).
    col_mask = (jnp.arange(TP, dtype=jnp.int32) % WP < W)
    col_mask = col_mask.astype(jnp.float32).reshape(TP, 1)

    count = jnp.float32(N * H * W)

    def conv_block(inp_nhwc, w9, gamma, beta, residual=None):
        tiles = _build_tiles(inp_nhwc, TH)
        y_pad, stats = _conv_pass1(tiles, w9, col_mask, TH, W, C)
        s = jnp.sum(stats, axis=0)                      # (2, C) global sums
        mean = s[0] / count
        var = s[1] / count - mean * mean                # biased variance
        inv = jax.lax.rsqrt(var + BN_EPS)
        scale = (gamma * inv).reshape(1, 1, C).astype(jnp.float32)
        shift = (beta - mean * gamma * inv).reshape(1, 1, C).astype(jnp.float32)
        y_pad4 = y_pad.reshape(NT, TH, WP, C)           # free (same bytes)
        res4 = None if residual is None else residual.reshape(NT, TH, W, C)
        out4 = _bn_relu_pass2(y_pad4, scale, shift, res4)
        return out4.reshape(N, H, W, C)

    y1 = conv_block(x, w9_1, g1, b1)
    out = conv_block(y1, w9_2, g2, b2, residual=x)
    return jnp.transpose(out, (0, 3, 1, 2))             # back to NCHW


# ------------------------------ pure-JAX reference ---------------------------

def _reference_resblock(x_nchw, w1, w2, g1, b1, g2, b2):
    x = jnp.transpose(x_nchw, (0, 2, 3, 1)).astype(jnp.float32)

    def conv_block(inp, w_oi33, gamma, beta):
        N, H, W, C = inp.shape
        xp = jnp.pad(inp, ((0, 0), (1, 1), (1, 1), (0, 0)),
                     mode="reflect").astype(jnp.bfloat16)
        w9 = jnp.transpose(w_oi33, (2, 3, 1, 0)).reshape(9, C, C)
        w9 = w9.astype(jnp.bfloat16)
        acc = jnp.zeros((N, H, W, C), jnp.float32)
        for dy in range(3):
            for dx in range(3):
                acc = acc + jnp.einsum(
                    "nhwc,cd->nhwd", xp[:, dy:dy + H, dx:dx + W, :],
                    w9[3 * dy + dx], preferred_element_type=jnp.float32)
        mean = jnp.mean(acc, axis=(0, 1, 2))
        var = jnp.mean(acc * acc, axis=(0, 1, 2)) - mean * mean
        y = (acc - mean) * jax.lax.rsqrt(var + BN_EPS) * gamma + beta
        return jnp.maximum(y, 0.0)

    y = conv_block(conv_block(x, w1, g1, b1), w2, g2, b2)
    return jnp.transpose(x + y, (0, 3, 1, 2))


# ------------------------------------ main ------------------------------------

if __name__ == "__main__":
    N, C, H, W = 2, 4, 16, 16
    key = jax.random.PRNGKey(0)
    kx, kw1, kw2 = jax.random.split(key, 3)

    x = jax.random.normal(kx, (N, C, H, W), dtype=jnp.float32)
    # Conv2d weights (O, I, 3, 3), bias=False; fresh BatchNorm2d: gamma=1, beta=0.
    w1 = 0.1 * jax.random.normal(kw1, (C, C, 3, 3), dtype=jnp.float32)
    w2 = 0.1 * jax.random.normal(kw2, (C, C, 3, 3), dtype=jnp.float32)
    g1 = jnp.ones((C,), jnp.float32)
    b1 = jnp.zeros((C,), jnp.float32)
    g2 = jnp.ones((C,), jnp.float32)
    b2 = jnp.zeros((C,), jnp.float32)

    fwd = jax.jit(resblock_forward)
    out = jax.block_until_ready(fwd(x, w1, w2, g1, b1, g2, b2))

    ref = jax.block_until_ready(_reference_resblock(x, w1, w2, g1, b1, g2, b2))
    assert out.shape == (N, C, H, W)
    max_err = float(jnp.max(jnp.abs(out - ref)))
    assert jnp.allclose(out, ref, rtol=5e-3, atol=5e-3), (
        f"mismatch vs reference, max abs err {max_err}")

    print("KERNEL_OK")
</pallas_src>

<mosaic_0001>
module attributes {stable_mosaic.version = 11 : i64} {
  func.func @kernel(%arg0: i32, %arg1: memref<1x326x4xbf16, #tpu.memory_space<vmem>>, %arg2: memref<9x4x4xbf16, #tpu.memory_space<vmem>>, %arg3: memref<288x1xf32, #tpu.memory_space<vmem>>, %arg4: memref<1x288x4xf32, #tpu.memory_space<vmem>>, %arg5: memref<1x2x4xf32, #tpu.memory_space<vmem>>) attributes {dimension_semantics = [#tpu.dimension_semantics<parallel>], iteration_bounds = array<i64: 2>, scalar_prefetch = 0 : i64, scratch_operands = 0 : i64, tpu.core_type = #tpu.core_type<tc>, window_params = [{transform_indices = @transform_0, window_bounds = array<i64: 1, 326, 4>}, {pipeline_mode = #tpu.pipeline_mode<synchronous>, transform_indices = @transform_1, window_bounds = array<i64: 9, 4, 4>}, {pipeline_mode = #tpu.pipeline_mode<synchronous>, transform_indices = @transform_2, window_bounds = array<i64: 288, 1>}, {transform_indices = @transform_3, window_bounds = array<i64: 1, 288, 4>}, {transform_indices = @transform_4, window_bounds = array<i64: 1, 2, 4>}]} {
    %cst = arith.constant 0.000000e+00 : f32
    %0 = vector.broadcast %cst : f32 to vector<288x4xf32>
    %c0 = arith.constant 0 : index
    %c0_0 = arith.constant 0 : index
    %c0_1 = arith.constant 0 : index
    %1 = vector.load %arg1[%c0, %c0_0, %c0_1] : memref<1x326x4xbf16, #tpu.memory_space<vmem>>, vector<1x288x4xbf16>
    %2 = vector.shape_cast %1 : vector<1x288x4xbf16> to vector<288x4xbf16>
    %c0_2 = arith.constant 0 : index
    %c0_3 = arith.constant 0 : index
    %c0_4 = arith.constant 0 : index
    %3 = vector.load %arg2[%c0_2, %c0_3, %c0_4] : memref<9x4x4xbf16, #tpu.memory_space<vmem>>, vector<1x4x4xbf16>
    %4 = vector.shape_cast %3 : vector<1x4x4xbf16> to vector<4x4xbf16>
    %cst_5 = arith.constant dense<0.000000e+00> : vector<288x4xf32>
    %5 = tpu.matmul %2, %4, %cst_5 {dimension_numbers = #tpu.dot_dimension_numbers<[1], [0], [0], [1], [0, 0, 1, 1], [], []>} : vector<288x4xbf16>, vector<4x4xbf16>, vector<288x4xf32> -> vector<288x4xf32>
    %6 = arith.addf %0, %5 : vector<288x4xf32>
    %c0_6 = arith.constant 0 : index
    %c1 = arith.constant 1 : index
    %c0_7 = arith.constant 0 : index
    %7 = vector.load %arg1[%c0_6, %c1, %c0_7] : memref<1x326x4xbf16, #tpu.memory_space<vmem>>, vector<1x288x4xbf16>
    %8 = vector.shape_cast %7 : vector<1x288x4xbf16> to vector<288x4xbf16>
    %c1_8 = arith.constant 1 : index
    %c0_9 = arith.constant 0 : index
    %c0_10 = arith.constant 0 : index
    %9 = vector.load %arg2[%c1_8, %c0_9, %c0_10] : memref<9x4x4xbf16, #tpu.memory_space<vmem>>, vector<1x4x4xbf16>
    %10 = vector.shape_cast %9 : vector<1x4x4xbf16> to vector<4x4xbf16>
    %cst_11 = arith.constant dense<0.000000e+00> : vector<288x4xf32>
    %11 = tpu.matmul %8, %10, %cst_11 {dimension_numbers = #tpu.dot_dimension_numbers<[1], [0], [0], [1], [0, 0, 1, 1], [], []>} : vector<288x4xbf16>, vector<4x4xbf16>, vector<288x4xf32> -> vector<288x4xf32>
    %12 = arith.addf %6, %11 : vector<288x4xf32>
    %c0_12 = arith.constant 0 : index
    %c2 = arith.constant 2 : index
    %c0_13 = arith.constant 0 : index
    %13 = vector.load %arg1[%c0_12, %c2, %c0_13] : memref<1x326x4xbf16, #tpu.memory_space<vmem>>, vector<1x288x4xbf16>
    %14 = vector.shape_cast %13 : vector<1x288x4xbf16> to vector<288x4xbf16>
    %c2_14 = arith.constant 2 : index
    %c0_15 = arith.constant 0 : index
    %c0_16 = arith.constant 0 : index
    %15 = vector.load %arg2[%c2_14, %c0_15, %c0_16] : memref<9x4x4xbf16, #tpu.memory_space<vmem>>, vector<1x4x4xbf16>
    %16 = vector.shape_cast %15 : vector<1x4x4xbf16> to vector<4x4xbf16>
    %cst_17 = arith.constant dense<0.000000e+00> : vector<288x4xf32>
    %17 = tpu.matmul %14, %16, %cst_17 {dimension_numbers = #tpu.dot_dimension_numbers<[1], [0], [0], [1], [0, 0, 1, 1], [], []>} : vector<288x4xbf16>, vector<4x4xbf16>, vector<288x4xf32> -> vector<288x4xf32>
    %18 = arith.addf %12, %17 : vector<288x4xf32>
    %c0_18 = arith.constant 0 : index
    %c18 = arith.constant 18 : index
    %c0_19 = arith.constant 0 : index
    %19 = vector.load %arg1[%c0_18, %c18, %c0_19] : memref<1x326x4xbf16, #tpu.memory_space<vmem>>, vector<1x288x4xbf16>
    %20 = vector.shape_cast %19 : vector<1x288x4xbf16> to vector<288x4xbf16>
    %c3 = arith.constant 3 : index
    %c0_20 = arith.constant 0 : index
    %c0_21 = arith.constant 0 : index
    %21 = vector.load %arg2[%c3, %c0_20, %c0_21] : memref<9x4x4xbf16, #tpu.memory_space<vmem>>, vector<1x4x4xbf16>
    %22 = vector.shape_cast %21 : vector<1x4x4xbf16> to vector<4x4xbf16>
    %cst_22 = arith.constant dense<0.000000e+00> : vector<288x4xf32>
    %23 = tpu.matmul %20, %22, %cst_22 {dimension_numbers = #tpu.dot_dimension_numbers<[1], [0], [0], [1], [0, 0, 1, 1], [], []>} : vector<288x4xbf16>, vector<4x4xbf16>, vector<288x4xf32> -> vector<288x4xf32>
    %24 = arith.addf %18, %23 : vector<288x4xf32>
    %c0_23 = arith.constant 0 : index
    %c19 = arith.constant 19 : index
    %c0_24 = arith.constant 0 : index
    %25 = vector.load %arg1[%c0_23, %c19, %c0_24] : memref<1x326x4xbf16, #tpu.memory_space<vmem>>, vector<1x288x4xbf16>
    %26 = vector.shape_cast %25 : vector<1x288x4xbf16> to vector<288x4xbf16>
    %c4 = arith.constant 4 : index
    %c0_25 = arith.constant 0 : index
    %c0_26 = arith.constant 0 : index
    %27 = vector.load %arg2[%c4, %c0_25, %c0_26] : memref<9x4x4xbf16, #tpu.memory_space<vmem>>, vector<1x4x4xbf16>
    %28 = vector.shape_cast %27 : vector<1x4x4xbf16> to vector<4x4xbf16>
    %cst_27 = arith.constant dense<0.000000e+00> : vector<288x4xf32>
    %29 = tpu.matmul %26, %28, %cst_27 {dimension_numbers = #tpu.dot_dimension_numbers<[1], [0], [0], [1], [0, 0, 1, 1], [], []>} : vector<288x4xbf16>, vector<4x4xbf16>, vector<288x4xf32> -> vector<288x4xf32>
    %30 = arith.addf %24, %29 : vector<288x4xf32>
    %c0_28 = arith.constant 0 : index
    %c20 = arith.constant 20 : index
    %c0_29 = arith.constant 0 : index
    %31 = vector.load %arg1[%c0_28, %c20, %c0_29] : memref<1x326x4xbf16, #tpu.memory_space<vmem>>, vector<1x288x4xbf16>
    %32 = vector.shape_cast %31 : vector<1x288x4xbf16> to vector<288x4xbf16>
    %c5 = arith.constant 5 : index
    %c0_30 = arith.constant 0 : index
    %c0_31 = arith.constant 0 : index
    %33 = vector.load %arg2[%c5, %c0_30, %c0_31] : memref<9x4x4xbf16, #tpu.memory_space<vmem>>, vector<1x4x4xbf16>
    %34 = vector.shape_cast %33 : vector<1x4x4xbf16> to vector<4x4xbf16>
    %cst_32 = arith.constant dense<0.000000e+00> : vector<288x4xf32>
    %35 = tpu.matmul %32, %34, %cst_32 {dimension_numbers = #tpu.dot_dimension_numbers<[1], [0], [0], [1], [0, 0, 1, 1], [], []>} : vector<288x4xbf16>, vector<4x4xbf16>, vector<288x4xf32> -> vector<288x4xf32>
    %36 = arith.addf %30, %35 : vector<288x4xf32>
    %c0_33 = arith.constant 0 : index
    %c36 = arith.constant 36 : index
    %c0_34 = arith.constant 0 : index
    %37 = vector.load %arg1[%c0_33, %c36, %c0_34] : memref<1x326x4xbf16, #tpu.memory_space<vmem>>, vector<1x288x4xbf16>
    %38 = vector.shape_cast %37 : vector<1x288x4xbf16> to vector<288x4xbf16>
    %c6 = arith.constant 6 : index
    %c0_35 = arith.constant 0 : index
    %c0_36 = arith.constant 0 : index
    %39 = vector.load %arg2[%c6, %c0_35, %c0_36] : memref<9x4x4xbf16, #tpu.memory_space<vmem>>, vector<1x4x4xbf16>
    %40 = vector.shape_cast %39 : vector<1x4x4xbf16> to vector<4x4xbf16>
    %cst_37 = arith.constant dense<0.000000e+00> : vector<288x4xf32>
    %41 = tpu.matmul %38, %40, %cst_37 {dimension_numbers = #tpu.dot_dimension_numbers<[1], [0], [0], [1], [0, 0, 1, 1], [], []>} : vector<288x4xbf16>, vector<4x4xbf16>, vector<288x4xf32> -> vector<288x4xf32>
    %42 = arith.addf %36, %41 : vector<288x4xf32>
    %c0_38 = arith.constant 0 : index
    %c37 = arith.constant 37 : index
    %c0_39 = arith.constant 0 : index
    %43 = vector.load %arg1[%c0_38, %c37, %c0_39] : memref<1x326x4xbf16, #tpu.memory_space<vmem>>, vector<1x288x4xbf16>
    %44 = vector.shape_cast %43 : vector<1x288x4xbf16> to vector<288x4xbf16>
    %c7 = arith.constant 7 : index
    %c0_40 = arith.constant 0 : index
    %c0_41 = arith.constant 0 : index
    %45 = vector.load %arg2[%c7, %c0_40, %c0_41] : memref<9x4x4xbf16, #tpu.memory_space<vmem>>, vector<1x4x4xbf16>
    %46 = vector.shape_cast %45 : vector<1x4x4xbf16> to vector<4x4xbf16>
    %cst_42 = arith.constant dense<0.000000e+00> : vector<288x4xf32>
    %47 = tpu.matmul %44, %46, %cst_42 {dimension_numbers = #tpu.dot_dimension_numbers<[1], [0], [0], [1], [0, 0, 1, 1], [], []>} : vector<288x4xbf16>, vector<4x4xbf16>, vector<288x4xf32> -> vector<288x4xf32>
    %48 = arith.addf %42, %47 : vector<288x4xf32>
    %c0_43 = arith.constant 0 : index
    %c38 = arith.constant 38 : index
    %c0_44 = arith.constant 0 : index
    %49 = vector.load %arg1[%c0_43, %c38, %c0_44] : memref<1x326x4xbf16, #tpu.memory_space<vmem>>, vector<1x288x4xbf16>
    %50 = vector.shape_cast %49 : vector<1x288x4xbf16> to vector<288x4xbf16>
    %c8 = arith.constant 8 : index
    %c0_45 = arith.constant 0 : index
    %c0_46 = arith.constant 0 : index
    %51 = vector.load %arg2[%c8, %c0_45, %c0_46] : memref<9x4x4xbf16, #tpu.memory_space<vmem>>, vector<1x4x4xbf16>
    %52 = vector.shape_cast %51 : vector<1x4x4xbf16> to vector<4x4xbf16>
    %cst_47 = arith.constant dense<0.000000e+00> : vector<288x4xf32>
    %53 = tpu.matmul %50, %52, %cst_47 {dimension_numbers = #tpu.dot_dimension_numbers<[1], [0], [0], [1], [0, 0, 1, 1], [], []>} : vector<288x4xbf16>, vector<4x4xbf16>, vector<288x4xf32> -> vector<288x4xf32>
    %54 = arith.addf %48, %53 : vector<288x4xf32>
    %c0_48 = arith.constant 0 : index
    %c0_49 = arith.constant 0 : index
    %c0_50 = arith.constant 0 : index
    %55 = vector.load %arg4[%c0_48, %c0_49, %c0_50] : memref<1x288x4xf32, #tpu.memory_space<vmem>>, vector<1x288x4xf32>
    %56 = vector.shape_cast %55 : vector<1x288x4xf32> to vector<288x4xf32>
    %57 = vector.shape_cast %54 : vector<288x4xf32> to vector<1x288x4xf32>
    tpu.vector_store %arg4[%c0_48, %c0_49, %c0_50], %57 {strides = array<i32>} : memref<1x288x4xf32, #tpu.memory_space<vmem>>, vector<1x288x4xf32>,
    %c0_51 = arith.constant 0 : index
    %c0_52 = arith.constant 0 : index
    %58 = vector.load %arg3[%c0_51, %c0_52] : memref<288x1xf32, #tpu.memory_space<vmem>>, vector<288x1xf32>
    %59 = vector.broadcast %58 : vector<288x1xf32> to vector<288x4xf32>
    %60 = arith.mulf %54, %59 : vector<288x4xf32>
    %cst_53 = arith.constant dense<0.000000e+00> : vector<4xf32>
    %61 = vector.multi_reduction <add>, %60, %cst_53 [0] : vector<288x4xf32> to vector<4xf32>
    %62 = vector.shape_cast %61 : vector<4xf32> to vector<1x4xf32>
    %c0_54 = arith.constant 0 : index
    %c0_55 = arith.constant 0 : index
    %c0_56 = arith.constant 0 : index
    %63 = vector.load %arg5[%c0_54, %c0_55, %c0_56] : memref<1x2x4xf32, #tpu.memory_space<vmem>>, vector<1x1x4xf32>
    %64 = vector.shape_cast %63 : vector<1x1x4xf32> to vector<1x4xf32>
    %65 = vector.shape_cast %62 : vector<1x4xf32> to vector<1x1x4xf32>
    tpu.vector_store %arg5[%c0_54, %c0_55, %c0_56], %65 {strides = array<i32>} : memref<1x2x4xf32, #tpu.memory_space<vmem>>, vector<1x1x4xf32>,
    %66 = arith.mulf %60, %54 : vector<288x4xf32>
    %cst_57 = arith.constant dense<0.000000e+00> : vector<4xf32>
    %67 = vector.multi_reduction <add>, %66, %cst_57 [0] : vector<288x4xf32> to vector<4xf32>
    %68 = vector.shape_cast %67 : vector<4xf32> to vector<1x4xf32>
    %c0_58 = arith.constant 0 : index
    %c1_59 = arith.constant 1 : index
    %c0_60 = arith.constant 0 : index
    %69 = vector.load %arg5[%c0_58, %c1_59, %c0_60] : memref<1x2x4xf32, #tpu.memory_space<vmem>>, vector<1x1x4xf32>
    %70 = vector.shape_cast %69 : vector<1x1x4xf32> to vector<1x4xf32>
    %71 = vector.shape_cast %68 : vector<1x4xf32> to vector<1x1x4xf32>
    tpu.vector_store %arg5[%c0_58, %c1_59, %c0_60], %71 {strides = array<i32>} : memref<1x2x4xf32, #tpu.memory_space<vmem>>, vector<1x1x4xf32>,
    return
  }
  func.func @transform_0(%arg0: i32) -> (i32, i32, i32) {
    %c0_i32 = arith.constant 0 : i32
    %c0_i32_0 = arith.constant 0 : i32
    %c0_i32_1 = arith.constant 0 : i32
    return %arg0, %c0_i32, %c0_i32_0 : i32, i32, i32
  }
  func.func @transform_1(%arg0: i32) -> (i32, i32, i32) {
    %c0_i32 = arith.constant 0 : i32
    %c0_i32_0 = arith.constant 0 : i32
    %c0_i32_1 = arith.constant 0 : i32
    %c0_i32_2 = arith.constant 0 : i32
    return %c0_i32, %c0_i32_0, %c0_i32_1 : i32, i32, i32
  }
  func.func @transform_2(%arg0: i32) -> (i32, i32) {
    %c0_i32 = arith.constant 0 : i32
    %c0_i32_0 = arith.constant 0 : i32
    %c0_i32_1 = arith.constant 0 : i32
    return %c0_i32, %c0_i32_0 : i32, i32
  }
  func.func @transform_3(%arg0: i32) -> (i32, i32, i32) {
    %c0_i32 = arith.constant 0 : i32
    %c0_i32_0 = arith.constant 0 : i32
    %c0_i32_1 = arith.constant 0 : i32
    return %arg0, %c0_i32, %c0_i32_0 : i32, i32, i32
  }
  func.func @transform_4(%arg0: i32) -> (i32, i32, i32) {
    %c0_i32 = arith.constant 0 : i32
    %c0_i32_0 = arith.constant 0 : i32
    %c0_i32_1 = arith.constant 0 : i32
    return %arg0, %c0_i32, %c0_i32_0 : i32, i32, i32
  }
}

module attributes {stable_mosaic.version = 11 : i64} {
  func.func @kernel(%arg0: i32, %arg1: memref<1x16x18x4xf32, #tpu.memory_space<vmem>>, %arg2: memref<1x1x4xf32, #tpu.memory_space<vmem>>, %arg3: memref<1x1x4xf32, #tpu.memory_space<vmem>>, %arg4: memref<1x16x16x4xf32, #tpu.memory_space<vmem>>) attributes {dimension_semantics = [#tpu.dimension_semantics<parallel>], iteration_bounds = array<i64: 2>, scalar_prefetch = 0 : i64, scratch_operands = 0 : i64, tpu.core_type = #tpu.core_type<tc>, window_params = [{transform_indices = @transform_0, window_bounds = array<i64: 1, 16, 18, 4>}, {pipeline_mode = #tpu.pipeline_mode<synchronous>, transform_indices = @transform_1, window_bounds = array<i64: 1, 1, 4>}, {pipeline_mode = #tpu.pipeline_mode<synchronous>, transform_indices = @transform_2, window_bounds = array<i64: 1, 1, 4>}, {transform_indices = @transform_3, window_bounds = array<i64: 1, 16, 16, 4>}]} {
    %c0 = arith.constant 0 : index
    %c0_0 = arith.constant 0 : index
    %c0_1 = arith.constant 0 : index
    %c0_2 = arith.constant 0 : index
    %0 = vector.load %arg1[%c0, %c0_0, %c0_1, %c0_2] : memref<1x16x18x4xf32, #tpu.memory_space<vmem>>, vector<1x16x16x4xf32>
    %1 = vector.shape_cast %0 : vector<1x16x16x4xf32> to vector<16x16x4xf32>
    %c0_3 = arith.constant 0 : index
    %c0_4 = arith.constant 0 : index
    %c0_5 = arith.constant 0 : index
    %2 = vector.load %arg2[%c0_3, %c0_4, %c0_5] : memref<1x1x4xf32, #tpu.memory_space<vmem>>, vector<1x1x4xf32>
    %3 = vector.broadcast %2 : vector<1x1x4xf32> to vector<16x16x4xf32>
    %4 = arith.mulf %1, %3 : vector<16x16x4xf32>
    %c0_6 = arith.constant 0 : index
    %c0_7 = arith.constant 0 : index
    %c0_8 = arith.constant 0 : index
    %5 = vector.load %arg3[%c0_6, %c0_7, %c0_8] : memref<1x1x4xf32, #tpu.memory_space<vmem>>, vector<1x1x4xf32>
    %6 = vector.broadcast %5 : vector<1x1x4xf32> to vector<16x16x4xf32>
    %7 = arith.addf %4, %6 : vector<16x16x4xf32>
    %cst = arith.constant 0.000000e+00 : f32
    %8 = vector.broadcast %cst : f32 to vector<16x16x4xf32>
    %9 = arith.maximumf %7, %8 : vector<16x16x4xf32>
    %c0_9 = arith.constant 0 : index
    %c0_10 = arith.constant 0 : index
    %c0_11 = arith.constant 0 : index
    %c0_12 = arith.constant 0 : index
    %10 = vector.load %arg4[%c0_9, %c0_10, %c0_11, %c0_12] : memref<1x16x16x4xf32, #tpu.memory_space<vmem>>, vector<1x16x16x4xf32>
    %11 = vector.shape_cast %10 : vector<1x16x16x4xf32> to vector<16x16x4xf32>
    %12 = vector.shape_cast %9 : vector<16x16x4xf32> to vector<1x16x16x4xf32>
    tpu.vector_store %arg4[%c0_9, %c0_10, %c0_11, %c0_12], %12 {strides = array<i32>} : memref<1x16x16x4xf32, #tpu.memory_space<vmem>>, vector<1x16x16x4xf32>,
    return
  }
  func.func @transform_0(%arg0: i32) -> (i32, i32, i32, i32) {
    %c0_i32 = arith.constant 0 : i32
    %c0_i32_0 = arith.constant 0 : i32
    %c0_i32_1 = arith.constant 0 : i32
    %c0_i32_2 = arith.constant 0 : i32
    return %arg0, %c0_i32, %c0_i32_0, %c0_i32_1 : i32, i32, i32, i32
  }
  func.func @transform_1(%arg0: i32) -> (i32, i32, i32) {
    %c0_i32 = arith.constant 0 : i32
    %c0_i32_0 = arith.constant 0 : i32
    %c0_i32_1 = arith.constant 0 : i32
    %c0_i32_2 = arith.constant 0 : i32
    return %c0_i32, %c0_i32_0, %c0_i32_1 : i32, i32, i32
  }
  func.func @transform_2(%arg0: i32) -> (i32, i32, i32) {
    %c0_i32 = arith.constant 0 : i32
    %c0_i32_0 = arith.constant 0 : i32
    %c0_i32_1 = arith.constant 0 : i32
    %c0_i32_2 = arith.constant 0 : i32
    return %c0_i32, %c0_i32_0, %c0_i32_1 : i32, i32, i32
  }
  func.func @transform_3(%arg0: i32) -> (i32, i32, i32, i32) {
    %c0_i32 = arith.constant 0 : i32
    %c0_i32_0 = arith.constant 0 : i32
    %c0_i32_1 = arith.constant 0 : i32
    %c0_i32_2 = arith.constant 0 : i32
    return %arg0, %c0_i32, %c0_i32_0, %c0_i32_1 : i32, i32, i32, i32
  }
}

module attributes {stable_mosaic.version = 11 : i64} {
  func.func @kernel(%arg0: i32, %arg1: memref<1x16x18x4xf32, #tpu.memory_space<vmem>>, %arg2: memref<1x1x4xf32, #tpu.memory_space<vmem>>, %arg3: memref<1x1x4xf32, #tpu.memory_space<vmem>>, %arg4: memref<1x16x16x4xf32, #tpu.memory_space<vmem>>, %arg5: memref<1x16x16x4xf32, #tpu.memory_space<vmem>>) attributes {dimension_semantics = [#tpu.dimension_semantics<parallel>], iteration_bounds = array<i64: 2>, scalar_prefetch = 0 : i64, scratch_operands = 0 : i64, tpu.core_type = #tpu.core_type<tc>, window_params = [{transform_indices = @transform_0, window_bounds = array<i64: 1, 16, 18, 4>}, {pipeline_mode = #tpu.pipeline_mode<synchronous>, transform_indices = @transform_1, window_bounds = array<i64: 1, 1, 4>}, {pipeline_mode = #tpu.pipeline_mode<synchronous>, transform_indices = @transform_2, window_bounds = array<i64: 1, 1, 4>}, {transform_indices = @transform_3, window_bounds = array<i64: 1, 16, 16, 4>}, {transform_indices = @transform_4, window_bounds = array<i64: 1, 16, 16, 4>}]} {
    %c0 = arith.constant 0 : index
    %c0_0 = arith.constant 0 : index
    %c0_1 = arith.constant 0 : index
    %c0_2 = arith.constant 0 : index
    %0 = vector.load %arg1[%c0, %c0_0, %c0_1, %c0_2] : memref<1x16x18x4xf32, #tpu.memory_space<vmem>>, vector<1x16x16x4xf32>
    %1 = vector.shape_cast %0 : vector<1x16x16x4xf32> to vector<16x16x4xf32>
    %c0_3 = arith.constant 0 : index
    %c0_4 = arith.constant 0 : index
    %c0_5 = arith.constant 0 : index
    %2 = vector.load %arg2[%c0_3, %c0_4, %c0_5] : memref<1x1x4xf32, #tpu.memory_space<vmem>>, vector<1x1x4xf32>
    %3 = vector.broadcast %2 : vector<1x1x4xf32> to vector<16x16x4xf32>
    %4 = arith.mulf %1, %3 : vector<16x16x4xf32>
    %c0_6 = arith.constant 0 : index
    %c0_7 = arith.constant 0 : index
    %c0_8 = arith.constant 0 : index
    %5 = vector.load %arg3[%c0_6, %c0_7, %c0_8] : memref<1x1x4xf32, #tpu.memory_space<vmem>>, vector<1x1x4xf32>
    %6 = vector.broadcast %5 : vector<1x1x4xf32> to vector<16x16x4xf32>
    %7 = arith.addf %4, %6 : vector<16x16x4xf32>
    %cst = arith.constant 0.000000e+00 : f32
    %8 = vector.broadcast %cst : f32 to vector<16x16x4xf32>
    %9 = arith.maximumf %7, %8 : vector<16x16x4xf32>
    %c0_9 = arith.constant 0 : index
    %c0_10 = arith.constant 0 : index
    %c0_11 = arith.constant 0 : index
    %c0_12 = arith.constant 0 : index
    %10 = vector.load %arg4[%c0_9, %c0_10, %c0_11, %c0_12] : memref<1x16x16x4xf32, #tpu.memory_space<vmem>>, vector<1x16x16x4xf32>
    %11 = vector.shape_cast %10 : vector<1x16x16x4xf32> to vector<16x16x4xf32>
    %12 = arith.addf %9, %11 : vector<16x16x4xf32>
    %c0_13 = arith.constant 0 : index
    %c0_14 = arith.constant 0 : index
    %c0_15 = arith.constant 0 : index
    %c0_16 = arith.constant 0 : index
    %13 = vector.load %arg5[%c0_13, %c0_14, %c0_15, %c0_16] : memref<1x16x16x4xf32, #tpu.memory_space<vmem>>, vector<1x16x16x4xf32>
    %14 = vector.shape_cast %13 : vector<1x16x16x4xf32> to vector<16x16x4xf32>
    %15 = vector.shape_cast %12 : vector<16x16x4xf32> to vector<1x16x16x4xf32>
    tpu.vector_store %arg5[%c0_13, %c0_14, %c0_15, %c0_16], %15 {strides = array<i32>} : memref<1x16x16x4xf32, #tpu.memory_space<vmem>>, vector<1x16x16x4xf32>,
    return
  }
  func.func @transform_0(%arg0: i32) -> (i32, i32, i32, i32) {
    %c0_i32 = arith.constant 0 : i32
    %c0_i32_0 = arith.constant 0 : i32
    %c0_i32_1 = arith.constant 0 : i32
    %c0_i32_2 = arith.constant 0 : i32
    return %arg0, %c0_i32, %c0_i32_0, %c0_i32_1 : i32, i32, i32, i32
  }
  func.func @transform_1(%arg0: i32) -> (i32, i32, i32) {
    %c0_i32 = arith.constant 0 : i32
    %c0_i32_0 = arith.constant 0 : i32
    %c0_i32_1 = arith.constant 0 : i32
    %c0_i32_2 = arith.constant 0 : i32
    return %c0_i32, %c0_i32_0, %c0_i32_1 : i32, i32, i32
  }
  func.func @transform_2(%arg0: i32) -> (i32, i32, i32) {
    %c0_i32 = arith.constant 0 : i32
    %c0_i32_0 = arith.constant 0 : i32
    %c0_i32_1 = arith.constant 0 : i32
    %c0_i32_2 = arith.constant 0 : i32
    return %c0_i32, %c0_i32_0, %c0_i32_1 : i32, i32, i32
  }
  func.func @transform_3(%arg0: i32) -> (i32, i32, i32, i32) {
    %c0_i32 = arith.constant 0 : i32
    %c0_i32_0 = arith.constant 0 : i32
    %c0_i32_1 = arith.constant 0 : i32
    %c0_i32_2 = arith.constant 0 : i32
    return %arg0, %c0_i32, %c0_i32_0, %c0_i32_1 : i32, i32, i32, i32
  }
  func.func @transform_4(%arg0: i32) -> (i32, i32, i32, i32) {
    %c0_i32 = arith.constant 0 : i32
    %c0_i32_0 = arith.constant 0 : i32
    %c0_i32_1 = arith.constant 0 : i32
    %c0_i32_2 = arith.constant 0 : i32
    return %arg0, %c0_i32, %c0_i32_0, %c0_i32_1 : i32, i32, i32, i32
  }
}

</mosaic_0001>

<bundles_post_ra>
// kernel: resblock_forward.5
= control target key start
LH: loop header
LB: loop body
LE: loop exit
PB: predicated region body
PF: predicated region fallthrough
CT: control target
= control target key end

     0   :  { %s451_s12 = smov 0   ;;  %s642_s0 = inlined_call_operand.vmem [shape: f32[2,16,18,4], index: 0, kind: input, shape index: {}]   ;;  %s643_s1 = inlined_call_operand.vmem [shape: f32[1,1,4], index: 1, kind: input, shape index: {}]   ;;  %s644_s2 = inlined_call_operand.vmem [shape: f32[1,1,4], index: 2, kind: input, shape index: {}]   ;;  %s645_s3 = inlined_call_operand.vmem [shape: f32[2,16,16,4], index: 3, kind: output, shape index: {}]  }
   0x1 LB: > { %s401_s13 = sadd.s32 4294967295, %s429_s12   ;;  %p405_p0 = scmp.ge.s32.totalorder %s429_s12, 1  ;;  %s429_s12 = sphi %s451_s12, %s13_s12  }
   0x2   : > { %p137_p1 = scmp.lt.s32.totalorder %s429_s12, 3 }
   0x4   : > { %p138_p2 = pnand %p405_p0, %p137_p1 }
   0x5   : > { %p161_p3 = scmp.lt.s32.totalorder (!%p138_p2), %s401_s13, 1 }
   0x6   : > { %141 = sbr.rel (%p138_p2) target bundleno = 45 (0x2d), region = 32 }
   0xb   : > { %s647_s13 = smov (!%p161_p3, %s401_s13), 1  ;;  %v462_v0 = vld [vmem:[%s643_s1] ss:$0 sm:$0xff]  ;;  %vm313_vm0 = vcmask 31744  }
   0xc   : > { %s414_s14 = smul.u32 384, %s647_s13  ;;  %v472_v1 = vld [vmem:[%s644_s2] ss:$0 sm:$0xff]  ;;  %s413_s22 = sshll.u32 %s647_s13, 8 }
   0xd   : > { %s495_s25 = scalar_lea.vmem %s645_s3, %s413_s22 }
   0xe   : > { %s467_s19 = scalar_lea.vmem %s642_s0, %s414_s14 }
   0xf   : > { %v171_v2 = vld [vmem:[%s467_s19] sm:$0xff]  ;;  %v172_v3 = vld [vmem:[%s467_s19 + $0x8] sm:$0xff]  ;;  %v173_v4 = vld [vmem:[%s467_s19 + $0x18] sm:$0xff] }
  0x10   : > { %v210_v5 = vmul.f32 %v462_v0, %v171_v2  ;;  %v211_v6 = vmul.f32 %v462_v0, %v172_v3  ;;  %v212_v7 = vmul.f32 %v462_v0, %v173_v4  ;;  %v174_v8 = vld [vmem:[%s467_s19 + $0x20] sm:$0xff]  ;;  %v175_v9 = vld [vmem:[%s467_s19 + $0x30] sm:$0xff]  ;;  %v176_v10 = vld [vmem:[%s467_s19 + $0x38] sm:$0xff] }
  0x11   : > { %v213_v11 = vmul.f32 %v462_v0, %v174_v8  ;;  %v214_v12 = vmul.f32 %v462_v0, %v175_v9  ;;  %v215_v13 = vmul.f32 %v462_v0, %v176_v10  ;;  %v177_v14 = vld [vmem:[%s467_s19 + $0x48] sm:$0xff]  ;;  %v178_v15 = vld [vmem:[%s467_s19 + $0x50] sm:$0xff]  ;;  %v179_v24 = vld [vmem:[%s467_s19 + $0x60] sm:$0xff] }
  0x12   : > { %v249_v16 = vadd.f32 %v472_v1, %v210_v5  ;;  %v250_v17 = vadd.f32 %v472_v1, %v211_v6  ;;  %v251_v18 = vadd.f32 %v472_v1, %v212_v7  ;;  %v216_v19 = vmul.f32 %v462_v0, %v177_v14  ;;  %v180_v25 = vld [vmem:[%s467_s19 + $0x68] sm:$0xff]  ;;  %v181_v26 = vld [vmem:[%s467_s19 + $0x78] sm:$0xff]  ;;  %v182_v31 = vld [vmem:[%s467_s19 + $0x80] sm:$0xff] }
  0x13   : > { %v252_v20 = vadd.f32 %v472_v1, %v213_v11  ;;  %v253_v21 = vadd.f32 %v472_v1, %v214_v12  ;;  %v254_v22 = vadd.f32 %v472_v1, %v215_v13  ;;  %v217_v23 = vmul.f32 %v462_v0, %v178_v15  ;;  %v183_v32 = vld [vmem:[%s467_s19 + $0x90] sm:$0xff]  ;;  %v184_v33 = vld [vmem:[%s467_s19 + $0x98] sm:$0xff]  ;;  %v185_v38 = vld [vmem:[%s467_s19 + $0xa8] sm:$0xff] }
  0x14   : > { %v281_v27 = vmax.f32 %v249_v16, 0.0  ;;  %v282_v28 = vmax.f32 %v250_v17, 0.0  ;;  %v283_v29 = vmax.f32 %v251_v18, 0.0  ;;  %v255_v30 = vadd.f32 %v472_v1, %v216_v19  ;;  %v186_v43 = vld [vmem:[%s467_s19 + $0xb0] sm:$0xff]  ;;  %v187_v56 = vld [vmem:[%s467_s19 + $0xc0] sm:$0xff]  ;;  %v188_v57 = vld [vmem:[%s467_s19 + $0xc8] sm:$0xff] }
  0x15   : > { %v284_v34 = vmax.f32 %v252_v20, 0.0  ;;  %v285_v35 = vmax.f32 %v253_v21, 0.0  ;;  %v286_v36 = vmax.f32 %v254_v22, 0.0  ;;  %v256_v37 = vadd.f32 %v472_v1, %v217_v23  ;;  %v189_v58 = vld [vmem:[%s467_s19 + $0xd8] sm:$0xff]  ;;  %v190_v63 = vld [vmem:[%s467_s19 + $0xe0] sm:$0xff]  ;;  %v191_v2 = vld [vmem:[%s467_s19 + $0xf0] sm:$0xff] }
  0x16   : > { %314 = vst.msk [vmem:[%s495_s25] sm:$0xff] %vm313_vm0, %v281_v27  ;;  %315 = vst.msk [vmem:[%s495_s25 + $0x8] sm:$0xff] %vm313_vm0, %v282_v28  ;;  %v287_v39 = vmax.f32 %v255_v30, 0.0  ;;  %v218_v40 = vmul.f32 %v462_v0, %v179_v24  ;;  %v219_v41 = vmul.f32 %v462_v0, %v180_v25  ;;  %v220_v42 = vmul.f32 %v462_v0, %v181_v26  ;;  %v192_v3 = vld [vmem:[%s467_s19 + $0xf8] sm:$0xff]  ;;  %v193_v8 = vld [vmem:[%s467_s19 + $0x108] sm:$0xff] }
  0x17   : > { %316 = vst.msk [vmem:[%s495_s25 + $0x10] sm:$0xff] %vm313_vm0, %v283_v29  ;;  %317 = vst.msk [vmem:[%s495_s25 + $0x18] sm:$0xff] %vm313_vm0, %v284_v34  ;;  %v288_v44 = vmax.f32 %v256_v37, 0.0  ;;  %v221_v45 = vmul.f32 %v462_v0, %v182_v31  ;;  %v222_v46 = vmul.f32 %v462_v0, %v183_v32  ;;  %v223_v47 = vmul.f32 %v462_v0, %v184_v33  ;;  %v194_v13 = vld [vmem:[%s467_s19 + $0x110] sm:$0xff]  ;;  %v195_v26 = vld [vmem:[%s467_s19 + $0x120] sm:$0xff] }
  0x18   : > { %318 = vst.msk [vmem:[%s495_s25 + $0x20] sm:$0xff] %vm313_vm0, %v285_v35  ;;  %319 = vst.msk [vmem:[%s495_s25 + $0x28] sm:$0xff] %vm313_vm0, %v286_v36  ;;  %v257_v48 = vadd.f32 %v472_v1, %v218_v40  ;;  %v258_v49 = vadd.f32 %v472_v1, %v219_v41  ;;  %v259_v50 = vadd.f32 %v472_v1, %v220_v42  ;;  %v196_v27 = vld [vmem:[%s467_s19 + $0x128] sm:$0xff]  ;;  %v197_v28 = vld [vmem:[%s467_s19 + $0x138] sm:$0xff] }
  0x19   : > { %320 = vst.msk [vmem:[%s495_s25 + $0x30] sm:$0xff] %vm313_vm0, %v287_v39  ;;  %v224_v51 = vmul.f32 %v462_v0, %v185_v38  ;;  %321 = vst.msk [vmem:[%s495_s25 + $0x38] sm:$0xff] %vm313_vm0, %v288_v44  ;;  %v260_v52 = vadd.f32 %v472_v1, %v221_v45  ;;  %v261_v53 = vadd.f32 %v472_v1, %v222_v46  ;;  %v198_v33 = vld [vmem:[%s467_s19 + $0x140] sm:$0xff]  ;;  %v199_v34 = vld [vmem:[%s467_s19 + $0x150] sm:$0xff] }
  0x1a   : > { %v262_v54 = vadd.f32 %v472_v1, %v223_v47  ;;  %v225_v55 = vmul.f32 %v462_v0, %v186_v43  ;;  %v289_v59 = vmax.f32 %v257_v48, 0.0  ;;  %v290_v60 = vmax.f32 %v258_v49, 0.0  ;;  %v200_v35 = vld [vmem:[%s467_s19 + $0x158] sm:$0xff]  ;;  %v201_v40 = vld [vmem:[%s467_s19 + $0x168] sm:$0xff]  ;;  %v202_v45 = vld [vmem:[%s467_s19 + $0x170] sm:$0xff] }
  0x1b   : > { %v291_v61 = vmax.f32 %v259_v50, 0.0  ;;  %v263_v62 = vadd.f32 %v472_v1, %v224_v51  ;;  %v292_v4 = vmax.f32 %v260_v52, 0.0  ;;  %v293_v5 = vmax.f32 %v261_v53, 0.0 }
  0x1c   : > { %v294_v6 = vmax.f32 %v262_v54, 0.0  ;;  %v264_v7 = vadd.f32 %v472_v1, %v225_v55  ;;  %322 = vst.msk [vmem:[%s495_s25 + $0x40] sm:$0xff] %vm313_vm0, %v289_v59  ;;  %323 = vst.msk [vmem:[%s495_s25 + $0x48] sm:$0xff] %vm313_vm0, %v290_v60  ;;  %v226_v10 = vmul.f32 %v462_v0, %v187_v56  ;;  %v227_v11 = vmul.f32 %v462_v0, %v188_v57 }
  0x1d   : > { %324 = vst.msk [vmem:[%s495_s25 + $0x50] sm:$0xff] %vm313_vm0, %v291_v61  ;;  %v295_v9 = vmax.f32 %v263_v62, 0.0  ;;  %v228_v12 = vmul.f32 %v462_v0, %v189_v58  ;;  %325 = vst.msk [vmem:[%s495_s25 + $0x58] sm:$0xff] %vm313_vm0, %v292_v4  ;;  %v229_v15 = vmul.f32 %v462_v0, %v190_v63  ;;  %v230_v16 = vmul.f32 %v462_v0, %v191_v2 }
  0x1e   : > { %326 = vst.msk [vmem:[%s495_s25 + $0x60] sm:$0xff] %vm313_vm0, %v293_v5  ;;  %327 = vst.msk [vmem:[%s495_s25 + $0x68] sm:$0xff] %vm313_vm0, %v294_v6  ;;  %v296_v14 = vmax.f32 %v264_v7, 0.0  ;;  %v231_v17 = vmul.f32 %v462_v0, %v192_v3  ;;  %v265_v18 = vadd.f32 %v472_v1, %v226_v10  ;;  %v266_v19 = vadd.f32 %v472_v1, %v227_v11 }
  0x1f   : > { %328 = vst.msk [vmem:[%s495_s25 + $0x70] sm:$0xff] %vm313_vm0, %v295_v9  ;;  %v267_v20 = vadd.f32 %v472_v1, %v228_v12  ;;  %v232_v21 = vmul.f32 %v462_v0, %v193_v8  ;;  %v268_v22 = vadd.f32 %v472_v1, %v229_v15  ;;  %v269_v23 = vadd.f32 %v472_v1, %v230_v16 }
  0x20   : > { %329 = vst.msk [vmem:[%s495_s25 + $0x78] sm:$0xff] %vm313_vm0, %v296_v14  ;;  %v270_v24 = vadd.f32 %v472_v1, %v231_v17  ;;  %v233_v25 = vmul.f32 %v462_v0, %v194_v13  ;;  %v297_v29 = vmax.f32 %v265_v18, 0.0  ;;  %v298_v30 = vmax.f32 %v266_v19, 0.0 }
  0x21   : > { %v299_v31 = vmax.f32 %v267_v20, 0.0  ;;  %v271_v32 = vadd.f32 %v472_v1, %v232_v21  ;;  %v300_v36 = vmax.f32 %v268_v22, 0.0  ;;  %v301_v37 = vmax.f32 %v269_v23, 0.0 }
  0x22   : > { %v302_v38 = vmax.f32 %v270_v24, 0.0  ;;  %v272_v39 = vadd.f32 %v472_v1, %v233_v25  ;;  %330 = vst.msk [vmem:[%s495_s25 + $0x80] sm:$0xff] %vm313_vm0, %v297_v29  ;;  %331 = vst.msk [vmem:[%s495_s25 + $0x88] sm:$0xff] %vm313_vm0, %v298_v30  ;;  %v234_v42 = vmul.f32 %v462_v0, %v195_v26  ;;  %v235_v43 = vmul.f32 %v462_v0, %v196_v27 }
  0x23   : > { %332 = vst.msk [vmem:[%s495_s25 + $0x90] sm:$0xff] %vm313_vm0, %v299_v31  ;;  %v303_v41 = vmax.f32 %v271_v32, 0.0  ;;  %v236_v44 = vmul.f32 %v462_v0, %v197_v28  ;;  %333 = vst.msk [vmem:[%s495_s25 + $0x98] sm:$0xff] %vm313_vm0, %v300_v36  ;;  %v237_v47 = vmul.f32 %v462_v0, %v198_v33  ;;  %v238_v48 = vmul.f32 %v462_v0, %v199_v34 }
  0x24   : > { %334 = vst.msk [vmem:[%s495_s25 + $0xa0] sm:$0xff] %vm313_vm0, %v301_v37  ;;  %335 = vst.msk [vmem:[%s495_s25 + $0xa8] sm:$0xff] %vm313_vm0, %v302_v38  ;;  %v304_v46 = vmax.f32 %v272_v39, 0.0  ;;  %v239_v49 = vmul.f32 %v462_v0, %v200_v35  ;;  %v273_v50 = vadd.f32 %v472_v1, %v234_v42  ;;  %v274_v51 = vadd.f32 %v472_v1, %v235_v43 }
  0x25   : > { %336 = vst.msk [vmem:[%s495_s25 + $0xb0] sm:$0xff] %vm313_vm0, %v303_v41  ;;  %v275_v52 = vadd.f32 %v472_v1, %v236_v44  ;;  %v240_v53 = vmul.f32 %v462_v0, %v201_v40  ;;  %v276_v54 = vadd.f32 %v472_v1, %v237_v47  ;;  %v277_v55 = vadd.f32 %v472_v1, %v238_v48 }
  0x26   : > { %337 = vst.msk [vmem:[%s495_s25 + $0xb8] sm:$0xff] %vm313_vm0, %v304_v46  ;;  %v278_v56 = vadd.f32 %v472_v1, %v239_v49  ;;  %v241_v57 = vmul.f32 %v462_v0, %v202_v45  ;;  %v305_v58 = vmax.f32 %v273_v50, 0.0  ;;  %v306_v59 = vmax.f32 %v274_v51, 0.0 }
  0x27   : > { %v307_v60 = vmax.f32 %v275_v52, 0.0  ;;  %v279_v61 = vadd.f32 %v472_v1, %v240_v53  ;;  %v308_v62 = vmax.f32 %v276_v54, 0.0  ;;  %v309_v63 = vmax.f32 %v277_v55, 0.0 }
  0x28   : > { %v310_v2 = vmax.f32 %v278_v56, 0.0  ;;  %v280_v3 = vadd.f32 %v472_v1, %v241_v57  ;;  %338 = vst.msk [vmem:[%s495_s25 + $0xc0] sm:$0xff] %vm313_vm0, %v305_v58  ;;  %339 = vst.msk [vmem:[%s495_s25 + $0xc8] sm:$0xff] %vm313_vm0, %v306_v59 }
  0x29   : > { %340 = vst.msk [vmem:[%s495_s25 + $0xd0] sm:$0xff] %vm313_vm0, %v307_v60  ;;  %v311_v4 = vmax.f32 %v279_v61, 0.0  ;;  %341 = vst.msk [vmem:[%s495_s25 + $0xd8] sm:$0xff] %vm313_vm0, %v308_v62 }
  0x2a   : > { %342 = vst.msk [vmem:[%s495_s25 + $0xe0] sm:$0xff] %vm313_vm0, %v309_v63  ;;  %343 = vst.msk [vmem:[%s495_s25 + $0xe8] sm:$0xff] %vm313_vm0, %v310_v2  ;;  %v312_v0 = vmax.f32 %v280_v3, 0.0 }
  0x2b   : > { %344 = vst.msk [vmem:[%s495_s25 + $0xf0] sm:$0xff] %vm313_vm0, %v311_v4 }
  0x2c   : > { %345 = vst.msk [vmem:[%s495_s25 + $0xf8] sm:$0xff] %vm313_vm0, %v312_v0 }
  0x2d PF: > { %s13_s12 = sadd.s32 1, %s429_s12  }
  0x2e   : > { %p10_p4 = scmp.ge.s32.totalorder %s13_s12, 4  }
  0x30   :  { %12 = sbr.rel (!%p10_p4) target bundleno = 1 (0x1), region = 62 }

// kernel: resblock_forward.7
= control target key start
LH: loop header
LB: loop body
LE: loop exit
PB: predicated region body
PF: predicated region fallthrough
CT: control target
= control target key end

     0   :  { %s582_s15 = smov 0   ;;  %s818_s0 = inlined_call_operand.vmem [shape: f32[2,16,18,4], index: 0, kind: input, shape index: {}]   ;;  %s819_s1 = inlined_call_operand.vmem [shape: f32[1,1,4], index: 1, kind: input, shape index: {}]   ;;  %s820_s2 = inlined_call_operand.vmem [shape: f32[1,1,4], index: 2, kind: input, shape index: {}]   ;;  %s821_s3 = inlined_call_operand.vmem [shape: f32[2,16,16,4], index: 3, kind: input, shape index: {}]   ;;  %s822_s4 = inlined_call_operand.vmem [shape: f32[2,16,16,4], index: 4, kind: output, shape index: {}]  }
   0x1 LB: > { %s524_s16 = sadd.s32 4294967295, %s555_s15   ;;  %p528_p0 = scmp.ge.s32.totalorder %s555_s15, 1  ;;  %s555_s15 = sphi %s582_s15, %s14_s15  }
   0x2   : > { %p172_p1 = scmp.lt.s32.totalorder %s555_s15, 3 }
   0x4   : > { %p173_p2 = pnand %p528_p0, %p172_p1 }
   0x5   : > { %p203_p3 = scmp.lt.s32.totalorder (!%p173_p2), %s524_s16, 1 }
   0x6   : > { %176 = sbr.rel (%p173_p2) target bundleno = 54 (0x36), region = 36 }
   0xb   : > { %s824_s16 = smov (!%p203_p3, %s524_s16), 1  ;;  %v597_v0 = vld [vmem:[%s819_s1] ss:$0 sm:$0xff]  ;;  %vm424_vm0 = vcmask 31744  }
   0xc   : > { %s540_s17 = smul.u32 384, %s824_s16  ;;  %s538_s18 = sshll.u32 %s824_s16, 8  ;;  %v607_v1 = vld [vmem:[%s820_s2] ss:$0 sm:$0xff] }
   0xd   : > { %s614_s28 = scalar_lea.vmem %s821_s3, %s538_s18  ;;  %s650_s5 = scalar_lea.vmem %s822_s4, %s538_s18 }
   0xe   : > { %s602_s23 = scalar_lea.vmem %s818_s0, %s540_s17  ;;  %v360_v14 = vld [vmem:[%s614_s28] sm:$0xff]  ;;  %v361_v20 = vld [vmem:[%s614_s28 + $0x8] sm:$0xff]  ;;  %v362_v21 = vld [vmem:[%s614_s28 + $0x10] sm:$0xff] }
   0xf   : > { %v218_v2 = vld [vmem:[%s602_s23] sm:$0xff]  ;;  %v219_v3 = vld [vmem:[%s602_s23 + $0x8] sm:$0xff]  ;;  %v220_v4 = vld [vmem:[%s602_s23 + $0x18] sm:$0xff] }
  0x10   : > { %v257_v5 = vmul.f32 %v597_v0, %v218_v2  ;;  %v258_v6 = vmul.f32 %v597_v0, %v219_v3  ;;  %v259_v7 = vmul.f32 %v597_v0, %v220_v4  ;;  %v221_v8 = vld [vmem:[%s602_s23 + $0x20] sm:$0xff]  ;;  %v222_v9 = vld [vmem:[%s602_s23 + $0x30] sm:$0xff]  ;;  %v223_v12 = vld [vmem:[%s602_s23 + $0x38] sm:$0xff] }
  0x11   : > { %v260_v10 = vmul.f32 %v597_v0, %v221_v8  ;;  %v261_v11 = vmul.f32 %v597_v0, %v222_v9  ;;  %v262_v17 = vmul.f32 %v597_v0, %v223_v12  ;;  %v224_v18 = vld [vmem:[%s602_s23 + $0x48] sm:$0xff]  ;;  %v225_v19 = vld [vmem:[%s602_s23 + $0x50] sm:$0xff]  ;;  %v363_v23 = vld [vmem:[%s614_s28 + $0x18] sm:$0xff] }
  0x12   : > { %v296_v13 = vadd.f32 %v607_v1, %v257_v5  ;;  %v297_v15 = vadd.f32 %v607_v1, %v258_v6  ;;  %v298_v16 = vadd.f32 %v607_v1, %v259_v7  ;;  %v263_v25 = vmul.f32 %v597_v0, %v224_v18  ;;  %v364_v30 = vld [vmem:[%s614_s28 + $0x20] sm:$0xff]  ;;  %v365_v32 = vld [vmem:[%s614_s28 + $0x28] sm:$0xff]  ;;  %v366_v33 = vld [vmem:[%s614_s28 + $0x30] sm:$0xff] }
  0x13   : > { %v299_v22 = vadd.f32 %v607_v1, %v260_v10  ;;  %v300_v24 = vadd.f32 %v607_v1, %v261_v11  ;;  %v264_v26 = vmul.f32 %v597_v0, %v225_v19  ;;  %v301_v31 = vadd.f32 %v607_v1, %v262_v17  ;;  %v226_v38 = vld [vmem:[%s602_s23 + $0x60] sm:$0xff]  ;;  %v227_v39 = vld [vmem:[%s602_s23 + $0x68] sm:$0xff]  ;;  %v228_v40 = vld [vmem:[%s602_s23 + $0x78] sm:$0xff] }
  0x14   : > { %v328_v27 = vmax.f32 %v296_v13, 0.0  ;;  %v329_v28 = vmax.f32 %v297_v15, 0.0  ;;  %v330_v29 = vmax.f32 %v298_v16, 0.0  ;;  %v302_v36 = vadd.f32 %v607_v1, %v263_v25  ;;  %v367_v45 = vld [vmem:[%s614_s28 + $0x38] sm:$0xff]  ;;  %v229_v46 = vld [vmem:[%s602_s23 + $0x80] sm:$0xff]  ;;  %v230_v47 = vld [vmem:[%s602_s23 + $0x90] sm:$0xff] }
  0x15   : > { %v331_v34 = vmax.f32 %v299_v22, 0.0  ;;  %v332_v35 = vmax.f32 %v300_v24, 0.0  ;;  %v303_v37 = vadd.f32 %v607_v1, %v264_v26  ;;  %v333_v44 = vmax.f32 %v301_v31, 0.0  ;;  %v231_v52 = vld [vmem:[%s602_s23 + $0x98] sm:$0xff]  ;;  %v232_v57 = vld [vmem:[%s602_s23 + $0xa8] sm:$0xff]  ;;  %v233_v58 = vld [vmem:[%s602_s23 + $0xb0] sm:$0xff] }
  0x16   : > { %v392_v41 = vadd.f32 %v360_v14, %v328_v27  ;;  %v393_v42 = vadd.f32 %v361_v20, %v329_v28  ;;  %v394_v43 = vadd.f32 %v362_v21, %v330_v29  ;;  %v334_v50 = vmax.f32 %v302_v36, 0.0  ;;  %v368_v2 = vld [vmem:[%s614_s28 + $0x40] sm:$0xff]  ;;  %v369_v6 = vld [vmem:[%s614_s28 + $0x48] sm:$0xff]  ;;  %v370_v7 = vld [vmem:[%s614_s28 + $0x50] sm:$0xff] }
  0x17   : > { %v395_v48 = vadd.f32 %v363_v23, %v331_v34  ;;  %v396_v49 = vadd.f32 %v364_v30, %v332_v35  ;;  %v335_v51 = vmax.f32 %v303_v37, 0.0  ;;  %v397_v53 = vadd.f32 %v365_v32, %v333_v44  ;;  %v371_v9 = vld [vmem:[%s614_s28 + $0x58] sm:$0xff]  ;;  %v372_v16 = vld [vmem:[%s614_s28 + $0x60] sm:$0xff]  ;;  %v373_v18 = vld [vmem:[%s614_s28 + $0x68] sm:$0xff] }
  0x18   : > { %425 = vst.msk [vmem:[%s650_s5] sm:$0xff] %vm424_vm0, %v392_v41  ;;  %426 = vst.msk [vmem:[%s650_s5 + $0x8] sm:$0xff] %vm424_vm0, %v393_v42  ;;  %v265_v54 = vmul.f32 %v597_v0, %v226_v38  ;;  %v266_v55 = vmul.f32 %v597_v0, %v227_v39  ;;  %v267_v56 = vmul.f32 %v597_v0, %v228_v40  ;;  %v374_v19 = vld [vmem:[%s614_s28 + $0x70] sm:$0xff]  ;;  %v234_v24 = vld [vmem:[%s602_s23 + $0xc0] sm:$0xff] }
  0x19   : > { %427 = vst.msk [vmem:[%s650_s5 + $0x10] sm:$0xff] %vm424_vm0, %v394_v43  ;;  %428 = vst.msk [vmem:[%s650_s5 + $0x18] sm:$0xff] %vm424_vm0, %v395_v48  ;;  %v398_v59 = vadd.f32 %v366_v33, %v334_v50  ;;  %v399_v60 = vadd.f32 %v367_v45, %v335_v51  ;;  %v268_v61 = vmul.f32 %v597_v0, %v229_v46  ;;  %v235_v25 = vld [vmem:[%s602_s23 + $0xc8] sm:$0xff]  ;;  %v236_v26 = vld [vmem:[%s602_s23 + $0xd8] sm:$0xff] }
  0x1a   : > { %429 = vst.msk [vmem:[%s650_s5 + $0x20] sm:$0xff] %vm424_vm0, %v396_v49  ;;  %v269_v62 = vmul.f32 %v597_v0, %v230_v47  ;;  %430 = vst.msk [vmem:[%s650_s5 + $0x28] sm:$0xff] %vm424_vm0, %v397_v53  ;;  %v304_v63 = vadd.f32 %v607_v1, %v265_v54  ;;  %v305_v3 = vadd.f32 %v607_v1, %v266_v55  ;;  %v375_v31 = vld [vmem:[%s614_s28 + $0x78] sm:$0xff]  ;;  %v237_v32 = vld [vmem:[%s602_s23 + $0xe0] sm:$0xff] }
  0x1b   : > { %v306_v4 = vadd.f32 %v607_v1, %v267_v56  ;;  %v270_v5 = vmul.f32 %v597_v0, %v231_v52  ;;  %431 = vst.msk [vmem:[%s650_s5 + $0x30] sm:$0xff] %vm424_vm0, %v398_v59  ;;  %432 = vst.msk [vmem:[%s650_s5 + $0x38] sm:$0xff] %vm424_vm0, %v399_v60  ;;  %v307_v8 = vadd.f32 %v607_v1, %v268_v61  ;;  %v238_v33 = vld [vmem:[%s602_s23 + $0xf0] sm:$0xff]  ;;  %v239_v38 = vld [vmem:[%s602_s23 + $0xf8] sm:$0xff] }
  0x1c   : > { %v308_v10 = vadd.f32 %v607_v1, %v269_v62  ;;  %v271_v11 = vmul.f32 %v597_v0, %v232_v57  ;;  %v272_v12 = vmul.f32 %v597_v0, %v233_v58  ;;  %v336_v13 = vmax.f32 %v304_v63, 0.0  ;;  %v240_v43 = vld [vmem:[%s602_s23 + $0x108] sm:$0xff]  ;;  %v241_v44 = vld [vmem:[%s602_s23 + $0x110] sm:$0xff]  ;;  %v376_v50 = vld [vmem:[%s614_s28 + $0x80] sm:$0xff] }
  0x1d   : > { %v337_v14 = vmax.f32 %v305_v3, 0.0  ;;  %v338_v15 = vmax.f32 %v306_v4, 0.0  ;;  %v309_v17 = vadd.f32 %v607_v1, %v270_v5  ;;  %v339_v20 = vmax.f32 %v307_v8, 0.0  ;;  %v377_v54 = vld [vmem:[%s614_s28 + $0x88] sm:$0xff]  ;;  %v378_v55 = vld [vmem:[%s614_s28 + $0x90] sm:$0xff]  ;;  %v379_v57 = vld [vmem:[%s614_s28 + $0x98] sm:$0xff] }
  0x1e   : > { %v340_v21 = vmax.f32 %v308_v10, 0.0  ;;  %v310_v22 = vadd.f32 %v607_v1, %v271_v11  ;;  %v311_v23 = vadd.f32 %v607_v1, %v272_v12  ;;  %v400_v27 = vadd.f32 %v368_v2, %v336_v13  ;;  %v380_v2 = vld [vmem:[%s614_s28 + $0xa0] sm:$0xff]  ;;  %v381_v4 = vld [vmem:[%s614_s28 + $0xa8] sm:$0xff]  ;;  %v382_v5 = vld [vmem:[%s614_s28 + $0xb0] sm:$0xff] }
  0x1f   : > { %v401_v28 = vadd.f32 %v369_v6, %v337_v14  ;;  %v402_v29 = vadd.f32 %v370_v7, %v338_v15  ;;  %v341_v30 = vmax.f32 %v309_v17, 0.0  ;;  %v403_v34 = vadd.f32 %v371_v9, %v339_v20  ;;  %v242_v10 = vld [vmem:[%s602_s23 + $0x120] sm:$0xff]  ;;  %v243_v11 = vld [vmem:[%s602_s23 + $0x128] sm:$0xff]  ;;  %v244_v12 = vld [vmem:[%s602_s23 + $0x138] sm:$0xff] }
  0x20   : > { %v404_v35 = vadd.f32 %v372_v16, %v340_v21  ;;  %v342_v36 = vmax.f32 %v310_v22, 0.0  ;;  %v343_v37 = vmax.f32 %v311_v23, 0.0  ;;  %433 = vst.msk [vmem:[%s650_s5 + $0x40] sm:$0xff] %vm424_vm0, %v400_v27  ;;  %v273_v40 = vmul.f32 %v597_v0, %v234_v24  ;;  %v383_v17 = vld [vmem:[%s614_s28 + $0xb8] sm:$0xff] }
  0x21   : > { %434 = vst.msk [vmem:[%s650_s5 + $0x48] sm:$0xff] %vm424_vm0, %v401_v28  ;;  %435 = vst.msk [vmem:[%s650_s5 + $0x50] sm:$0xff] %vm424_vm0, %v402_v29  ;;  %v405_v39 = vadd.f32 %v373_v18, %v341_v30  ;;  %v274_v41 = vmul.f32 %v597_v0, %v235_v25  ;;  %v275_v42 = vmul.f32 %v597_v0, %v236_v26  ;;  %v245_v18 = vld [vmem:[%s602_s23 + $0x140] sm:$0xff]  ;;  %v247_v24 = vld [vmem:[%s602_s23 + $0x158] sm:$0xff] }
  0x22   : > { %436 = vst.msk [vmem:[%s650_s5 + $0x58] sm:$0xff] %vm424_vm0, %v403_v34  ;;  %437 = vst.msk [vmem:[%s650_s5 + $0x60] sm:$0xff] %vm424_vm0, %v404_v35  ;;  %v406_v45 = vadd.f32 %v374_v19, %v342_v36  ;;  %v407_v46 = vadd.f32 %v375_v31, %v343_v37  ;;  %v276_v47 = vmul.f32 %v597_v0, %v237_v32  ;;  %v246_v19 = vld [vmem:[%s602_s23 + $0x150] sm:$0xff]  ;;  %v248_v29 = vld [vmem:[%s602_s23 + $0x168] sm:$0xff] }
  0x23   : > { %v277_v48 = vmul.f32 %v597_v0, %v238_v33  ;;  %438 = vst.msk [vmem:[%s650_s5 + $0x68] sm:$0xff] %vm424_vm0, %v405_v39  ;;  %v312_v49 = vadd.f32 %v607_v1, %v273_v40  ;;  %v313_v51 = vadd.f32 %v607_v1, %v274_v41  ;;  %v314_v52 = vadd.f32 %v607_v1, %v275_v42  ;;  %v249_v30 = vld [vmem:[%s602_s23 + $0x170] sm:$0xff]  ;;  %v384_v39 = vld [vmem:[%s614_s28 + $0xc0] sm:$0xff]  ;;  %v385_v40 = vld [vmem:[%s614_s28 + $0xc8] sm:$0xff] }
  0x24   : > { %v278_v53 = vmul.f32 %v597_v0, %v239_v38  ;;  %439 = vst.msk [vmem:[%s650_s5 + $0x70] sm:$0xff] %vm424_vm0, %v406_v45  ;;  %440 = vst.msk [vmem:[%s650_s5 + $0x78] sm:$0xff] %vm424_vm0, %v407_v46  ;;  %v315_v56 = vadd.f32 %v607_v1, %v276_v47  ;;  %v279_v59 = vmul.f32 %v597_v0, %v240_v43  ;;  %v386_v41 = vld [vmem:[%s614_s28 + $0xd0] sm:$0xff] }
  0x25   : > { %v316_v58 = vadd.f32 %v607_v1, %v277_v48  ;;  %v280_v60 = vmul.f32 %v597_v0, %v241_v44  ;;  %v344_v61 = vmax.f32 %v312_v49, 0.0  ;;  %v345_v62 = vmax.f32 %v313_v51, 0.0  ;;  %v387_v49 = vld [vmem:[%s614_s28 + $0xd8] sm:$0xff] }
  0x26   : > { %v346_v63 = vmax.f32 %v314_v52, 0.0  ;;  %v317_v3 = vadd.f32 %v607_v1, %v278_v53  ;;  %v347_v6 = vmax.f32 %v315_v56, 0.0  ;;  %v318_v8 = vadd.f32 %v607_v1, %v279_v59 }
  0x27   : > { %v348_v7 = vmax.f32 %v316_v58, 0.0  ;;  %v319_v9 = vadd.f32 %v607_v1, %v280_v60  ;;  %v408_v13 = vadd.f32 %v376_v50, %v344_v61  ;;  %v409_v14 = vadd.f32 %v377_v54, %v345_v62  ;;  %v388_v50 = vld [vmem:[%s614_s28 + $0xe0] sm:$0xff]  ;;  %v389_v54 = vld [vmem:[%s614_s28 + $0xe8] sm:$0xff]  ;;  %v390_v60 = vld [vmem:[%s614_s28 + $0xf0] sm:$0xff] }
  0x28   : > { %v410_v15 = vadd.f32 %v378_v55, %v346_v63  ;;  %v349_v16 = vmax.f32 %v317_v3, 0.0  ;;  %v411_v20 = vadd.f32 %v379_v57, %v347_v6  ;;  %v350_v22 = vmax.f32 %v318_v8, 0.0  ;;  %v391_v61 = vld [vmem:[%s614_s28 + $0xf8] sm:$0xff] }
  0x29   : > { %v412_v21 = vadd.f32 %v380_v2, %v348_v7  ;;  %v351_v23 = vmax.f32 %v319_v9, 0.0  ;;  %441 = vst.msk [vmem:[%s650_s5 + $0x80] sm:$0xff] %vm424_vm0, %v408_v13  ;;  %442 = vst.msk [vmem:[%s650_s5 + $0x88] sm:$0xff] %vm424_vm0, %v409_v14  ;;  %v281_v26 = vmul.f32 %v597_v0, %v242_v10  ;;  %v282_v27 = vmul.f32 %v597_v0, %v243_v11 }
  0x2a   : > { %443 = vst.msk [vmem:[%s650_s5 + $0x90] sm:$0xff] %vm424_vm0, %v410_v15  ;;  %v413_v25 = vadd.f32 %v381_v4, %v349_v16  ;;  %v283_v28 = vmul.f32 %v597_v0, %v244_v12  ;;  %444 = vst.msk [vmem:[%s650_s5 + $0x98] sm:$0xff] %vm424_vm0, %v411_v20  ;;  %v414_v31 = vadd.f32 %v382_v5, %v350_v22 }
  0x2b   : > { %445 = vst.msk [vmem:[%s650_s5 + $0xa0] sm:$0xff] %vm424_vm0, %v412_v21  ;;  %v415_v32 = vadd.f32 %v383_v17, %v351_v23  ;;  %v284_v33 = vmul.f32 %v597_v0, %v245_v18  ;;  %v285_v34 = vmul.f32 %v597_v0, %v246_v19  ;;  %v320_v35 = vadd.f32 %v607_v1, %v281_v26 }
  0x2c   : > { %446 = vst.msk [vmem:[%s650_s5 + $0xa8] sm:$0xff] %vm424_vm0, %v413_v25  ;;  %v321_v36 = vadd.f32 %v607_v1, %v282_v27  ;;  %v322_v37 = vadd.f32 %v607_v1, %v283_v28  ;;  %v286_v38 = vmul.f32 %v597_v0, %v247_v24  ;;  %447 = vst.msk [vmem:[%s650_s5 + $0xb0] sm:$0xff] %vm424_vm0, %v414_v31 }
  0x2d   : > { %448 = vst.msk [vmem:[%s650_s5 + $0xb8] sm:$0xff] %vm424_vm0, %v415_v32  ;;  %v323_v42 = vadd.f32 %v607_v1, %v284_v33  ;;  %v324_v43 = vadd.f32 %v607_v1, %v285_v34  ;;  %v287_v44 = vmul.f32 %v597_v0, %v248_v29  ;;  %v288_v45 = vmul.f32 %v597_v0, %v249_v30 }
  0x2e   : > { %v352_v46 = vmax.f32 %v320_v35, 0.0  ;;  %v353_v47 = vmax.f32 %v321_v36, 0.0  ;;  %v354_v48 = vmax.f32 %v322_v37, 0.0  ;;  %v325_v51 = vadd.f32 %v607_v1, %v286_v38 }
  0x2f   : > { %v355_v52 = vmax.f32 %v323_v42, 0.0  ;;  %v356_v53 = vmax.f32 %v324_v43, 0.0  ;;  %v326_v55 = vadd.f32 %v607_v1, %v287_v44  ;;  %v327_v0 = vadd.f32 %v607_v1, %v288_v45 }
  0x30   : > { %v416_v56 = vadd.f32 %v384_v39, %v352_v46  ;;  %v417_v57 = vadd.f32 %v385_v40, %v353_v47  ;;  %v418_v58 = vadd.f32 %v386_v41, %v354_v48  ;;  %v357_v59 = vmax.f32 %v325_v51, 0.0 }
  0x31   : > { %v419_v62 = vadd.f32 %v387_v49, %v355_v52  ;;  %v420_v63 = vadd.f32 %v388_v50, %v356_v53  ;;  %v358_v2 = vmax.f32 %v326_v55, 0.0  ;;  %v359_v3 = vmax.f32 %v327_v0, 0.0 }
  0x32   : > { %449 = vst.msk [vmem:[%s650_s5 + $0xc0] sm:$0xff] %vm424_vm0, %v416_v56  ;;  %450 = vst.msk [vmem:[%s650_s5 + $0xc8] sm:$0xff] %vm424_vm0, %v417_v57  ;;  %v421_v1 = vadd.f32 %v389_v54, %v357_v59 }
  0x33   : > { %451 = vst.msk [vmem:[%s650_s5 + $0xd0] sm:$0xff] %vm424_vm0, %v418_v58  ;;  %452 = vst.msk [vmem:[%s650_s5 + $0xd8] sm:$0xff] %vm424_vm0, %v419_v62  ;;  %v422_v4 = vadd.f32 %v390_v60, %v358_v2  ;;  %v423_v5 = vadd.f32 %v391_v61, %v359_v3 }
  0x34   : > { %453 = vst.msk [vmem:[%s650_s5 + $0xe0] sm:$0xff] %vm424_vm0, %v420_v63  ;;  %454 = vst.msk [vmem:[%s650_s5 + $0xe8] sm:$0xff] %vm424_vm0, %v421_v1 }
  0x35   : > { %455 = vst.msk [vmem:[%s650_s5 + $0xf0] sm:$0xff] %vm424_vm0, %v422_v4  ;;  %456 = vst.msk [vmem:[%s650_s5 + $0xf8] sm:$0xff] %vm424_vm0, %v423_v5 }
  0x36 PF: > { %s14_s15 = sadd.s32 1, %s555_s15  }
  0x37   : > { %p11_p4 = scmp.ge.s32.totalorder %s14_s15, 4  }
  0x39   :  { %13 = sbr.rel (!%p11_p4) target bundleno = 1 (0x1), region = 69 }

// kernel: resblock_forward.4
= control target key start
LH: loop header
LB: loop body
LE: loop exit
PB: predicated region body
PF: predicated region fallthrough
CT: control target
= control target key end

     0   :  { %s5101_s15 = smov 0   ;;  %s6749_s0 = inlined_call_operand.vmem [shape: bf16[2,326,4], index: 0, kind: input, shape index: {}]   ;;  %s6750_s1 = inlined_call_operand.vmem [shape: bf16[9,4,4], index: 1, kind: input, shape index: {}]   ;;  %s6751_s2 = inlined_call_operand.vmem [shape: f32[288,1], index: 2, kind: input, shape index: {}]   ;;  %s6752_s3 = inlined_call_operand.vmem [shape: f32[2,288,4], index: 3, kind: output, shape index: {0}]   ;;  %s6753_s4 = inlined_call_operand.vmem [shape: f32[2,2,4], index: 4, kind: output, shape index: {1}]  }
   0x1 LB: > { %s4225_s16 = sadd.s32 4294967295, %s5073_s15   ;;  %p4229_p0 = scmp.ge.s32.totalorder %s5073_s15, 1  ;;  %s5073_s15 = sphi %s5101_s15, %s15_s15  }
   0x2   : > { %p165_p1 = scmp.lt.s32.totalorder %s5073_s15, 3 }
   0x4   : > { %p166_p2 = pnand %p4229_p0, %p165_p1 }
   0x6   : > { %169 = sbr.rel (%p166_p2) target bundleno = 573 (0x23d), region = 32 }
   0xb   : > { %v4233_v0 = vld [vmem:[%s6750_s1 + $0x2] sm:$0x3]  ;;  %vm547_vm0 = vcmask 1041408   ;;  %p195_p3 = scmp.lt.s32.totalorder %s4225_s16, 1  ;;  %v4289_v2 = vld [vmem:[%s6750_s1 + $0x4] sm:$0x3] }
   0xc   : > { %4982 = vmatprep.subr.msk.bf16.mxu0 %vm547_vm0, %v4233_v0  ;;  %4983 = vmatprep.subr.msk.bf16.mxu1 %vm547_vm0, %v4233_v0  ;;  %v549_v1 = vsel %vm547_vm0, %v4233_v0, 0  ;;  %v246_v3 = vld [vmem:[%s6750_s1] sm:$0x3]  ;;  %vm343_vm1 = vsmask.f32 7424  ;;  %vm492_vm2 = vcmask 31744  }
   0xd   : > { %4639 = vmatpush3.bf16.msra.mxu0 %v549_v1  ;;  %4981 = vmatpush3.bf16.msra.mxu1 %v549_v1  ;;  %s6801_s16 = smov (!%p195_p3, %s4225_s16), 1  ;;  %v1043_v8 = vsel %vm547_vm0, %v4289_v2, 0  ;;  %v765_v16 = vsel %vm547_vm0, %v246_v3, 0  ;;  %v5174_v33 = vld [vmem:[%s6750_s1 + $0x8] sm:$0x3]  ;;  %vm950_vm3 = vcmask 1046528  }
   0xe   : > { %4985 = vmatprep.subr.msk.bf16.mxu0 %vm547_vm0, %v4289_v2  ;;  %4984 = vmatprep.subr.msk.bf16.mxu1 %vm547_vm0, %v246_v3  ;;  %s4992_s23 = smul.u32 164, %s6801_s16  ;;  %v5194_v45 = vld [vmem:[%s6750_s1 + $0x6] sm:$0x3]  ;;  %vm2150_vm4 = vcmask 1045504   ;;  %vm1703_vm5 = vsmask.f32 6400 }
   0xf   : > { %vm3350_vm6 = vcmask 1044480   ;;  %vm2903_vm7 = vsmask.f32 5376  ;;  %s4232_s21 = sshll.u32 %s6801_s16, 1  ;;  %vm4023_vm8 = vcmask 24576  }
  0x10   : > { %s5129_s26 = scalar_lea.vmem %s6749_s0, %s4992_s23  ;;  %s208_s24 = scalar_lea.vmem %s6753_s4, %s4232_s21 }
  0x11   : > { %v210_v4 = vld [vmem:[%s5129_s26] sm:$0xf]  ;;  %v5133_v5 = vld [vmem:[%s5129_s26 + $0x4] sm:$0xf]  ;;  %v5139_v7 = vld [vmem:[%s5129_s26 + $0x8] sm:$0xff]  }
  0x12   : > { %v5136_v6 = vcombine.low %v210_v4, %v5133_v5  ;;  %v352_v11 = vshll.u32 %v5139_v7, 16  ;;  %v356_v12 = vshrl.u32 %v5139_v7, 16  ;;  %v5147_v13 = vld [vmem:[%s5129_s26 + $0x50] sm:$0xff]   ;;  %v5150_v14 = vld [vmem:[%s5129_s26 + $0x58] sm:$0xff]   ;;  %v5162_v24 = vld [vmem:[%s5129_s26 + $0x60] sm:$0xff]  }
  0x13   : > { %v5153_v15 = vld [vmem:[%s5129_s26 + $0x10] sm:$0xff]   ;;  %v424_v19 = vshll.u32 %v5147_v13, 16  ;;  %v428_v20 = vshrl.u32 %v5147_v13, 16  ;;  %v432_v21 = vshll.u32 %v5150_v14, 16  ;;  %v436_v22 = vshrl.u32 %v5150_v14, 16  ;;  %v5167_v28 = vld [vmem:[%s5129_s26 + $0x18] sm:$0xff]  }
  0x14   : > { %v345_v9 = vshrl.u32 %v5136_v6, 16  ;;  %v347_v10 = vshll.u32 %v5136_v6, 16  ;;  %v354_v18 = vrot.slane %v352_v11, 1  ;;  %v360_v23 = vshll.u32 %v5153_v15, 16  ;;  %v5180_v37 = vld [vmem:[%s5129_s26 + $0x68] sm:$0xff]   ;;  %v5184_v39 = vld [vmem:[%s5129_s26 + $0x20] sm:$0xff]  }
  0x15   : > { %v5164_v27 = vrot.slane %v424_v19, 1  ;;  %v434_v29 = vrot.slane %v432_v21, 1  ;;  %v440_v31 = vshll.u32 %v5162_v24, 16  ;;  %v364_v32 = vshrl.u32 %v5153_v15, 16  ;;  %v5189_v44 = vld [vmem:[%s5129_s26 + $0x70] sm:$0xff]   ;;  %v5201_v50 = vld [vmem:[%s5129_s26 + $0x28] sm:$0xff]  }
  0x16   : > { %v349_v17 = vrot.slane %v347_v10, 1  ;;  %v358_v26 = vor.u32 %v356_v12, %v354_v18  ;;  %v362_v30 = vrot.slane %v360_v23, 1  ;;  %v368_v36 = vshll.u32 %v5167_v28, 16  ;;  %v5216_v62 = vld [vmem:[%s5129_s26 + $0x78] sm:$0xff]   ;;  %v5226_v10 = vld [vmem:[%s5129_s26 + $0x30] sm:$0xff]   ;;  %v5229_v11 = vld [vmem:[%s5129_s26 + $0x80] sm:$0xff]  }
  0x17   : > { %v430_v35 = vor.u32 %v428_v20, %v5164_v27  ;;  %v444_v38 = vshrl.u32 %v5162_v24, 16  ;;  %v438_v40 = vor.u32 %v436_v22, %v434_v29  ;;  %v442_v42 = vrot.slane %v440_v31, 1  ;;  %v5238_v23 = vld [vmem:[%s5129_s26 + $0x38] sm:$0xff]  }
  0x18   : > { %v350_v25 = vor.u32 %v349_v17, %v345_v9  ;;  %v363_v41 = vsel %vm343_vm1, %v358_v26, %v362_v30  ;;  %v366_v43 = vor.u32 %v364_v32, %v362_v30  ;;  %v370_v47 = vrot.slane %v368_v36, 1  ;;  %v5243_v26 = vld [vmem:[%s5129_s26 + $0x88] sm:$0xff]  }
  0x19   : > { %v435_v46 = vsel %vm343_vm1, %v430_v35, %v434_v29  ;;  %v448_v48 = vshll.u32 %v5180_v37, 16  ;;  %v372_v49 = vshrl.u32 %v5167_v28, 16  ;;  %v443_v51 = vsel %vm343_vm1, %v438_v40, %v442_v42  ;;  %v5255_v40 = vld [vmem:[%s5129_s26 + $0x48] sm:$0xff]  }
  0x1a   : > { %v355_v34 = vsel %vm343_vm1, %v350_v25, %v354_v18  ;;  %4660 = vmatprep.mubr.msk.bf16.mxu1 %vm492_vm2, %v435_v46  ;;  %v446_v52 = vor.u32 %v444_v38, %v442_v42  ;;  %v376_v53 = vshll.u32 %v5184_v39, 16  ;;  %v452_v54 = vshrl.u32 %v5180_v37, 16  ;;  %v5252_v38 = vld [vmem:[%s5129_s26 + $0x40] sm:$0xff]  }
  0x1b   : > { %4640 = vmatprep.mubr.msk.bf16.mxu0 %vm492_vm2, %v355_v34  ;;  %4661 = vmatmul.mubr.msk.bf16.vlgmr.msra.gmra.mxu1 %vm492_vm2, %v443_v51  ;;  %v371_v55 = vsel %vm343_vm1, %v366_v43, %v370_v47  ;;  %v450_v56 = vrot.slane %v448_v48, 1  ;;  %v374_v57 = vor.u32 %v372_v49, %v370_v47  ;;  %v456_v58 = vshll.u32 %v5189_v44, 16  ;;  %v5022_v43 = vld [vmem:[%s5129_s26 + $0x90] ss:$0 sps:$4 sm:$0x11]  }
  0x1c   : > { %4641 = vmatmul.mubr.msk.bf16.vlgmr.msra.gmra.mxu0 %vm492_vm2, %v363_v41  ;;  %4677 = vmatpush3.bf16.msra.mxu1 %v765_v16  ;;  %v378_v59 = vrot.slane %v376_v53, 1  ;;  %v380_v60 = vshrl.u32 %v5184_v39, 16  ;;  %v384_v61 = vshll.u32 %v5201_v50, 16  ;;  %v460_v2 = vshrl.u32 %v5189_v44, 16 }
  0x1d   : > { %4715 = vmatpush3.bf16.msra.mxu0 %v1043_v8  ;;  %4644 = vmatprep.mubr.msk.bf16.mxu0 %vm492_vm2, %v371_v55  ;;  %v451_v63 = vsel %vm343_vm1, %v446_v52, %v450_v56  ;;  %v454_v0 = vor.u32 %v452_v54, %v450_v56  ;;  %v458_v1 = vrot.slane %v456_v58, 1  ;;  %v464_v9 = vshll.u32 %v5216_v62, 16 }
  0x1e   : > { %4987 = vmatprep.subr.msk.bf16.mxu0 %vm547_vm0, %v5174_v33  ;;  %4986 = vmatprep.subr.msk.bf16.mxu1 %vm547_vm0, %v5194_v45  ;;  %v379_v3 = vsel %vm343_vm1, %v374_v57, %v378_v59  ;;  %v382_v4 = vor.u32 %v380_v60, %v378_v59  ;;  %v386_v8 = vrot.slane %v384_v61, 1  ;;  %v388_v17 = vshrl.u32 %v5201_v50, 16 }
  0x1f   : > { %4664 = vmatprep.mubr.msk.bf16.mxu1 %vm492_vm2, %v451_v63  ;;  %v459_v12 = vsel %vm343_vm1, %v454_v0, %v458_v1  ;;  %v462_v16 = vor.u32 %v460_v2, %v458_v1  ;;  %v468_v18 = vshrl.u32 %v5216_v62, 16  ;;  %v466_v20 = vrot.slane %v464_v9, 1  ;;  %v944_v63 = vld [vmem:[%s5129_s26] sm:$0xe] }
  0x20   : > { %v387_v19 = vsel %vm343_vm1, %v382_v4, %v386_v8  ;;  %v392_v21 = vshll.u32 %v5226_v10, 16  ;;  %v472_v22 = vshll.u32 %v5229_v11, 16  ;;  %v396_v25 = vshrl.u32 %v5226_v10, 16 }
  0x21   : > { %v467_v29 = vsel %vm343_vm1, %v462_v16, %v466_v20  ;;  %v390_v30 = vor.u32 %v388_v17, %v386_v8  ;;  %v400_v34 = vshll.u32 %v5238_v23, 16  ;;  %v476_v35 = vshrl.u32 %v5229_v11, 16 }
  0x22   : > { %v394_v31 = vrot.slane %v392_v21, 1  ;;  %v474_v32 = vrot.slane %v472_v22, 1  ;;  %v480_v36 = vshll.u32 %v5243_v26, 16  ;;  %v470_v41 = vor.u32 %v468_v18, %v466_v20 }
  0x23   : > { %4665 = vmatmul.mubr.msk.bf16.gmra.mxu1 %vm492_vm2, %v459_v12  ;;  %v402_v46 = vrot.slane %v400_v34, 1  ;;  %v408_v49 = vshll.u32 %v5252_v38, 16  ;;  %v404_v52 = vshrl.u32 %v5238_v23, 16  ;;  %v412_v54 = vshrl.u32 %v5252_v38, 16 }
  0x24   : > { %4645 = vmatmul.mubr.msk.bf16.gmra.mxu0 %vm492_vm2, %v379_v3  ;;  %4668 = vmatprep.mubr.msk.bf16.mxu1 %vm492_vm2, %v467_v29  ;;  %v398_v42 = vor.u32 %v396_v25, %v394_v31  ;;  %v478_v47 = vor.u32 %v476_v35, %v474_v32  ;;  %v482_v48 = vrot.slane %v480_v36, 1  ;;  %v395_v51 = vsel %vm343_vm1, %v390_v30, %v394_v31 }
  0x25   : > { %4648 = vmatprep.mubr.msk.bf16.mxu0 %vm492_vm2, %v387_v19  ;;  %v416_v55 = vshll.u32 %v5255_v40, 16  ;;  %v475_v56 = vsel %vm343_vm1, %v470_v41, %v474_v32  ;;  %v484_v57 = vshrl.u32 %v5243_v26, 16  ;;  %v488_v58 = vshll.u32 %v5022_v43, 16 }
  0x26   : > { %v403_v53 = vsel %vm343_vm1, %v398_v42, %v402_v46  ;;  %v483_v59 = vsel %vm343_vm1, %v478_v47, %v482_v48  ;;  %v410_v60 = vrot.slane %v408_v49, 1  ;;  %v406_v61 = vor.u32 %v404_v52, %v402_v46  ;;  %v5354_v46 = vld [vmem:[%s5129_s26 + $0x10] sm:$0xff]   ;;  %v5359_v49 = vld [vmem:[%s5129_s26 + $0x18] sm:$0xff]  }
  0x27   : > { %v418_v1 = vrot.slane %v416_v55, 1  ;;  %v486_v2 = vor.u32 %v484_v57, %v482_v48  ;;  %v490_v3 = vrot.slane %v488_v58, 1  ;;  %v420_v8 = vshrl.u32 %v5255_v40, 16  ;;  %v5372_v55 = vld [vmem:[%s5129_s26 + $0x30] sm:$0xff]  }
  0x28   : > { %v414_v0 = vor.u32 %v412_v54, %v410_v60  ;;  %v411_v4 = vsel %vm343_vm1, %v406_v61, %v410_v60  ;;  %v4290_v12 = vcombine.low %v944_v63, %v5133_v5  ;;  %v984_v17 = vrot.slane %v5243_v26, 1  ;;  %v5387_v61 = vld [vmem:[%s5129_s26 + $0x38] sm:$0xff]  }
  0x29   : > { %v491_v16 = vsel %vm343_vm1, %v486_v2, %v490_v3  ;;  %v422_v18 = vor.u32 %v420_v8, %v418_v1  ;;  %v986_v19 = vrot.slane %v5022_v43, 1  ;;  %v952_v21 = vrot.slane %v5139_v7, 1  ;;  %v2144_v43 = vld [vmem:[%s5129_s26 + $0x8] sm:$0xc]  ;;  %v5397_v2 = vld [vmem:[%s5129_s26 + $0x40] sm:$0xff]  }
  0x2a   : > { %v419_v9 = vsel %vm343_vm1, %v414_v0, %v418_v1  ;;  %v951_v20 = vrot.slane %v4290_v12, 1  ;;  %v1482_v29 = vsel %vm547_vm0, %v5194_v45, 0  ;;  %v954_v30 = vrot.slane %v5153_v15, 1  ;;  %v5405_v8 = vld [vmem:[%s5129_s26 + $0x48] sm:$0xff]  }
  0x2b   : > { %4669 = vmatmul.mubr.msk.bf16.gmra.mxu1 %vm492_vm2, %v475_v56  ;;  %v5288_v5 = vsel %vm950_vm3, %v984_v17, %v986_v19  ;;  %v427_v22 = vsel %vm343_vm1, %v422_v18, %v5164_v27  ;;  %v956_v27 = vrot.slane %v5167_v28, 1  ;;  %v1929_v31 = vsel %vm547_vm0, %v5174_v33, 0 }
  0x2c   : > { %4649 = vmatmul.mubr.msk.bf16.gmra.mxu0 %vm492_vm2, %v395_v51  ;;  %4672 = vmatprep.mubr.msk.bf16.mxu1 %vm492_vm2, %v483_v59  ;;  %v953_v25 = vsel %vm950_vm3, %v951_v20, %v952_v21  ;;  %v955_v45 = vsel %vm950_vm3, %v952_v21, %v954_v30  ;;  %v960_v34 = vrot.slane %v5201_v50, 1  ;;  %v964_v36 = vrot.slane %v5238_v23, 1  ;;  %v5363_v51 = vld [vmem:[%s5129_s26 + $0x20] sm:$0xff]  }
  0x2d   : > { %4652 = vmatprep.mubr.msk.bf16.mxu0 %vm492_vm2, %v403_v53  ;;  %v957_v32 = vsel %vm950_vm3, %v954_v30, %v956_v27  ;;  %v966_v42 = vrot.slane %v5252_v38, 1  ;;  %v2152_v53 = vrot.slane %v5354_v46, 2  ;;  %v2154_v54 = vrot.slane %v5359_v49, 2  ;;  %v5435_v30 = vld [vmem:[%s5129_s26 + $0x58] sm:$0xff]  }
  0x2e   : > { %v2156_v57 = vrot.slane %v5363_v51, 2  ;;  %v970_v58 = vrot.slane %v5147_v13, 1  ;;  %v972_v59 = vrot.slane %v5150_v14, 1  ;;  %v2160_v1 = vrot.slane %v5372_v55, 2 }
  0x2f   : > { %v967_v48 = vsel %vm950_vm3, %v964_v36, %v966_v42  ;;  %v5382_v60 = vsel %vm2150_vm4, %v2152_v53, %v2154_v54  ;;  %v2166_v18 = vrot.slane %v5405_v8, 2  ;;  %v974_v20 = vrot.slane %v5162_v24, 1 }
  0x30   : > { %v5390_v63 = vsel %vm2150_vm4, %v2154_v54, %v2156_v57 }
  0x33   : > { %4673 = vmatmul.mubr.msk.bf16.gmra.mxu1 %vm492_vm2, %v491_v16  ;;  %v2164_v16 = vrot.slane %v5397_v2, 2 }
  0x34   : > { %4653 = vmatmul.mubr.msk.bf16.gmra.mxu0 %vm492_vm2, %v411_v4  ;;  %4678 = vmatprep.mubr.msk.bf16.mxu1 %vm492_vm2, %v5136_v6  ;;  %v5301_v6 = vld [vmem:[%s6750_s1 + $0xa] sm:$0x3]  ;;  %v2162_v4 = vrot.slane %v5387_v61, 2 }
  0x35   : > { %4656 = vmatprep.mubr.msk.bf16.mxu0 %vm492_vm2, %v419_v9  ;;  %v5423_v21 = vsel %vm2150_vm4, %v2164_v16, %v2166_v18 }
  0x36   : > { %v5412_v12 = vsel %vm2150_vm4, %v2160_v1, %v2162_v4  ;;  %v5418_v19 = vsel %vm2150_vm4, %v2162_v4, %v2164_v16 }
  0x3b   : > { %4679 = vmatmul.mubr.msk.bf16.vlgmr.msra.gmra.mxu1 %vm492_vm2, %v5139_v7  ;;  %v5317_v7 = vld [vmem:[%s6750_s1 + $0xc] sm:$0x3] }
  0x3c   : > { %4657 = vmatmul.mubr.msk.bf16.gmra.mxu0 %vm492_vm2, %v427_v22  ;;  %4753 = vmatpush3.bf16.msra.mxu1 %v1482_v29  ;;  %v976_v22 = vrot.slane %v5180_v37, 1  ;;  %v975_v29 = vsel %vm950_vm3, %v972_v59, %v974_v20 }
  0x3d   : > { %4716 = vmatprep.mubr.msk.bf16.mxu0 %vm492_vm2, %v953_v25  ;;  %4682 = vmatprep.mubr.msk.bf16.mxu1 %vm492_vm2, %v5153_v15  ;;  %v958_v15 = vrot.slane %v5184_v39, 1  ;;  %v5431_v25 = vld [vmem:[%s5129_s26 + $0x50] sm:$0xff]  }
  0x3e   : > { %4988 = vmatprep.subr.msk.bf16.mxu1 %vm547_vm0, %v5301_v6 }
  0x3f   : > { %v959_v33 = vsel %vm950_vm3, %v956_v27, %v958_v15  ;;  %v961_v35 = vsel %vm950_vm3, %v958_v15, %v960_v34  ;;  %v977_v27 = vsel %vm950_vm3, %v974_v20, %v976_v22  ;;  %v980_v15 = vrot.slane %v5216_v62, 1 }
  0x43   : > { %4683 = vmatmul.mubr.msk.bf16.gmra.mxu1 %vm492_vm2, %v5167_v28  ;;  %v962_v28 = vrot.slane %v5226_v10, 1 }
  0x44   : > { %4717 = vmatmul.mubr.msk.bf16.vlgmr.msra.gmra.mxu0 %vm492_vm2, %v955_v45  ;;  %4686 = vmatprep.mubr.msk.bf16.mxu1 %vm492_vm2, %v5184_v39  ;;  %v2168_v45 = vrot.slane %v5431_v25, 2 }
  0x45   : > { %4791 = vmatpush3.bf16.msra.mxu0 %v1929_v31  ;;  %4720 = vmatprep.mubr.msk.bf16.mxu0 %vm492_vm2, %v957_v32  ;;  %v963_v39 = vsel %vm950_vm3, %v960_v34, %v962_v28  ;;  %v965_v41 = vsel %vm950_vm3, %v962_v28, %v964_v36  ;;  %v1258_v34 = vld [vmem:[%s5129_s26 + $0x8] sm:$0xe] }
  0x46   : > { %4989 = vmatprep.subr.msk.bf16.mxu0 %vm547_vm0, %v5317_v7  ;;  %v5442_v31 = vsel %vm2150_vm4, %v2166_v18, %v2168_v45  ;;  %v5460_v28 = vld [vmem:[%s5129_s26 + $0x68] sm:$0xff]  }
  0x4b   : > { %4687 = vmatmul.mubr.msk.bf16.gmra.mxu1 %vm492_vm2, %v5201_v50  ;;  %v968_v50 = vrot.slane %v5255_v40, 1 }
  0x4c   : > { %4721 = vmatmul.mubr.msk.bf16.gmra.mxu0 %vm492_vm2, %v959_v33  ;;  %4690 = vmatprep.mubr.msk.bf16.mxu1 %vm492_vm2, %v5226_v10  ;;  %v5351_v10 = vld [vmem:[%s5129_s26 + $0xc] sm:$0xf]  ;;  %v5456_v33 = vld [vmem:[%s5129_s26 + $0x60] sm:$0xff]  }
  0x4d   : > { %4724 = vmatprep.mubr.msk.bf16.mxu0 %vm492_vm2, %v961_v35  ;;  %v4368_v47 = vcombine.low %v2144_v43, %v5351_v10 }
  0x4f   : > { %v2151_v52 = vrot.slane %v4368_v47, 2  ;;  %v1713_v47 = vshrl.u32 %v5354_v46, 16 }
  0x51   : > { %v5375_v56 = vsel %vm2150_vm4, %v2151_v52, %v2152_v53  ;;  %v1391_v52 = vrot.slane %v5354_v46, 1  ;;  %v5483_v53 = vld [vmem:[%s5129_s26 + $0x70] sm:$0xff]  }
  0x52   : > { %v2176_v4 = vrot.slane %v5483_v53, 2 }
  0x53   : > { %4691 = vmatmul.mubr.msk.bf16.gmra.mxu1 %vm492_vm2, %v5238_v23  ;;  %v969_v23 = vsel %vm950_vm3, %v966_v42, %v968_v50  ;;  %v982_v42 = vrot.slane %v5229_v11, 1 }
  0x54   : > { %4725 = vmatmul.mubr.msk.bf16.gmra.mxu0 %vm492_vm2, %v963_v39  ;;  %4694 = vmatprep.mubr.msk.bf16.mxu1 %vm492_vm2, %v5252_v38  ;;  %v5367_v38 = vld [vmem:[%s5129_s26 + $0x28] sm:$0xff]   ;;  %v2172_v39 = vrot.slane %v5456_v33, 2 }
  0x55   : > { %4728 = vmatprep.mubr.msk.bf16.mxu0 %vm492_vm2, %v965_v41  ;;  %v2158_v0 = vrot.slane %v5367_v38, 2  ;;  %v4310_v41 = vcombine.low %v1258_v34, %v5351_v10  ;;  %v983_v54 = vsel %vm950_vm3, %v980_v15, %v982_v42  ;;  %v5516_v34 = vld [vmem:[%s5129_s26 + $0x88] sm:$0xff]  }
  0x57   : > { %v5400_v3 = vsel %vm2150_vm4, %v2156_v57, %v2158_v0  ;;  %v5408_v9 = vsel %vm2150_vm4, %v2158_v0, %v2160_v1  ;;  %v1705_v43 = vshrl.u32 %v4310_v41, 16  ;;  %v1708_v10 = vshll.u32 %v4310_v41, 16 }
  0x58   : > { %v985_v57 = vsel %vm950_vm3, %v982_v42, %v984_v17  ;;  %v1715_v0 = vrot.slane %v1713_v47, 1  ;;  %v1722_v17 = vshrl.u32 %v5359_v49, 16  ;;  %v1743_v47 = vshll.u32 %v5367_v38, 16 }
  0x5b   : > { %4695 = vmatmul.mubr.msk.bf16.gmra.mxu1 %vm492_vm2, %v5255_v40  ;;  %v971_v40 = vsel %vm950_vm3, %v968_v50, %v970_v58 }
  0x5c   : > { %4729 = vmatmul.mubr.msk.bf16.gmra.mxu0 %vm492_vm2, %v967_v48  ;;  %4698 = vmatprep.mubr.msk.bf16.mxu1 %vm492_vm2, %v5147_v13  ;;  %v973_v13 = vsel %vm950_vm3, %v970_v58, %v972_v59  ;;  %v1716_v48 = vshll.u32 %v5354_v46, 16  ;;  %v5490_v58 = vld [vmem:[%s5129_s26 + $0x78] sm:$0xff]   ;;  %v1710_v59 = vrot.slane %v1708_v10, 2  ;;  %v1740_v10 = vshrl.u32 %v5367_v38, 16 }
  0x5d   : > { %4732 = vmatprep.mubr.msk.bf16.mxu0 %vm492_vm2, %v969_v23  ;;  %v1390_v23 = vrot.slane %v4310_v41, 1 }
  0x5e   : > { %v1718_v1 = vrot.slane %v1716_v48, 2 }
  0x5f   : > { %v1392_v46 = vsel %vm950_vm3, %v1390_v23, %v1391_v52  ;;  %v1749_v23 = vshrl.u32 %v5372_v55, 16 }
  0x60   : > { %v1719_v20 = vor.u32 %v1718_v1, %v1715_v0  ;;  %v2682_v0 = vsel %vm547_vm0, %v5317_v7, 0  ;;  %v1742_v1 = vrot.slane %v1740_v10, 1 }
  0x63   : > { %4699 = vmatmul.mubr.msk.bf16.gmra.mxu1 %vm492_vm2, %v5150_v14  ;;  %v2170_v14 = vrot.slane %v5435_v30, 2 }
  0x64   : > { %4733 = vmatmul.mubr.msk.bf16.gmra.mxu0 %vm492_vm2, %v971_v40  ;;  %4702 = vmatprep.mubr.msk.bf16.mxu1 %vm492_vm2, %v5162_v24  ;;  %v978_v24 = vrot.slane %v5189_v44, 1 }
  0x65   : > { %4736 = vmatprep.mubr.msk.bf16.mxu0 %vm492_vm2, %v973_v13  ;;  %v5447_v32 = vsel %vm2150_vm4, %v2168_v45, %v2170_v14  ;;  %v1725_v13 = vshll.u32 %v5359_v49, 16  ;;  %v1395_v45 = vrot.slane %v5363_v51, 1 }
  0x66   : > { %v979_v35 = vsel %vm950_vm3, %v976_v22, %v978_v24  ;;  %v981_v36 = vsel %vm950_vm3, %v978_v24, %v980_v15  ;;  %v1731_v22 = vshrl.u32 %v5363_v51, 16  ;;  %v1724_v24 = vrot.slane %v1722_v17, 1 }
  0x67   : > { %v1727_v15 = vrot.slane %v1725_v13, 2  ;;  %v1751_v17 = vrot.slane %v1749_v23, 1 }
  0x6b   : > { %4703 = vmatmul.mubr.msk.bf16.gmra.mxu1 %vm492_vm2, %v5180_v37  ;;  %v2174_v37 = vrot.slane %v5460_v28, 2 }
  0x6c   : > { %4737 = vmatmul.mubr.msk.bf16.gmra.mxu0 %vm492_vm2, %v975_v29  ;;  %4706 = vmatprep.mubr.msk.bf16.mxu1 %vm492_vm2, %v5189_v44  ;;  %v5468_v44 = vsel %vm2150_vm4, %v2170_v14, %v2172_v39  ;;  %v1734_v29 = vshll.u32 %v5363_v51, 16  ;;  %v5513_v14 = vld [vmem:[%s5129_s26 + $0x80] sm:$0xff]  }
  0x6d   : > { %4740 = vmatprep.mubr.msk.bf16.mxu0 %vm492_vm2, %v977_v27  ;;  %v5473_v50 = vsel %vm2150_vm4, %v2172_v39, %v2174_v37  ;;  %v5497_v40 = vsel %vm2150_vm4, %v2174_v37, %v2176_v4  ;;  %v1393_v27 = vrot.slane %v5359_v49, 1  ;;  %v2180_v39 = vrot.slane %v5513_v14, 2 }
  0x6e   : > { %v2182_v37 = vrot.slane %v5516_v34, 2  ;;  %v2243_v49 = vsel %vm547_vm0, %v5301_v6, 0 }
  0x6f   : > { %v1394_v41 = vsel %vm950_vm3, %v1391_v52, %v1393_v27  ;;  %v1396_v51 = vsel %vm950_vm3, %v1393_v27, %v1395_v45  ;;  %v1752_v52 = vshll.u32 %v5372_v55, 16  ;;  %v1758_v27 = vshrl.u32 %v5387_v61, 16 }
  0x70   : > { %v5539_v6 = vsel %vm2150_vm4, %v2180_v39, %v2182_v37 }
  0x73   : > { %4707 = vmatmul.mubr.msk.bf16.gmra.mxu1 %vm492_vm2, %v5216_v62  ;;  %v1707_v62 = vrot.slane %v1705_v43, 1  ;;  %v1728_v43 = vor.u32 %v1727_v15, %v1724_v24 }
  0x74   : > { %4741 = vmatmul.mubr.msk.bf16.gmra.mxu0 %vm492_vm2, %v979_v35  ;;  %4710 = vmatprep.mubr.msk.bf16.mxu1 %vm492_vm2, %v5229_v11  ;;  %v2178_v11 = vrot.slane %v5490_v58, 2  ;;  %v1733_v35 = vrot.slane %v1731_v22, 1 }
  0x75   : > { %4744 = vmatprep.mubr.msk.bf16.mxu0 %vm492_vm2, %v981_v36  ;;  %v1711_v18 = vor.u32 %v1710_v59, %v1707_v62  ;;  %v1736_v36 = vrot.slane %v1734_v29, 2  ;;  %v5548_v62 = vld [vmem:[%s5129_s26 + $0x90] sm:$0xff]   ;;  %v1729_v59 = vsel %vm1703_vm5, %v1719_v20, %v1728_v43 }
  0x76   : > { %v5503_v16 = vsel %vm2150_vm4, %v2176_v4, %v2178_v11  ;;  %v5528_v42 = vsel %vm2150_vm4, %v2178_v11, %v2180_v39  ;;  %v1745_v4 = vrot.slane %v1743_v47, 2  ;;  %v5556_v11 = vld [vmem:[%s5129_s26 + $0x98] ss:$0 sps:$4 sm:$0x33]   ;;  %v1403_v39 = vrot.slane %v5397_v2, 1 }
  0x77   : > { %v1737_v48 = vor.u32 %v1736_v36, %v1733_v35  ;;  %v1770_v35 = vshll.u32 %v5397_v2, 16  ;;  %v1401_v36 = vrot.slane %v5387_v61, 1 }
  0x78   : > { %v1746_v29 = vor.u32 %v1745_v4, %v1742_v1  ;;  %v5601_v1 = vld [vmem:[%s5129_s26 + $0x14] sm:$0xf]  ;;  %v3344_v4 = vld [vmem:[%s5129_s26 + $0x10] sm:$0x8] }
  0x79   : > { %v1772_v10 = vrot.slane %v1770_v35, 2  ;;  %v1404_v23 = vsel %vm950_vm3, %v1401_v36, %v1403_v39 }
  0x7b   : > { %4711 = vmatmul.mubr.msk.bf16.gmra.mxu1 %vm492_vm2, %v5243_v26  ;;  %v1720_v26 = vsel %vm1703_vm5, %v1711_v18, %v1719_v20  ;;  %v5564_v18 = vld [vmem:[%s6750_s1 + $0x10] sm:$0x3]  ;;  %v2186_v20 = vrot.slane %v5556_v11, 2 }
  0x7c   : > { %4745 = vmatmul.mubr.msk.bf16.gmra.mxu0 %vm492_vm2, %v983_v54  ;;  %4754 = vmatprep.mubr.msk.bf16.mxu1 %vm492_vm2, %v1392_v46  ;;  %v1397_v54 = vrot.slane %v5367_v38, 1  ;;  %v1738_v46 = vsel %vm1703_vm5, %v1728_v43, %v1737_v48  ;;  %v1754_v38 = vrot.slane %v1752_v52, 2 }
  0x7d   : > { %4748 = vmatprep.mubr.msk.bf16.mxu0 %vm492_vm2, %v985_v57  ;;  %v1399_v57 = vrot.slane %v5372_v55, 1  ;;  %v2184_v55 = vrot.slane %v5548_v62, 2 }
  0x7e   : > { %v1398_v13 = vsel %vm950_vm3, %v1395_v45, %v1397_v54  ;;  %v1761_v45 = vshll.u32 %v5387_v61, 16  ;;  %v1755_v15 = vor.u32 %v1754_v38, %v1751_v17 }
  0x7f   : > { %v1400_v7 = vsel %vm950_vm3, %v1397_v54, %v1399_v57  ;;  %v5570_v22 = vsel %vm2150_vm4, %v2182_v37, %v2184_v55  ;;  %v5576_v24 = vsel %vm2150_vm4, %v2184_v55, %v2186_v20  ;;  %v1760_v37 = vrot.slane %v1758_v27, 1  ;;  %v5606_v55 = vld [vmem:[%s5129_s26 + $0x18] sm:$0xff]   ;;  %v5611_v27 = vld [vmem:[%s5129_s26 + $0x20] sm:$0xff]  }
  0x80   : > { %v1402_v47 = vsel %vm950_vm3, %v1399_v57, %v1401_v36  ;;  %v1785_v54 = vshrl.u32 %v5431_v25, 16  ;;  %v1788_v57 = vshll.u32 %v5431_v25, 16  ;;  %v1794_v36 = vshrl.u32 %v5435_v30, 16 }
  0x83   : > { %4755 = vmatmul.mubr.msk.bf16.vlgmr.msra.gmra.mxu1 %vm492_vm2, %v1394_v41  ;;  %v1747_v41 = vsel %vm1703_vm5, %v1737_v48, %v1746_v29  ;;  %v1779_v48 = vshll.u32 %v5405_v8, 16 }
  0x84   : > { %4749 = vmatmul.mubr.msk.bf16.gmra.mxu0 %vm492_vm2, %v5288_v5  ;;  %v5536_v5 = vld [vmem:[%s6750_s1 + $0xe] sm:$0x3]  ;;  %4829 = vmatpush3.bf16.msra.mxu1 %v2243_v49  ;;  %v1763_v49 = vrot.slane %v1761_v45, 2  ;;  %v3352_v45 = vrot.slane %v5606_v55, 3 }
  0x85   : > { %4792 = vmatprep.mubr.msk.bf16.mxu0 %vm492_vm2, %v1720_v26  ;;  %4758 = vmatprep.mubr.msk.bf16.mxu1 %vm492_vm2, %v1396_v51  ;;  %v1767_v26 = vshrl.u32 %v5397_v2, 16  ;;  %v1756_v51 = vsel %vm1703_vm5, %v1746_v29, %v1755_v15  ;;  %v1776_v2 = vshrl.u32 %v5405_v8, 16  ;;  %v1781_v38 = vrot.slane %v1779_v48, 2 }
  0x86   : > { %4990 = vmatprep.subr.msk.bf16.mxu1 %vm547_vm0, %v5536_v5  ;;  %v1764_v61 = vor.u32 %v1763_v49, %v1760_v37  ;;  %v1790_v29 = vrot.slane %v1788_v57, 2  ;;  %v1803_v49 = vshrl.u32 %v5456_v33, 16 }
  0x87   : > { %v1769_v43 = vrot.slane %v1767_v26, 1  ;;  %v1778_v17 = vrot.slane %v1776_v2, 1  ;;  %v6754_v26 = vrot.slane %v5611_v27, 3 }
  0x89   : > { %v1773_v52 = vor.u32 %v1772_v10, %v1769_v43  ;;  %v1782_v35 = vor.u32 %v1781_v38, %v1778_v17  ;;  %v5630_v43 = vsel %vm3350_vm6, %v3352_v45, %v6754_v26  ;;  %v1409_v10 = vrot.slane %v5435_v30, 1 }
  0x8a   : > { %v1815_v17 = vshll.u32 %v5460_v28, 16 }
  0x8b   : > { %4759 = vmatmul.mubr.msk.bf16.gmra.mxu1 %vm492_vm2, %v1398_v13  ;;  %v4446_v13 = vcombine.low %v3344_v4, %v5601_v1  ;;  %v1774_v20 = vsel %vm1703_vm5, %v1764_v61, %v1773_v52 }
  0x8c   : > { %4793 = vmatmul.mubr.msk.bf16.vlgmr.msra.gmra.mxu0 %vm492_vm2, %v1729_v59  ;;  %4762 = vmatprep.mubr.msk.bf16.mxu1 %vm492_vm2, %v1400_v7  ;;  %v1405_v59 = vrot.slane %v5405_v8, 1  ;;  %v1787_v7 = vrot.slane %v1785_v54, 1  ;;  %v1805_v54 = vrot.slane %v1803_v49, 1  ;;  %v3697_v49 = vld [vmem:[%s6751_s2 + $0x18] sm:$0xff] }
  0x8d   : > { %4867 = vmatpush3.bf16.msra.mxu0 %v2682_v0  ;;  %4796 = vmatprep.mubr.msk.bf16.mxu0 %vm492_vm2, %v1738_v46  ;;  %v1407_v0 = vrot.slane %v5431_v25, 1  ;;  %v1765_v46 = vsel %vm1703_vm5, %v1755_v15, %v1764_v61  ;;  %v3351_v25 = vrot.slane %v4446_v13, 3  ;;  %v1796_v61 = vrot.slane %v1794_v36, 1 }
  0x8e   : > { %4991 = vmatprep.subr.msk.bf16.mxu0 %vm547_vm0, %v5564_v18  ;;  %v1406_v8 = vsel %vm950_vm3, %v1403_v39, %v1405_v59  ;;  %v1791_v39 = vor.u32 %v1790_v29, %v1787_v7  ;;  %v1824_v13 = vshll.u32 %v5483_v53, 16  ;;  %v3696_v7 = vld [vmem:[%s6751_s2 + $0x10] sm:$0xff]  ;;  %v3695_v29 = vld [vmem:[%s6751_s2 + $0x8] sm:$0xff] }
  0x8f   : > { %v1408_v15 = vsel %vm950_vm3, %v1405_v59, %v1407_v0  ;;  %v5622_v37 = vsel %vm3350_vm6, %v3351_v25, %v3352_v45  ;;  %v5075_v59 = vmov 0   ;;  %v1410_v4 = vsel %vm950_vm3, %v1407_v0, %v1409_v10 }
  0x90   : > { %v1792_v48 = vsel %vm1703_vm5, %v1782_v35, %v1791_v39  ;;  %5003 = vset.pattern.permute.xlu0 %v5075_v59  ;;  %5004 = vset.pattern.permute.xlu1 %v5075_v59  ;;  %v1821_v0 = vshrl.u32 %v5483_v53, 16  ;;  %v1419_v59 = vrot.slane %v5513_v14, 1 }
  0x91   : > { %3742 = vperm.xlu1 %5004, %v3696_v7   ;;  %v1851_v7 = vshll.u32 %v5516_v34, 16 }
  0x92   : > { %v1823_v36 = vrot.slane %v1821_v0, 1  ;;  %v3701_v0 = vld [vmem:[%s6751_s2 + $0x38] sm:$0xff] }
  0x93   : > { %4763 = vmatmul.mubr.msk.bf16.gmra.mxu1 %vm492_vm2, %v1402_v47  ;;  %v1411_v47 = vrot.slane %v5456_v33, 1 }
  0x94   : > { %4797 = vmatmul.mubr.msk.bf16.gmra.mxu0 %vm492_vm2, %v1747_v41  ;;  %4766 = vmatprep.mubr.msk.bf16.mxu1 %vm492_vm2, %v1404_v23  ;;  %v1797_v41 = vshll.u32 %v5435_v30, 16  ;;  %v1783_v23 = vsel %vm1703_vm5, %v1773_v52, %v1782_v35  ;;  %v1812_v52 = vshrl.u32 %v5460_v28, 16 }
  0x95   : > { %4800 = vmatprep.mubr.msk.bf16.mxu0 %vm492_vm2, %v1756_v51  ;;  %v1806_v51 = vshll.u32 %v5456_v33, 16  ;;  %v1412_v30 = vsel %vm950_vm3, %v1409_v10, %v1411_v47  ;;  %3747 = vperm.xlu1 %5004, %v3697_v49   ;;  %v1830_v10 = vshrl.u32 %v5490_v58, 16  ;;  %v1853_v49 = vrot.slane %v1851_v7, 2  ;;  %v3712_v7 = vld [vmem:[%s6751_s2 + $0x90] sm:$0xff] }
  0x96   : > { %v1799_v2 = vrot.slane %v1797_v41, 2  ;;  %v1814_v45 = vrot.slane %v1812_v52, 1 }
  0x97   : > { %v1808_v57 = vrot.slane %v1806_v51, 2 }
  0x98   : > { %v1800_v33 = vor.u32 %v1799_v2, %v1796_v61  ;;  %v1839_v61 = vshrl.u32 %v5513_v14, 16  ;;  %v1842_v2 = vshll.u32 %v5513_v14, 16  ;;  %v3702_v14 = vld [vmem:[%s6751_s2 + $0x40] sm:$0xff] }
  0x99   : > { %v1809_v38 = vor.u32 %v1808_v57, %v1805_v54  ;;  %v3699_v54 = vld [vmem:[%s6751_s2 + $0x28] sm:$0xff]  ;;  %v3700_v57 = vld [vmem:[%s6751_s2 + $0x30] sm:$0xff] }
  0x9a   : > { %v1801_v25 = vsel %vm1703_vm5, %v1791_v39, %v1800_v33  ;;  %3757 = vperm.xlu1 %5004, %v3699_v54   ;;  %v1841_v52 = vrot.slane %v1839_v61, 1 }
  0x9b   : > { %4767 = vmatmul.mubr.msk.bf16.gmra.mxu1 %vm492_vm2, %v1406_v8  ;;  %v1415_v8 = vrot.slane %v5483_v53, 1  ;;  %v1810_v35 = vsel %vm1703_vm5, %v1800_v33, %v1809_v38  ;;  %v3698_v53 = vld [vmem:[%s6751_s2 + $0x20] sm:$0xff] }
  0x9c   : > { %4801 = vmatmul.mubr.msk.bf16.gmra.mxu0 %vm492_vm2, %v1765_v46  ;;  %4770 = vmatprep.mubr.msk.bf16.mxu1 %vm492_vm2, %v1408_v15  ;;  %v3694_v46 = vld [vmem:[%s6751_s2] sm:$0xff]  ;;  %v1817_v15 = vrot.slane %v1815_v17, 2 }
  0x9d   : > { %4804 = vmatprep.mubr.msk.bf16.mxu0 %vm492_vm2, %v1774_v20  ;;  %3732 = vperm.xlu0 %5003, %v3694_v46   ;;  %v1413_v20 = vrot.slane %v5460_v28, 1  ;;  %v1826_v28 = vrot.slane %v1824_v13, 2  ;;  %v1832_v46 = vrot.slane %v1830_v10, 1  ;;  %v5043_v10 = vld [vmem:[%s5129_s26 + $0x98] ss:$0 sps:$4 sm:$0x11]  }
  0x9e   : > { %v1818_v51 = vor.u32 %v1817_v15, %v1814_v45  ;;  %3767 = vperm.xlu1 %5004, %v3701_v0   ;;  %v1421_v45 = vrot.slane %v5516_v34, 1  ;;  %v3703_v15 = vld [vmem:[%s6751_s2 + $0x48] sm:$0xff]  ;;  %v3709_v0 = vld [vmem:[%s6751_s2 + $0x78] sm:$0xff] }
  0x9f   : > { %v1414_v41 = vsel %vm950_vm3, %v1411_v47, %v1413_v20  ;;  %v1416_v39 = vsel %vm950_vm3, %v1413_v20, %v1415_v8  ;;  %v1833_v47 = vshll.u32 %v5490_v58, 16  ;;  %v1848_v20 = vshrl.u32 %v5516_v34, 16 }
  0xa1   : > { %3737 = vperm.xlu0 %5003, %v3695_v29  }
  0xa2   : > { %3777 = vperm.xlu1 %5004, %v3703_v15   ;;  %v3129_v15 = vsel %vm547_vm0, %v5536_v5, 0  ;;  %v3715_v5 = vld [vmem:[%s6751_s2 + $0xa8] sm:$0xff] }
  0xa3   : > { %4771 = vmatmul.mubr.msk.bf16.gmra.mxu1 %vm492_vm2, %v1410_v4  ;;  %v1819_v4 = vsel %vm1703_vm5, %v1809_v38, %v1818_v51 }
  0xa4   : > { %4805 = vmatmul.mubr.msk.bf16.gmra.mxu0 %vm492_vm2, %v1783_v23  ;;  %4774 = vmatprep.mubr.msk.bf16.mxu1 %vm492_vm2, %v1412_v30  ;;  %v1827_v23 = vor.u32 %v1826_v28, %v1823_v36  ;;  %v1835_v30 = vrot.slane %v1833_v47, 2  ;;  %v1423_v36 = vrot.slane %v5548_v62, 1  ;;  %v3705_v47 = vld [vmem:[%s6751_s2 + $0x58] sm:$0xff] }
  0xa5   : > { %4808 = vmatprep.mubr.msk.bf16.mxu0 %vm492_vm2, %v1792_v48  ;;  %3752 = vperm.xlu0 %5003, %v3698_v53   ;;  %v1417_v48 = vrot.slane %v5490_v58, 1  ;;  %v1844_v58 = vrot.slane %v1842_v2, 2  ;;  %v1866_v2 = vshrl.u32 %v5556_v11, 16 }
  0xa6   : > { %v1828_v33 = vsel %vm1703_vm5, %v1818_v51, %v1827_v23  ;;  %v1836_v13 = vor.u32 %v1835_v30, %v1832_v46  ;;  %v1422_v51 = vsel %vm950_vm3, %v1419_v59, %v1421_v45  ;;  %3787 = vperm.xlu1 %5004, %v3705_v47   ;;  %v3708_v46 = vld [vmem:[%s6751_s2 + $0x70] sm:$0xff] }
  0xa7   : > { %v1418_v17 = vsel %vm950_vm3, %v1415_v8, %v1417_v48  ;;  %v1420_v38 = vsel %vm950_vm3, %v1417_v48, %v1419_v59  ;;  %v1845_v29 = vor.u32 %v1844_v58, %v1841_v52  ;;  %v1857_v8 = vshrl.u32 %v5548_v62, 16  ;;  %v2458_v59 = vld [vmem:[%s5129_s26 + $0x10] sm:$0xc] }
  0xa8   : > { %v1837_v28 = vsel %vm1703_vm5, %v1827_v23, %v1836_v13  ;;  %v1424_v23 = vsel %vm950_vm3, %v1421_v45, %v1423_v36  ;;  %v1869_v48 = vshll.u32 %v5556_v11, 16  ;;  %v1868_v11 = vrot.slane %v1866_v2, 1  ;;  %v3714_v45 = vld [vmem:[%s6751_s2 + $0xa0] sm:$0xff]  ;;  %v3720_v47 = vld [vmem:[%s6751_s2 + $0xd0] sm:$0xff] }
  0xa9   : > { %3762 = vperm.xlu0 %5003, %v3700_v57   ;;  %v1846_v53 = vsel %vm1703_vm5, %v1836_v13, %v1845_v29  ;;  %v1425_v57 = vrot.slane %v5043_v10, 1  ;;  %v5737_v58 = vcombine.low %v2458_v59, %v5601_v1  ;;  %v2591_v13 = vrot.slane %v5606_v55, 2  ;;  %v3719_v10 = vld [vmem:[%s6751_s2 + $0xc8] sm:$0xff]  ;;  %v3722_v2 = vld [vmem:[%s6751_s2 + $0xe0] sm:$0xff] }
  0xab   : > { %4775 = vmatmul.mubr.msk.bf16.gmra.mxu1 %vm492_vm2, %v1414_v41  ;;  %v1850_v41 = vrot.slane %v1848_v20, 1  ;;  %v2590_v1 = vrot.slane %v5737_v58, 2  ;;  %v3711_v20 = vld [vmem:[%s6751_s2 + $0x88] sm:$0xff] }
  0xac   : > { %4809 = vmatmul.mubr.msk.bf16.gmra.mxu0 %vm492_vm2, %v1801_v25  ;;  %4778 = vmatprep.mubr.msk.bf16.mxu1 %vm492_vm2, %v1416_v39  ;;  %v1860_v25 = vshll.u32 %v5548_v62, 16  ;;  %v1859_v39 = vrot.slane %v1857_v8, 1  ;;  %v3706_v62 = vld [vmem:[%s6751_s2 + $0x60] sm:$0xff] }
  0xad   : > { %4812 = vmatprep.mubr.msk.bf16.mxu0 %vm492_vm2, %v1810_v35  ;;  %3772 = vperm.xlu0 %5003, %v3702_v14   ;;  %v3704_v35 = vld [vmem:[%s6751_s2 + $0x50] sm:$0xff]  ;;  %v1854_v61 = vor.u32 %v1853_v49, %v1850_v41  ;;  %v3710_v14 = vld [vmem:[%s6751_s2 + $0x80] sm:$0xff]  ;;  %v2592_v8 = vsel %vm2150_vm4, %v2590_v1, %v2591_v13 }
  0xae   : > { %v1862_v34 = vrot.slane %v1860_v25, 2  ;;  %v5762_v25 = vld [vmem:[%s5129_s26 + $0x28] sm:$0xff]   ;;  %v5788_v49 = vld [vmem:[%s5129_s26 + $0x30] sm:$0xff]   ;;  %v3726_v1 = vld [vmem:[%s6751_s2 + $0x100] sm:$0xff] }
  0xaf   : > { %v1855_v30 = vsel %vm1703_vm5, %v1845_v29, %v1854_v61 }
  0xb0   : > { %v1863_v54 = vor.u32 %v1862_v34, %v1859_v39  ;;  %v3717_v39 = vld [vmem:[%s6751_s2 + $0xb8] sm:$0xff]  ;;  %v3718_v34 = vld [vmem:[%s6751_s2 + $0xc0] sm:$0xff] }
  0xb1   : > { %3782 = vperm.xlu0 %5003, %v3704_v35   ;;  %v2593_v35 = vrot.slane %v5611_v27, 2 }
  0xb2   : > { %v1864_v52 = vsel %vm1703_vm5, %v1854_v61, %v1863_v54  ;;  %v5822_v61 = vld [vmem:[%s5129_s26 + $0x48] sm:$0xff]  }
  0xb3   : > { %4779 = vmatmul.mubr.msk.bf16.gmra.mxu1 %vm492_vm2, %v1418_v17  ;;  %v1426_v17 = vsel %vm950_vm3, %v1423_v36, %v1425_v57  ;;  %v2595_v36 = vrot.slane %v5762_v25, 2  ;;  %v2594_v41 = vsel %vm2150_vm4, %v2591_v13, %v2593_v35 }
  0xb4   : > { %4813 = vmatmul.mubr.msk.bf16.gmra.mxu0 %vm492_vm2, %v1819_v4  ;;  %4782 = vmatprep.mubr.msk.bf16.mxu1 %vm492_vm2, %v1420_v38  ;;  %v3707_v4 = vld [vmem:[%s6751_s2 + $0x68] sm:$0xff] }
  0xb5   : > { %4816 = vmatprep.mubr.msk.bf16.mxu0 %vm492_vm2, %v1828_v33  ;;  %3792 = vperm.xlu0 %5003, %v3706_v62   ;;  %v1871_v33 = vrot.slane %v1869_v48, 2 }
  0xb6   : > { %3797 = vperm.xlu1 %5004, %v3707_v4   ;;  %v2603_v4 = vrot.slane %v5822_v61, 2 }
  0xb7   : > { %v1872_v38 = vor.u32 %v1871_v33, %v1868_v11 }
  0xb9   : > { %3802 = vperm.xlu0 %5003, %v3708_v46   ;;  %v1873_v29 = vsel %vm1703_vm5, %v1863_v54, %v1872_v38  ;;  %v3723_v46 = vld [vmem:[%s6751_s2 + $0xe8] sm:$0xff]  ;;  %v3725_v38 = vld [vmem:[%s6751_s2 + $0xf8] sm:$0xff] }
  0xba   : > { %3807 = vperm.xlu1 %5004, %v3709_v0  }
  0xbb   : > { %4783 = vmatmul.mubr.msk.bf16.gmra.mxu1 %vm492_vm2, %v1422_v51 }
  0xbc   : > { %4817 = vmatmul.mubr.msk.bf16.gmra.mxu0 %vm492_vm2, %v1837_v28  ;;  %4786 = vmatprep.mubr.msk.bf16.mxu1 %vm492_vm2, %v1424_v23  ;;  %v3716_v28 = vld [vmem:[%s6751_s2 + $0xb0] sm:$0xff]  ;;  %v5818_v23 = vld [vmem:[%s5129_s26 + $0x40] sm:$0xff]  }
  0xbd   : > { %4820 = vmatprep.mubr.msk.bf16.mxu0 %vm492_vm2, %v1846_v53  ;;  %3812 = vperm.xlu0 %5003, %v3710_v14   ;;  %v2596_v53 = vsel %vm2150_vm4, %v2593_v35, %v2595_v36  ;;  %v2601_v54 = vrot.slane %v5818_v23, 2  ;;  %v5864_v14 = vld [vmem:[%s5129_s26 + $0x58] sm:$0xff]  }
  0xbe   : > { %3817 = vperm.xlu1 %5004, %v3711_v20  }
  0xbf   : > { %v2604_v0 = vsel %vm2150_vm4, %v2601_v54, %v2603_v4 }
  0xc1   : > { %3822 = vperm.xlu0 %5003, %v3712_v7  }
  0xc3   : > { %4787 = vmatmul.mubr.msk.bf16.gmra.mxu1 %vm492_vm2, %v1426_v17 }
  0xc4   : > { %4821 = vmatmul.mubr.msk.bf16.gmra.mxu0 %vm492_vm2, %v1855_v30  ;;  %4830 = vmatprep.mubr.msk.bf16.mxu1 %vm492_vm2, %v5375_v56  ;;  %v3713_v56 = vld [vmem:[%s6751_s2 + $0x98] sm:$0xff]  ;;  %v3724_v30 = vld [vmem:[%s6751_s2 + $0xf0] sm:$0xff] }
  0xc5   : > { %4824 = vmatprep.mubr.msk.bf16.mxu0 %vm492_vm2, %v1864_v52  ;;  %3827 = vperm.xlu1 %5004, %v3713_v56   ;;  %v5856_v52 = vld [vmem:[%s5129_s26 + $0x50] sm:$0xff]   ;;  %v2607_v56 = vrot.slane %v5864_v14, 2 }
  0xc6   : > { %3832 = vperm.xlu0 %5003, %v3714_v45   ;;  %v2605_v7 = vrot.slane %v5856_v52, 2  ;;  %v3727_v45 = vld [vmem:[%s6751_s2 + $0x108] sm:$0xff] }
  0xc9   : > { %3837 = vperm.xlu1 %5004, %v3715_v5   ;;  %v5900_v5 = vld [vmem:[%s5129_s26 + $0x60] sm:$0xff]  }
  0xca   : > { %3842 = vperm.xlu0 %5003, %v3716_v28  }
  0xcb   : > { %4831 = vmatmul.mubr.msk.bf16.vlgmr.msra.gmra.mxu1 %vm492_vm2, %v5382_v60  ;;  %v3443_v60 = vsel %vm547_vm0, %v5564_v18, 0  ;;  %v2597_v18 = vrot.slane %v5788_v49, 2 }
  0xcc   : > { %4825 = vmatmul.mubr.msk.bf16.gmra.mxu0 %vm492_vm2, %v1873_v29  ;;  %4905 = vmatpush3.bf16.msra.mxu1 %v3129_v15  ;;  %v3728_v15 = vld [vmem:[%s6751_s2 + $0x110] sm:$0xff] }
  0xcd   : > { %4868 = vmatprep.mubr.msk.bf16.mxu0 %vm492_vm2, %v2592_v8  ;;  %4834 = vmatprep.mubr.msk.bf16.mxu1 %vm492_vm2, %v5390_v63  ;;  %v5794_v63 = vld [vmem:[%s5129_s26 + $0x38] sm:$0xff]   ;;  %v2598_v62 = vsel %vm2150_vm4, %v2595_v36, %v2597_v18 }
  0xce   : > { %3847 = vperm.xlu1 %5004, %v3717_v39   ;;  %v2599_v51 = vrot.slane %v5794_v63, 2  ;;  %3852 = vperm.xlu0 %5003, %v3718_v34  }
  0xd2   : > { %3857 = vperm.xlu1 %5004, %v3719_v10   ;;  %3862 = vperm.xlu0 %5003, %v3720_v47  }
  0xd3   : > { %4835 = vmatmul.mubr.msk.bf16.gmra.mxu1 %vm492_vm2, %v5400_v3  ;;  %v2600_v3 = vsel %vm2150_vm4, %v2597_v18, %v2599_v51  ;;  %v2609_v18 = vrot.slane %v5900_v5, 2 }
  0xd4   : > { %4869 = vmatmul.mubr.msk.bf16.vlgmr.msra.gmra.mxu0 %vm492_vm2, %v2594_v41  ;;  %4838 = vmatprep.mubr.msk.bf16.mxu1 %vm492_vm2, %v5408_v9  ;;  %v3721_v9 = vld [vmem:[%s6751_s2 + $0xd8] sm:$0xff]  ;;  %v2608_v41 = vsel %vm2150_vm4, %v2605_v7, %v2607_v56 }
  0xd5   : > { %4943 = vmatpush3.bf16.msra.mxu0 %v3443_v60  ;;  %4872 = vmatprep.mubr.msk.bf16.mxu0 %vm492_vm2, %v2596_v53  ;;  %v5908_v60 = vld [vmem:[%s5129_s26 + $0x68] sm:$0xff]   ;;  %v3729_v53 = vld [vmem:[%s6751_s2 + $0x118] sm:$0xff] }
  0xd6   : > { %3867 = vperm.xlu1 %5004, %v3721_v9   ;;  %3872 = vperm.xlu0 %5003, %v3722_v2   ;;  %v2611_v47 = vrot.slane %v5908_v60, 2  ;;  %v2610_v9 = vsel %vm2150_vm4, %v2607_v56, %v2609_v18  ;;  %v5935_v2 = vld [vmem:[%s5129_s26 + $0x70] sm:$0xff]  }
  0xda   : > { %3877 = vperm.xlu1 %5004, %v3723_v46   ;;  %3882 = vperm.xlu0 %5003, %v3724_v30   ;;  %v5943_v46 = vld [vmem:[%s5129_s26 + $0x78] sm:$0xff]  }
  0xdb   : > { %v5835_v57 = vpop.f32.mrf.mxu1  ;;  %4839 = vmatmul.mubr.msk.bf16.gmra.mxu1 %vm492_vm2, %v5412_v12  ;;  %v2602_v12 = vsel %vm2150_vm4, %v2599_v51, %v2601_v54 }
  0xdc   : > { %v5830_v48 = vpop.f32.mrf.mxu0  ;;  %4873 = vmatmul.mubr.msk.bf16.gmra.mxu0 %vm492_vm2, %v2598_v62  ;;  %4842 = vmatprep.mubr.msk.bf16.mxu1 %vm492_vm2, %v5418_v19 }
  0xdd   : > { %4876 = vmatprep.mubr.msk.bf16.mxu0 %vm492_vm2, %v2600_v3  ;;  %v5850_v11 = vpop.f32.mrf.mxu1 }
  0xde   : > { %v5839_v59 = vpop.f32.mrf.mxu0  ;;  %3887 = vperm.xlu1 %5004, %v3725_v38   ;;  %3892 = vperm.xlu0 %5003, %v3726_v1   ;;  %v2615_v1 = vrot.slane %v5943_v46, 2 }
  0xdf   : > { %v5858_v17 = vpop.f32.mrf.mxu1 }
  0xe0   : > { %v5852_v33 = vpop.f32.mrf.mxu0 }
  0xe1   : > { %v5872_v13 = vpop.f32.mrf.mxu1 }
  0xe2   : > { %v5860_v19 = vpop.f32.mrf.mxu0  ;;  %3897 = vperm.xlu1 %5004, %v3727_v45   ;;  %3902 = vperm.xlu0 %5003, %v3728_v15   ;;  %v5967_v15 = vld [vmem:[%s5129_s26 + $0x80] sm:$0xff]  }
  0xe3   : > { %v5879_v29 = vpop.f32.mrf.mxu1  ;;  %4843 = vmatmul.mubr.msk.bf16.gmra.mxu1 %vm492_vm2, %v5423_v21  ;;  %v2606_v21 = vsel %vm2150_vm4, %v2603_v4, %v2605_v7  ;;  %6769 = vst [vmem:[#allocation10_spill] sm:$0xff] %v5967_v15 }
  0xe4   : > { %v5874_v20 = vpop.f32.mrf.mxu0  ;;  %4877 = vmatmul.mubr.msk.bf16.gmra.mxu0 %vm492_vm2, %v2602_v12  ;;  %4846 = vmatprep.mubr.msk.bf16.mxu1 %vm492_vm2, %v5442_v31  ;;  %v2613_v12 = vrot.slane %v5935_v2, 2 }
  0xe5   : > { %4880 = vmatprep.mubr.msk.bf16.mxu0 %vm492_vm2, %v2604_v0  ;;  %v5894_v35 = vpop.f32.mrf.mxu1 }
  0xe6   : > { %v5883_v8 = vpop.f32.mrf.mxu0  ;;  %3907 = vperm.xlu1 %5004, %v3729_v53   ;;  %v2614_v45 = vsel %vm2150_vm4, %v2611_v47, %v2613_v12  ;;  %v5975_v53 = vld [vmem:[%s5129_s26 + $0x88] sm:$0xff]  }
  0xe7   : > { %v5902_v28 = vpop.f32.mrf.mxu1  ;;  %6771 = vst [vmem:[#allocation12_spill] sm:$0xff] %v5975_v53 }
  0xe8   : > { %v5896_v36 = vpop.f32.mrf.mxu0  ;;  %6761 = vst [vmem:[#allocation2_spill] sm:$0xff] %v5902_v28 }
  0xe9   : > { %v5913_v39 = vpop.f32.mrf.mxu1 }
  0xea   : > { %v5904_v31 = vpop.f32.mrf.mxu0  ;;  %6762 = vst [vmem:[#allocation3_spill] sm:$0xff] %v5913_v39 }
  0xeb   : > { %v5920_v51 = vpop.f32.mrf.mxu1  ;;  %4847 = vmatmul.mubr.msk.bf16.gmra.mxu1 %vm492_vm2, %v5447_v32  ;;  %v2612_v32 = vsel %vm2150_vm4, %v2609_v18, %v2611_v47 }
  0xec   : > { %v5915_v34 = vpop.f32.mrf.mxu0  ;;  %4881 = vmatmul.mubr.msk.bf16.gmra.mxu0 %vm492_vm2, %v2606_v21  ;;  %6763 = vst [vmem:[#allocation4_spill] sm:$0xff] %v5920_v51  ;;  %4850 = vmatprep.mubr.msk.bf16.mxu1 %vm492_vm2, %v5468_v44 }
  0xed   : > { %4884 = vmatprep.mubr.msk.bf16.mxu0 %vm492_vm2, %v2608_v41  ;;  %v5929_v62 = vpop.f32.mrf.mxu1 }
  0xee   : > { %v5924_v10 = vpop.f32.mrf.mxu0  ;;  %6764 = vst [vmem:[#allocation5_spill] sm:$0xff] %v5929_v62  ;;  %v6007_v62 = vld [vmem:[%s5129_s26 + $0x98] sm:$0xff]  }
  0xef   : > { %v5937_v54 = vpop.f32.mrf.mxu1  ;;  %6773 = vst [vmem:[#allocation14_spill] sm:$0xff] %v6007_v62 }
  0xf0   : > { %v5931_v3 = vpop.f32.mrf.mxu0  ;;  %6765 = vst [vmem:[#allocation6_spill] sm:$0xff] %v5937_v54  ;;  %v6001_v54 = vld [vmem:[%s5129_s26 + $0x90] sm:$0xff]  }
  0xf1   : > { %v5945_v30 = vpop.f32.mrf.mxu1 }
  0xf2   : > { %v5939_v4 = vpop.f32.mrf.mxu0  ;;  %6766 = vst [vmem:[#allocation7_spill] sm:$0xff] %v5945_v30 }
  0xf3   : > { %v5952_v0 = vpop.f32.mrf.mxu1  ;;  %4851 = vmatmul.mubr.msk.bf16.gmra.mxu1 %vm492_vm2, %v5473_v50  ;;  %v2616_v50 = vsel %vm2150_vm4, %v2613_v12, %v2615_v1  ;;  %v2619_v12 = vrot.slane %v5975_v53, 2 }
  0xf4   : > { %v5947_v44 = vpop.f32.mrf.mxu0  ;;  %4885 = vmatmul.mubr.msk.bf16.gmra.mxu0 %vm492_vm2, %v2610_v9  ;;  %6767 = vst [vmem:[#allocation8_spill] sm:$0xff] %v5952_v0  ;;  %4854 = vmatprep.mubr.msk.bf16.mxu1 %vm492_vm2, %v5497_v40  ;;  %v2617_v40 = vrot.slane %v5967_v15, 2 }
  0xf5   : > { %4888 = vmatprep.mubr.msk.bf16.mxu0 %vm492_vm2, %v2612_v32  ;;  %v5961_v7 = vpop.f32.mrf.mxu1 }
  0xf6   : > { %v5956_v38 = vpop.f32.mrf.mxu0  ;;  %6768 = vst [vmem:[#allocation9_spill] sm:$0xff] %v5961_v7  ;;  %v2913_v7 = vshrl.u32 %v5606_v55, 16  ;;  %v2618_v30 = vsel %vm2150_vm4, %v2615_v1, %v2617_v40 }
  0xf7   : > { %v5969_v21 = vpop.f32.mrf.mxu1 }
  0xf8   : > { %v5963_v56 = vpop.f32.mrf.mxu0  ;;  %6770 = vst [vmem:[#allocation11_spill] sm:$0xff] %v5969_v21  ;;  %v2908_v21 = vshll.u32 %v5737_v58, 16 }
  0xf9   : > { %v5977_v18 = vpop.f32.mrf.mxu1 }
  0xfa   : > { %v5971_v41 = vpop.f32.mrf.mxu0  ;;  %6772 = vst [vmem:[#allocation13_spill] sm:$0xff] %v5977_v18  ;;  %v2910_v53 = vrot.slane %v2908_v21, 3 }
  0xfb   : > { %v4680_v47 = vpop.f32.mrf.mxu1  ;;  %4855 = vmatmul.mubr.msk.bf16.gmra.mxu1 %vm492_vm2, %v5503_v16  ;;  %v2916_v16 = vshll.u32 %v5606_v55, 16 }
  0xfc   : > { %v5979_v9 = vpop.f32.mrf.mxu0  ;;  %4889 = vmatmul.mubr.msk.bf16.gmra.mxu0 %vm492_vm2, %v2614_v45  ;;  %v810_v26 = vadd.f32 %v4680_v47, %v5830_v48  ;;  %4858 = vmatprep.mubr.msk.bf16.mxu1 %vm492_vm2, %v5528_v42  ;;  %v2620_v42 = vsel %vm2150_vm4, %v2617_v40, %v2619_v12  ;;  %v2621_v40 = vrot.slane %v6001_v54, 2 }
  0xfd   : > { %4892 = vmatprep.mubr.msk.bf16.mxu0 %vm492_vm2, %v2616_v50  ;;  %v801_v45 = vpop.f32.mrf.mxu1  ;;  %v2905_v50 = vshrl.u32 %v5737_v58, 16 }
  0xfe   : > { %v5986_v32 = vpop.f32.mrf.mxu0  ;;  %v802_v0 = vadd.f32 %v801_v45, %v5839_v59  ;;  %v2915_v59 = vrot.slane %v2913_v7, 2  ;;  %v2918_v45 = vrot.slane %v2916_v16, 3 }
  0xff   : > { %v4681_v48 = vpop.f32.mrf.mxu1  ;;  %v2907_v55 = vrot.slane %v2905_v50, 2 }
 0x100   : > { %v5992_v18 = vpop.f32.mrf.mxu0  ;;  %v813_v51 = vadd.f32 %v4681_v48, %v5852_v33  ;;  %v2623_v48 = vrot.slane %v6007_v62, 2  ;;  %v2919_v16 = vor.u32 %v2918_v45, %v2915_v59 }
 0x101   : > { %v804_v58 = vpop.f32.mrf.mxu1  ;;  %v2911_v50 = vor.u32 %v2910_v53, %v2907_v55 }
 0x102   : > { %v6003_v47 = vpop.f32.mrf.mxu0  ;;  %v805_v1 = vadd.f32 %v804_v58, %v5860_v19  ;;  %v2925_v19 = vshll.u32 %v5611_v27, 16 }
 0x103   : > { %v4684_v28 = vpop.f32.mrf.mxu1  ;;  %4859 = vmatmul.mubr.msk.bf16.gmra.mxu1 %vm492_vm2, %v5539_v6  ;;  %v2931_v6 = vshrl.u32 %v5762_v25, 16 }
 0x104   : > { %v4718_v39 = vpop.f32.mrf.mxu0  ;;  %4893 = vmatmul.mubr.msk.bf16.gmra.mxu0 %vm492_vm2, %v2618_v30  ;;  %v826_v30 = vadd.f32 %v4684_v28, %v5874_v20  ;;  %4862 = vmatprep.mubr.msk.bf16.mxu1 %vm492_vm2, %v5570_v22  ;;  %v2622_v28 = vsel %vm2150_vm4, %v2619_v12, %v2621_v40  ;;  %v5064_v22 = vld [vmem:[%s5129_s26 + $0xa0] ss:$0 sps:$4 sm:$0x33]   ;;  %v2927_v59 = vrot.slane %v2925_v19, 3  ;;  %v2943_v19 = vshll.u32 %v5788_v49, 16 }
 0x105   : > { %v6012_v15 = vadd.f32 %v4718_v39, %v810_v26  ;;  %4896 = vmatprep.mubr.msk.bf16.mxu0 %vm492_vm2, %v2620_v42  ;;  %v2922_v26 = vshrl.u32 %v5611_v27, 16  ;;  %v817_v39 = vpop.f32.mrf.mxu1  ;;  %v2934_v42 = vshll.u32 %v5762_v25, 16 }
 0x106   : > { %v1079_v33 = vpop.f32.mrf.mxu0  ;;  %v818_v58 = vadd.f32 %v817_v39, %v5883_v8  ;;  %v2920_v8 = vsel %vm2903_vm7, %v2911_v50, %v2919_v16 }
 0x107   : > { %6774 = vst [vmem:[#allocation15_spill] sm:$0xff] %v6012_v15  ;;  %v6020_v7 = vadd.f32 %v1079_v33, %v802_v0  ;;  %v4685_v0 = vpop.f32.mrf.mxu1  ;;  %v2924_v55 = vrot.slane %v2922_v26, 2  ;;  %v2936_v12 = vrot.slane %v2934_v42, 3  ;;  %v2940_v26 = vshrl.u32 %v5788_v49, 16 }
 0x108   : > { %v4719_v21 = vpop.f32.mrf.mxu0  ;;  %v829_v15 = vadd.f32 %v4685_v0, %v5896_v36  ;;  %v2949_v42 = vshrl.u32 %v5794_v63, 16 }
 0x109   : > { %6775 = vst [vmem:[#allocation16_spill] sm:$0xff] %v6020_v7  ;;  %v6029_v20 = vadd.f32 %v4719_v21, %v813_v51  ;;  %v2624_v7 = vsel %vm2150_vm4, %v2621_v40, %v2623_v48  ;;  %v820_v45 = vpop.f32.mrf.mxu1  ;;  %v2933_v51 = vrot.slane %v2931_v6, 2  ;;  %v2625_v40 = vrot.slane %v5064_v22, 2 }
 0x10a   : > { %v1082_v33 = vpop.f32.mrf.mxu0  ;;  %v821_v39 = vadd.f32 %v820_v45, %v5904_v31  ;;  %v2928_v31 = vor.u32 %v2927_v59, %v2924_v55  ;;  %v2945_v45 = vrot.slane %v2943_v19, 3 }
 0x10b   : > { %v6035_v53 = vadd.f32 %v1082_v33, %v805_v1  ;;  %v4688_v36 = vpop.f32.mrf.mxu1  ;;  %4863 = vmatmul.mubr.msk.bf16.gmra.mxu1 %vm492_vm2, %v5576_v24  ;;  %v2626_v0 = vsel %vm2150_vm4, %v2623_v48, %v2625_v40 }
 0x10c   : > { %v4722_v62 = vpop.f32.mrf.mxu0  ;;  %4897 = vmatmul.mubr.msk.bf16.gmra.mxu0 %vm492_vm2, %v2622_v28  ;;  %v842_v50 = vadd.f32 %v4688_v36, %v5915_v34  ;;  %4906 = vmatprep.mubr.msk.bf16.mxu1 %vm492_vm2, %v2920_v8  ;;  %v2952_v28 = vshll.u32 %v5794_v63, 16  ;;  %v2929_v59 = vsel %vm2903_vm7, %v2919_v16, %v2928_v31 }
 0x10d   : > { %v6040_v21 = vadd.f32 %v4722_v62, %v826_v30  ;;  %4900 = vmatprep.mubr.msk.bf16.mxu0 %vm492_vm2, %v2624_v7  ;;  %v833_v62 = vpop.f32.mrf.mxu1  ;;  %v2937_v7 = vor.u32 %v2936_v12, %v2933_v51 }
 0x10e   : > { %v1095_v1 = vpop.f32.mrf.mxu0  ;;  %v834_v24 = vadd.f32 %v833_v62, %v5924_v10  ;;  %v2954_v36 = vrot.slane %v2952_v28, 3 }
 0x10f   : > { %v6048_v6 = vadd.f32 %v1095_v1, %v818_v58  ;;  %v4689_v33 = vpop.f32.mrf.mxu1  ;;  %v2942_v58 = vrot.slane %v2940_v26, 2  ;;  %v2938_v10 = vsel %vm2903_vm7, %v2928_v31, %v2937_v7  ;;  %v3356_v1 = vrot.slane %v5762_v25, 3 }
 0x110   : > { %v4723_v30 = vpop.f32.mrf.mxu0  ;;  %v845_v8 = vadd.f32 %v4689_v33, %v5931_v3  ;;  %v6776_v33 = vrot.slane %v5611_v27, 3 }
 0x111   : > { %v6054_v22 = vadd.f32 %v4723_v30, %v829_v15  ;;  %v836_v51 = vpop.f32.mrf.mxu1  ;;  %v2951_v15 = vrot.slane %v2949_v42, 2  ;;  %v2946_v16 = vor.u32 %v2945_v45, %v2942_v58  ;;  %v2967_v30 = vshrl.u32 %v5822_v61, 16 }
 0x112   : > { %v1098_v34 = vpop.f32.mrf.mxu0  ;;  %v837_v48 = vadd.f32 %v836_v51, %v5939_v4  ;;  %v2958_v4 = vshrl.u32 %v5818_v23, 16  ;;  %v2970_v42 = vshll.u32 %v5822_v61, 16 }
 0x113   : > { %v6058_v55 = vadd.f32 %v1098_v34, %v821_v39  ;;  %v4692_v3 = vpop.f32.mrf.mxu1  ;;  %4907 = vmatmul.mubr.msk.bf16.vlgmr.msra.gmra.mxu1 %vm492_vm2, %v2929_v59  ;;  %v3357_v34 = vsel %vm3350_vm6, %v6776_v33, %v3356_v1 }
 0x114   : > { %v4726_v12 = vpop.f32.mrf.mxu0  ;;  %4901 = vmatmul.mubr.msk.bf16.gmra.mxu0 %vm492_vm2, %v2626_v0  ;;  %v858_v26 = vadd.f32 %v4692_v3, %v5947_v44  ;;  %4910 = vmatprep.mubr.msk.bf16.mxu1 %vm492_vm2, %v2938_v10  ;;  %v2947_v0 = vsel %vm2903_vm7, %v2937_v7, %v2946_v16  ;;  %v2960_v59 = vrot.slane %v2958_v4, 2  ;;  %v3360_v3 = vrot.slane %v5794_v63, 3 }
 0x115   : > { %v6064_v40 = vadd.f32 %v4726_v12, %v842_v50  ;;  %4944 = vmatprep.mubr.msk.bf16.mxu0 %vm492_vm2, %v5622_v37  ;;  %v2961_v50 = vshll.u32 %v5818_v23, 16  ;;  %v849_v31 = vpop.f32.mrf.mxu1  ;;  %v2955_v37 = vor.u32 %v2954_v36, %v2951_v15  ;;  %v2972_v15 = vrot.slane %v2970_v42, 3 }
 0x116   : > { %v1111_v39 = vpop.f32.mrf.mxu0  ;;  %v850_v28 = vadd.f32 %v849_v31, %v5956_v38  ;;  %v2985_v31 = vshrl.u32 %v5864_v14, 16 }
 0x117   : > { %v6071_v19 = vadd.f32 %v1111_v39, %v834_v24  ;;  %v4693_v44 = vpop.f32.mrf.mxu1  ;;  %v2963_v51 = vrot.slane %v2961_v50, 3  ;;  %v2956_v38 = vsel %vm2903_vm7, %v2946_v16, %v2955_v37  ;;  %v2979_v39 = vshll.u32 %v5856_v52, 16 }
 0x118   : > { %v4727_v62 = vpop.f32.mrf.mxu0  ;;  %v861_v58 = vadd.f32 %v4693_v44, %v5963_v56  ;;  %v3358_v56 = vrot.slane %v5788_v49, 3 }
 0x119   : > { %v6079_v25 = vadd.f32 %v4727_v62, %v845_v8  ;;  %v852_v12 = vpop.f32.mrf.mxu1  ;;  %v2969_v8 = vrot.slane %v2967_v30, 2  ;;  %v2988_v62 = vshll.u32 %v5864_v14, 16 }
 0x11a   : > { %v1114_v24 = vpop.f32.mrf.mxu0  ;;  %v853_v7 = vadd.f32 %v852_v12, %v5971_v41  ;;  %v2964_v41 = vor.u32 %v2963_v51, %v2960_v59  ;;  %v3359_v42 = vsel %vm3350_vm6, %v3356_v1, %v3358_v56 }
 0x11b   : > { %v6086_v45 = vadd.f32 %v1114_v24, %v837_v48  ;;  %v4696_v36 = vpop.f32.mrf.mxu1  ;;  %4911 = vmatmul.mubr.msk.bf16.gmra.mxu1 %vm492_vm2, %v2947_v0  ;;  %v2973_v49 = vor.u32 %v2972_v15, %v2969_v8  ;;  %v2981_v0 = vrot.slane %v2979_v39, 3  ;;  %v2990_v1 = vrot.slane %v2988_v62, 3 }
 0x11c   : > { %v4730_v10 = vpop.f32.mrf.mxu0  ;;  %4945 = vmatmul.mubr.msk.bf16.vlgmr.msra.gmra.mxu0 %vm492_vm2, %v5630_v43  ;;  %v2976_v43 = vshrl.u32 %v5856_v52, 16  ;;  %v874_v16 = vadd.f32 %v4696_v36, %v5979_v9  ;;  %4914 = vmatprep.mubr.msk.bf16.mxu1 %vm492_vm2, %v2956_v38  ;;  %v2965_v59 = vsel %vm2903_vm7, %v2955_v37, %v2964_v41  ;;  %v2994_v36 = vshrl.u32 %v5900_v5, 16 }
 0x11d   : > { %v6092_v27 = vadd.f32 %v4730_v10, %v858_v26  ;;  %4948 = vmatprep.mubr.msk.bf16.mxu0 %vm492_vm2, %v3357_v34  ;;  %v865_v26 = vpop.f32.mrf.mxu1 }
 0x11e   : > { %v1127_v48 = vpop.f32.mrf.mxu0  ;;  %v866_v63 = vadd.f32 %v865_v26, %v5986_v32  ;;  %v2978_v24 = vrot.slane %v2976_v43, 2  ;;  %v2974_v32 = vsel %vm2903_vm7, %v2964_v41, %v2973_v49 }
 0x11f   : > { %v6101_v4 = vadd.f32 %v1127_v48, %v850_v28  ;;  %v4697_v44 = vpop.f32.mrf.mxu1  ;;  %v3361_v28 = vsel %vm3350_vm6, %v3358_v56, %v3360_v3 }
 0x120   : > { %v4731_v50 = vpop.f32.mrf.mxu0  ;;  %v877_v33 = vadd.f32 %v4697_v44, %v5992_v18  ;;  %v3362_v18 = vrot.slane %v5818_v23, 3  ;;  %v2982_v15 = vor.u32 %v2981_v0, %v2978_v24  ;;  %v3003_v23 = vshrl.u32 %v5908_v60, 16 }
 0x121   : > { %v6107_v30 = vadd.f32 %v4731_v50, %v861_v58  ;;  %v868_v51 = vpop.f32.mrf.mxu1  ;;  %v2987_v58 = vrot.slane %v2985_v31, 2  ;;  %v2996_v44 = vrot.slane %v2994_v36, 2  ;;  %v3024_v36 = vshll.u32 %v5943_v46, 16 }
 0x122   : > { %v1130_v9 = vpop.f32.mrf.mxu0  ;;  %v869_v10 = vadd.f32 %v868_v51, %v6003_v47  ;;  %v2997_v47 = vshll.u32 %v5900_v5, 16  ;;  %v3363_v26 = vsel %vm3350_vm6, %v3360_v3, %v3362_v18  ;;  %v2983_v31 = vsel %vm2903_vm7, %v2973_v49, %v2982_v15 }
 0x123   : > { %v6112_v34 = vadd.f32 %v1130_v9, %v853_v7  ;;  %v4700_v8 = vpop.f32.mrf.mxu1  ;;  %4915 = vmatmul.mubr.msk.bf16.gmra.mxu1 %vm492_vm2, %v2965_v59  ;;  %v3364_v7 = vrot.slane %v5822_v61, 3  ;;  %v2991_v39 = vor.u32 %v2990_v1, %v2987_v58  ;;  %v3012_v58 = vshrl.u32 %v5935_v2, 16 }
 0x124   : > { %v4734_v12 = vpop.f32.mrf.mxu0  ;;  %4949 = vmatmul.mubr.msk.bf16.gmra.mxu0 %vm492_vm2, %v3359_v42  ;;  %4918 = vmatprep.mubr.msk.bf16.mxu1 %vm492_vm2, %v2974_v32  ;;  %v2999_v9 = vrot.slane %v2997_v47, 3  ;;  %v3368_v32 = vrot.slane %v5864_v14, 3  ;;  %v3015_v1 = vshll.u32 %v5935_v2, 16 }
 0x125   : > { %v6118_v38 = vadd.f32 %v4734_v12, %v874_v16  ;;  %4952 = vmatprep.mubr.msk.bf16.mxu0 %vm492_vm2, %v3361_v28  ;;  %v881_v48 = vpop.f32.mrf.mxu1  ;;  %v3006_v16 = vshll.u32 %v5908_v60, 16  ;;  %v3365_v62 = vsel %vm3350_vm6, %v3362_v18, %v3364_v7  ;;  %v2992_v0 = vsel %vm2903_vm7, %v2982_v15, %v2991_v39 }
 0x126   : > { %v1143_v37 = vpop.f32.mrf.mxu0  ;;  %v882_v59 = vadd.f32 %v881_v48, %v5850_v11  ;;  %v3000_v11 = vor.u32 %v2999_v9, %v2996_v44  ;;  %v3021_v15 = vshrl.u32 %v5943_v46, 16 }
 0x127   : > { %v6124_v56 = vadd.f32 %v1143_v37, %v866_v63  ;;  %v4701_v61 = vpop.f32.mrf.mxu1  ;;  %v890_v63 = vadd.f32 %v4700_v8, %v5835_v57  ;;  %v3008_v3 = vrot.slane %v3006_v16, 3  ;;  %v3366_v57 = vrot.slane %v5856_v52, 3 }
 0x128   : > { %v4735_v43 = vpop.f32.mrf.mxu0  ;;  %v3014_v16 = vrot.slane %v3012_v58, 2  ;;  %v3023_v44 = vrot.slane %v3021_v15, 2 }
 0x129   : > { %v6131_v41 = vadd.f32 %v4735_v43, %v877_v33  ;;  %v884_v28 = vpop.f32.mrf.mxu1  ;;  %v3005_v33 = vrot.slane %v3003_v23, 2  ;;  %v3367_v48 = vsel %vm3350_vm6, %v3364_v7, %v3366_v57  ;;  %v3369_v23 = vsel %vm3350_vm6, %v3366_v57, %v3368_v32 }
 0x12a   : > { %v1146_v50 = vpop.f32.mrf.mxu0  ;;  %v885_v14 = vadd.f32 %v884_v28, %v5872_v13  ;;  %v3026_v7 = vrot.slane %v3024_v36, 3 }
 0x12b   : > { %v6137_v42 = vadd.f32 %v1146_v50, %v869_v10  ;;  %v4704_v49 = vpop.f32.mrf.mxu1  ;;  %4919 = vmatmul.mubr.msk.bf16.gmra.mxu1 %vm492_vm2, %v2983_v31  ;;  %v893_v10 = vadd.f32 %v4701_v61, %v5858_v17  ;;  %v3009_v52 = vor.u32 %v3008_v3, %v3005_v33  ;;  %v3001_v31 = vsel %vm2903_vm7, %v2991_v39, %v3000_v11  ;;  %v6777_v3 = vld [vmem:[#allocation2_spill] sm:$0xff] }
 0x12c   : > { %v4738_v24 = vpop.f32.mrf.mxu0  ;;  %4953 = vmatmul.mubr.msk.bf16.gmra.mxu0 %vm492_vm2, %v3363_v26  ;;  %4922 = vmatprep.mubr.msk.bf16.mxu1 %vm492_vm2, %v2992_v0  ;;  %v3017_v26 = vrot.slane %v3015_v1, 3  ;;  %v906_v61 = vadd.f32 %v4704_v49, %v5879_v29  ;;  %v3370_v29 = vrot.slane %v5900_v5, 3  ;;  %v3372_v33 = vrot.slane %v5908_v60, 3 }
 0x12d   : > { %v6142_v51 = vadd.f32 %v4738_v24, %v890_v63  ;;  %4956 = vmatprep.mubr.msk.bf16.mxu0 %vm492_vm2, %v3365_v62  ;;  %v897_v8 = vpop.f32.mrf.mxu1  ;;  %v3010_v13 = vsel %vm2903_vm7, %v3000_v11, %v3009_v52  ;;  %v3027_v5 = vor.u32 %v3026_v7, %v3023_v44  ;;  %v6782_v7 = vld [vmem:[#allocation5_spill] sm:$0xff] }
 0x12e   : > { %v1159_v12 = vpop.f32.mrf.mxu0  ;;  %v898_v9 = vadd.f32 %v897_v8, %v5894_v35  ;;  %v3018_v0 = vor.u32 %v3017_v26, %v3014_v16  ;;  %v6778_v35 = vld [vmem:[#allocation10_spill] sm:$0xff]  ;;  %v3371_v36 = vsel %vm3350_vm6, %v3368_v32, %v3370_v29 }
 0x12f   : > { %v6151_v18 = vadd.f32 %v1159_v12, %v882_v59  ;;  %v4705_v43 = vpop.f32.mrf.mxu1  ;;  %v3030_v49 = vshrl.u32 %v6778_v35, 16  ;;  %v3033_v12 = vshll.u32 %v6778_v35, 16 }
 0x130   : > { %v4739_v37 = vpop.f32.mrf.mxu0  ;;  %v909_v59 = vadd.f32 %v4705_v43, %v6777_v3  ;;  %v3019_v43 = vsel %vm2903_vm7, %v3009_v52, %v3018_v0  ;;  %v3374_v52 = vrot.slane %v5935_v2, 3  ;;  %v3376_v3 = vrot.slane %v5943_v46, 3  ;;  %v6785_v46 = vld [vmem:[#allocation7_spill] sm:$0xff] }
 0x131   : > { %v6157_v47 = vadd.f32 %v4739_v37, %v893_v10  ;;  %v900_v62 = vpop.f32.mrf.mxu1  ;;  %v6779_v10 = vld [vmem:[#allocation12_spill] sm:$0xff]  ;;  %v6780_v37 = vld [vmem:[#allocation3_spill] sm:$0xff] }
 0x132   : > { %v1162_v17 = vpop.f32.mrf.mxu0  ;;  %v3039_v11 = vshrl.u32 %v6779_v10, 16  ;;  %v3042_v8 = vshll.u32 %v6779_v10, 16  ;;  %v901_v15 = vadd.f32 %v900_v62, %v6780_v37  ;;  %v3028_v62 = vsel %vm2903_vm7, %v3018_v0, %v3027_v5  ;;  %v6784_v37 = vld [vmem:[#allocation14_spill] sm:$0xff] }
 0x133   : > { %v6162_v50 = vadd.f32 %v1162_v17, %v885_v14  ;;  %v4708_v24 = vpop.f32.mrf.mxu1  ;;  %4923 = vmatmul.mubr.msk.bf16.gmra.mxu1 %vm492_vm2, %v3001_v31  ;;  %v3373_v17 = vsel %vm3350_vm6, %v3370_v29, %v3372_v33  ;;  %v3035_v31 = vrot.slane %v3033_v12, 3  ;;  %v3051_v0 = vshll.u32 %v6001_v54, 16 }
 0x134   : > { %v4742_v63 = vpop.f32.mrf.mxu0  ;;  %4957 = vmatmul.mubr.msk.bf16.gmra.mxu0 %vm492_vm2, %v3367_v48  ;;  %4926 = vmatprep.mubr.msk.bf16.mxu1 %vm492_vm2, %v3010_v13  ;;  %v3041_v44 = vrot.slane %v3039_v11, 2  ;;  %v3044_v32 = vrot.slane %v3042_v8, 3 }
 0x135   : > { %v6168_v28 = vadd.f32 %v4742_v63, %v906_v61  ;;  %4960 = vmatprep.mubr.msk.bf16.mxu0 %vm492_vm2, %v3369_v23  ;;  %v913_v58 = vpop.f32.mrf.mxu1  ;;  %v6781_v23 = vld [vmem:[#allocation4_spill] sm:$0xff]  ;;  %v3032_v61 = vrot.slane %v3030_v49, 2  ;;  %v6783_v49 = vld [vmem:[#allocation6_spill] sm:$0xff] }
 0x136   : > { %v1175_v39 = vpop.f32.mrf.mxu0  ;;  %v922_v16 = vadd.f32 %v4708_v24, %v6781_v23  ;;  %v3045_v8 = vor.u32 %v3044_v32, %v3041_v44 }
 0x137   : > { %v6175_v57 = vadd.f32 %v1175_v39, %v898_v9  ;;  %v4709_v14 = vpop.f32.mrf.mxu1  ;;  %v914_v9 = vadd.f32 %v913_v58, %v6782_v7  ;;  %v3036_v58 = vor.u32 %v3035_v31, %v3032_v61  ;;  %v6214_v61 = vld [vmem:[%s5129_s26 + $0xa0] ss:$0 sps:$4 sm:$0x77]   ;;  %v6786_v31 = vld [vmem:[#allocation8_spill] sm:$0xff]  ;;  %s4993_s26 = smul.u32 288, %s6801_s16 }
 0x138   : > { %v4743_v1 = vpop.f32.mrf.mxu0  ;;  %v925_v12 = vadd.f32 %v4709_v14, %v6783_v49 }
 0x139   : > { %v6183_v60 = vadd.f32 %v4743_v1, %v909_v59  ;;  %v916_v63 = vpop.f32.mrf.mxu1  ;;  %v3048_v59 = vshrl.u32 %v6001_v54, 16  ;;  %v3037_v7 = vsel %vm2903_vm7, %v3027_v5, %v3036_v58  ;;  %s6502_s20 = scalar_lea.vmem %s6752_s3, %s4993_s26 }
 0x13a   : > { %v1178_v48 = vpop.f32.mrf.mxu0 }
 0x13b   : > { %v6189_v26 = vadd.f32 %v1178_v48, %v901_v15  ;;  %v4712_v29 = vpop.f32.mrf.mxu1  ;;  %4927 = vmatmul.mubr.msk.bf16.gmra.mxu1 %vm492_vm2, %v3019_v43  ;;  %v3057_v15 = vshrl.u32 %v6784_v37, 16  ;;  %v917_v48 = vadd.f32 %v916_v63, %v6785_v46  ;;  %v3380_v46 = vrot.slane %v6779_v10, 3 }
 0x13c   : > { %v4746_v13 = vpop.f32.mrf.mxu0  ;;  %4961 = vmatmul.mubr.msk.bf16.gmra.mxu0 %vm492_vm2, %v3371_v36  ;;  %4930 = vmatprep.mubr.msk.bf16.mxu1 %vm492_vm2, %v3028_v62  ;;  %v3060_v36 = vshll.u32 %v6784_v37, 16  ;;  %v3053_v62 = vrot.slane %v3051_v0, 3  ;;  %v938_v44 = vadd.f32 %v4712_v29, %v6786_v31  ;;  %v3378_v29 = vrot.slane %v6778_v35, 3 }
 0x13d   : > { %v6194_v39 = vadd.f32 %v4746_v13, %v922_v16  ;;  %4964 = vmatprep.mubr.msk.bf16.mxu0 %vm492_vm2, %v3373_v17  ;;  %v929_v11 = vpop.f32.mrf.mxu1  ;;  %v3375_v17 = vsel %vm3350_vm6, %v3372_v33, %v3374_v52  ;;  %v3377_v16 = vsel %vm3350_vm6, %v3374_v52, %v3376_v3  ;;  %v3050_v13 = vrot.slane %v3048_v59, 2 }
 0x13e   : > { %v1191_v24 = vpop.f32.mrf.mxu0  ;;  %v3046_v33 = vsel %vm2903_vm7, %v3036_v58, %v3045_v8  ;;  %v3062_v49 = vrot.slane %v3060_v36, 3  ;;  %v6788_v58 = vld [vmem:[#allocation11_spill] sm:$0xff] }
 0x13f   : > { %v6203_v1 = vadd.f32 %v1191_v24, %v914_v9  ;;  %v4713_v14 = vpop.f32.mrf.mxu1  ;;  %v3059_v24 = vrot.slane %v3057_v15, 2  ;;  %v6789_v36 = vld [vmem:[#allocation15_spill] sm:$0xff] }
 0x140   : > { %v4747_v2 = vpop.f32.mrf.mxu0  ;;  %v941_v15 = vadd.f32 %v4713_v14, %v6788_v58 }
 0x141   : > { %v6209_v43 = vadd.f32 %v4747_v2, %v925_v12  ;;  %v932_v9 = vpop.f32.mrf.mxu1  ;;  %v6787_v12 = vld [vmem:[#allocation9_spill] sm:$0xff]  ;;  %v3054_v2 = vor.u32 %v3053_v62, %v3050_v13  ;;  %v3063_v31 = vor.u32 %v3062_v49, %v3059_v24  ;;  %v6791_v13 = vld [vmem:[#allocation16_spill] sm:$0xff] }
 0x142   : > { %v1194_v23 = vpop.f32.mrf.mxu0  ;;  %v930_v52 = vadd.f32 %v929_v11, %v6787_v12 }
 0x143   : > { %v6217_v32 = vadd.f32 %v1194_v23, %v917_v48  ;;  %v4756_v0 = vpop.f32.mrf.mxu1  ;;  %4931 = vmatmul.mubr.msk.bf16.gmra.mxu1 %vm492_vm2, %v3037_v7  ;;  %v3066_v48 = vshrl.u32 %v6214_v61, 16  ;;  %v3069_v23 = vshll.u32 %v6214_v61, 16 }
 0x144   : > { %v4750_v63 = vpop.f32.mrf.mxu0  ;;  %4965 = vmatmul.mubr.msk.bf16.gmra.mxu0 %vm492_vm2, %v3375_v17  ;;  %v1663_v17 = vadd.f32 %v4756_v0, %v6789_v36  ;;  %4934 = vmatprep.mubr.msk.bf16.mxu1 %vm492_vm2, %v3046_v33  ;;  %v3381_v0 = vsel %vm3350_vm6, %v3378_v29, %v3380_v46 }
 0x145   : > { %v6223_v59 = vadd.f32 %v4750_v63, %v938_v44  ;;  %4968 = vmatprep.mubr.msk.bf16.mxu0 %vm492_vm2, %v3377_v16  ;;  %v1518_v35 = vpop.f32.mrf.mxu1  ;;  %v6790_v44 = vld [vmem:[#allocation13_spill] sm:$0xff]  ;;  %v3379_v63 = vsel %vm3350_vm6, %v3376_v3, %v3378_v29  ;;  %v3068_v58 = vrot.slane %v3066_v48, 2  ;;  %v3071_v24 = vrot.slane %v3069_v23, 3 }
 0x146   : > { %v1207_v5 = vpop.f32.mrf.mxu0  ;;  %v933_v7 = vadd.f32 %v932_v9, %v6790_v44  ;;  %v1661_v62 = vadd.f32 %v1518_v35, %v6791_v13  ;;  %v3384_v48 = vrot.slane %v6784_v37, 3 }
 0x147   : > { %v6232_v11 = vadd.f32 %v1207_v5, %v930_v52  ;;  %v4757_v14 = vpop.f32.mrf.mxu1  ;;  %v3055_v52 = vsel %vm2903_vm7, %v3045_v8, %v3054_v2  ;;  %v3382_v8 = vrot.slane %v6001_v54, 3 }
 0x148   : > { %v4751_v16 = vpop.f32.mrf.mxu0  ;;  %v1664_v33 = vadd.f32 %v4757_v14, %v6029_v20 }
 0x149   : > { %v6238_v10 = vadd.f32 %v4751_v16, %v941_v15  ;;  %v1521_v49 = vpop.f32.mrf.mxu1  ;;  %v3064_v15 = vsel %vm2903_vm7, %v3054_v2, %v3063_v31  ;;  %v3072_v2 = vor.u32 %v3071_v24, %v3068_v58  ;;  %v3383_v54 = vsel %vm3350_vm6, %v3380_v46, %v3382_v8 }
 0x14a   : > { %v1210_v12 = vpop.f32.mrf.mxu0  ;;  %v1662_v3 = vadd.f32 %v1521_v49, %v6035_v53  ;;  %v3386_v46 = vrot.slane %v6214_v61, 3 }
 0x14b   : > { %v6244_v5 = vadd.f32 %v1210_v12, %v933_v7  ;;  %v4760_v29 = vpop.f32.mrf.mxu1  ;;  %4935 = vmatmul.mubr.msk.bf16.gmra.mxu1 %vm492_vm2, %v3055_v52 }
 0x14c   : > { %v4794_v9 = vpop.f32.mrf.mxu0  ;;  %4969 = vmatmul.mubr.msk.bf16.gmra.mxu0 %vm492_vm2, %v3379_v63  ;;  %v1667_v23 = vadd.f32 %v4760_v29, %v6040_v21  ;;  %4938 = vmatprep.mubr.msk.bf16.mxu1 %vm492_vm2, %v3064_v15  ;;  %v3385_v63 = vsel %vm3350_vm6, %v3382_v8, %v3384_v48 }
 0x14d   : > { %v6249_v36 = vadd.f32 %v4794_v9, %v1663_v17  ;;  %4972 = vmatprep.mubr.msk.bf16.mxu0 %vm492_vm2, %v3381_v0  ;;  %v1534_v53 = vpop.f32.mrf.mxu1 }
 0x14e   : > { %v1965_v20 = vpop.f32.mrf.mxu0  ;;  %v1665_v16 = vadd.f32 %v1534_v53, %v6048_v6 }
 0x14f   : > { %v6256_v35 = vadd.f32 %v1965_v20, %v1661_v62  ;;  %v4761_v7 = vpop.f32.mrf.mxu1  ;;  %v3073_v62 = vsel %vm2903_vm7, %v3063_v31, %v3072_v2 }
 0x150   : > { %v4795_v17 = vpop.f32.mrf.mxu0  ;;  %v1668_v37 = vadd.f32 %v4761_v7, %v6054_v22 }
 0x151   : > { %v6260_v44 = vadd.f32 %v4795_v17, %v1664_v33  ;;  %v1537_v14 = vpop.f32.mrf.mxu1 }
 0x152   : > { %v1968_v13 = vpop.f32.mrf.mxu0  ;;  %v1666_v6 = vadd.f32 %v1537_v14, %v6058_v55  ;;  %v3387_v55 = vsel %vm3350_vm6, %v3384_v48, %v3386_v46 }
 0x153   : > { %v6265_v21 = vadd.f32 %v1968_v13, %v1662_v3  ;;  %v4764_v0 = vpop.f32.mrf.mxu1  ;;  %4939 = vmatmul.mubr.msk.bf16.gmra.mxu1 %vm492_vm2, %v3073_v62 }
 0x154   : > { %v4798_v12 = vpop.f32.mrf.mxu0  ;;  %4973 = vmatmul.mubr.msk.bf16.gmra.mxu0 %vm492_vm2, %v3383_v54  ;;  %v1671_v33 = vadd.f32 %v4764_v0, %v6064_v40 }
 0x155   : > { %v6270_v52 = vadd.f32 %v4798_v12, %v1667_v23  ;;  %4976 = vmatprep.mubr.msk.bf16.mxu0 %vm492_vm2, %v3385_v63  ;;  %v1550_v31 = vpop.f32.mrf.mxu1 }
 0x156   : > { %v1981_v22 = vpop.f32.mrf.mxu0  ;;  %v1669_v49 = vadd.f32 %v1550_v31, %v6071_v19 }
 0x157   : > { %v6276_v58 = vadd.f32 %v1981_v22, %v1665_v16  ;;  %v4765_v15 = vpop.f32.mrf.mxu1 }
 0x158   : > { %v4799_v24 = vpop.f32.mrf.mxu0  ;;  %v1672_v61 = vadd.f32 %v4765_v15, %v6079_v25 }
 0x159   : > { %v6279_v9 = vadd.f32 %v4799_v24, %v1668_v37  ;;  %v1553_v29 = vpop.f32.mrf.mxu1 }
 0x15a   : > { %v1984_v3 = vpop.f32.mrf.mxu0  ;;  %v1670_v40 = vadd.f32 %v1553_v29, %v6086_v45 }
 0x15b   : > { %v6283_v8 = vadd.f32 %v1984_v3, %v1666_v6  ;;  %v4768_v2 = vpop.f32.mrf.mxu1 }
 0x15c   : > { %v4802_v20 = vpop.f32.mrf.mxu0  ;;  %4977 = vmatmul.mubr.msk.bf16.gmra.mxu0 %vm492_vm2, %v3387_v55  ;;  %v1675_v53 = vadd.f32 %v4768_v2, %v6092_v27 }
 0x15d   : > { %v6287_v23 = vadd.f32 %v4802_v20, %v1671_v33  ;;  %v1566_v48 = vpop.f32.mrf.mxu1 }
 0x15e   : > { %v1997_v19 = vpop.f32.mrf.mxu0  ;;  %v1673_v25 = vadd.f32 %v1566_v48, %v6101_v4 }
 0x15f   : > { %v6290_v17 = vadd.f32 %v1997_v19, %v1669_v49  ;;  %v4769_v7 = vpop.f32.mrf.mxu1 }
 0x160   : > { %v4803_v16 = vpop.f32.mrf.mxu0  ;;  %v1676_v63 = vadd.f32 %v4769_v7, %v6107_v30 }
 0x161   : > { %v6293_v54 = vadd.f32 %v4803_v16, %v1672_v61  ;;  %v1569_v45 = vpop.f32.mrf.mxu1 }
 0x162   : > { %v2000_v13 = vpop.f32.mrf.mxu0  ;;  %v1674_v14 = vadd.f32 %v1569_v45, %v6112_v34 }
 0x163   : > { %v6296_v37 = vadd.f32 %v2000_v13, %v1670_v40  ;;  %v4772_v27 = vpop.f32.mrf.mxu1 }
 0x164   : > { %v4806_v62 = vpop.f32.mrf.mxu0  ;;  %v1679_v46 = vadd.f32 %v4772_v27, %v6118_v38 }
 0x165   : > { %v6299_v12 = vadd.f32 %v4806_v62, %v1675_v53  ;;  %v1582_v4 = vpop.f32.mrf.mxu1 }
 0x166   : > { %v2013_v6 = vpop.f32.mrf.mxu0  ;;  %v1677_v33 = vadd.f32 %v1582_v4, %v6124_v56 }
 0x167   : > { %v6302_v0 = vadd.f32 %v2013_v6, %v1673_v25  ;;  %v4773_v30 = vpop.f32.mrf.mxu1 }
 0x168   : > { %v4807_v22 = vpop.f32.mrf.mxu0  ;;  %v1680_v49 = vadd.f32 %v4773_v30, %v6131_v41 }
 0x169   : > { %v6305_v31 = vadd.f32 %v4807_v22, %v1676_v63  ;;  %v1585_v34 = vpop.f32.mrf.mxu1 }
 0x16a   : > { %v2016_v24 = vpop.f32.mrf.mxu0  ;;  %v1678_v3 = vadd.f32 %v1585_v34, %v6137_v42 }
 0x16b   : > { %v6308_v55 = vadd.f32 %v2016_v24, %v1674_v14  ;;  %v4776_v38 = vpop.f32.mrf.mxu1 }
 0x16c   : > { %v4810_v15 = vpop.f32.mrf.mxu0  ;;  %v1683_v20 = vadd.f32 %v4776_v38, %v6142_v51 }
 0x16d   : > { %v6311_v61 = vadd.f32 %v4810_v15, %v1679_v46  ;;  %v1598_v56 = vpop.f32.mrf.mxu1 }
 0x16e   : > { %v2029_v29 = vpop.f32.mrf.mxu0  ;;  %v1681_v19 = vadd.f32 %v1598_v56, %v6151_v18 }
 0x16f   : > { %v6314_v40 = vadd.f32 %v2029_v29, %v1677_v33  ;;  %v4777_v41 = vpop.f32.mrf.mxu1 }
 0x170   : > { %v4811_v2 = vpop.f32.mrf.mxu0  ;;  %v1684_v16 = vadd.f32 %v4777_v41, %v6157_v47 }
 0x171   : > { %v6317_v53 = vadd.f32 %v4811_v2, %v1680_v49  ;;  %v1601_v42 = vpop.f32.mrf.mxu1 }
 0x172   : > { %v2032_v48 = vpop.f32.mrf.mxu0  ;;  %v1682_v13 = vadd.f32 %v1601_v42, %v6162_v50 }
 0x173   : > { %v6320_v25 = vadd.f32 %v2032_v48, %v1678_v3  ;;  %v4780_v51 = vpop.f32.mrf.mxu1 }
 0x174   : > { %v4814_v7 = vpop.f32.mrf.mxu0  ;;  %v1687_v62 = vadd.f32 %v4780_v51, %v6168_v28 }
 0x175   : > { %v6323_v63 = vadd.f32 %v4814_v7, %v1683_v20  ;;  %v1614_v18 = vpop.f32.mrf.mxu1 }
 0x176   : > { %v2045_v45 = vpop.f32.mrf.mxu0  ;;  %v1685_v6 = vadd.f32 %v1614_v18, %v6175_v57 }
 0x177   : > { %v6326_v14 = vadd.f32 %v2045_v45, %v1681_v19  ;;  %v4781_v47 = vpop.f32.mrf.mxu1 }
 0x178   : > { %v4815_v27 = vpop.f32.mrf.mxu0  ;;  %v1688_v22 = vadd.f32 %v4781_v47, %v6183_v60 }
 0x179   : > { %v6329_v46 = vadd.f32 %v4815_v27, %v1684_v16  ;;  %v1617_v50 = vpop.f32.mrf.mxu1 }
 0x17a   : > { %v2048_v4 = vpop.f32.mrf.mxu0  ;;  %v1686_v24 = vadd.f32 %v1617_v50, %v6189_v26 }
 0x17b   : > { %v6332_v33 = vadd.f32 %v2048_v4, %v1682_v13  ;;  %v4784_v28 = vpop.f32.mrf.mxu1 }
 0x17c   : > { %v4818_v30 = vpop.f32.mrf.mxu0  ;;  %v1691_v15 = vadd.f32 %v4784_v28, %v6194_v39 }
 0x17d   : > { %v6335_v49 = vadd.f32 %v4818_v30, %v1687_v62  ;;  %v1630_v57 = vpop.f32.mrf.mxu1 }
 0x17e   : > { %v2061_v34 = vpop.f32.mrf.mxu0  ;;  %v1689_v29 = vadd.f32 %v1630_v57, %v6203_v1 }
 0x17f   : > { %v6338_v3 = vadd.f32 %v2061_v34, %v1685_v6  ;;  %v4785_v60 = vpop.f32.mrf.mxu1 }
 0x180   : > { %v4819_v38 = vpop.f32.mrf.mxu0  ;;  %v1692_v2 = vadd.f32 %v4785_v60, %v6209_v43 }
 0x181   : > { %v6341_v20 = vadd.f32 %v4819_v38, %v1688_v22  ;;  %v1633_v26 = vpop.f32.mrf.mxu1 }
 0x182   : > { %v2064_v56 = vpop.f32.mrf.mxu0  ;;  %v1690_v48 = vadd.f32 %v1633_v26, %v6217_v32 }
 0x183   : > { %v6344_v19 = vadd.f32 %v2064_v56, %v1686_v24  ;;  %v4788_v39 = vpop.f32.mrf.mxu1 }
 0x184   : > { %v4822_v41 = vpop.f32.mrf.mxu0  ;;  %v1695_v7 = vadd.f32 %v4788_v39, %v6223_v59 }
 0x185   : > { %v6347_v16 = vadd.f32 %v4822_v41, %v1691_v15  ;;  %v1646_v1 = vpop.f32.mrf.mxu1 }
 0x186   : > { %v2077_v42 = vpop.f32.mrf.mxu0  ;;  %v1693_v45 = vadd.f32 %v1646_v1, %v6232_v11 }
 0x187   : > { %v6350_v13 = vadd.f32 %v2077_v42, %v1689_v29  ;;  %v4789_v43 = vpop.f32.mrf.mxu1 }
 0x188   : > { %v4823_v51 = vpop.f32.mrf.mxu0  ;;  %v1696_v27 = vadd.f32 %v4789_v43, %v6238_v10 }
 0x189   : > { %v6353_v62 = vadd.f32 %v4823_v51, %v1692_v2  ;;  %v1649_v32 = vpop.f32.mrf.mxu1 }
 0x18a   : > { %v2080_v18 = vpop.f32.mrf.mxu0  ;;  %v1694_v4 = vadd.f32 %v1649_v32, %v6244_v5 }
 0x18b   : > { %v6356_v6 = vadd.f32 %v2080_v18, %v1690_v48  ;;  %v4832_v59 = vpop.f32.mrf.mxu1 }
 0x18c   : > { %v4826_v47 = vpop.f32.mrf.mxu0  ;;  %v2424_v30 = vadd.f32 %v4832_v59, %v6249_v36 }
 0x18d   : > { %v6359_v22 = vadd.f32 %v4826_v47, %v1695_v7  ;;  %v2279_v11 = vpop.f32.mrf.mxu1 }
 0x18e   : > { %v2093_v50 = vpop.f32.mrf.mxu0  ;;  %v2422_v34 = vadd.f32 %v2279_v11, %v6256_v35 }
 0x18f   : > { %v6362_v24 = vadd.f32 %v2093_v50, %v1693_v45  ;;  %v4833_v10 = vpop.f32.mrf.mxu1 }
 0x190   : > { %v4827_v28 = vpop.f32.mrf.mxu0  ;;  %v2425_v38 = vadd.f32 %v4833_v10, %v6260_v44 }
 0x191   : > { %v6365_v15 = vadd.f32 %v4827_v28, %v1696_v27  ;;  %v2282_v5 = vpop.f32.mrf.mxu1 }
 0x192   : > { %v2096_v57 = vpop.f32.mrf.mxu0  ;;  %v2423_v56 = vadd.f32 %v2282_v5, %v6265_v21 }
 0x193   : > { %v6368_v29 = vadd.f32 %v2096_v57, %v1694_v4  ;;  %v4836_v36 = vpop.f32.mrf.mxu1 }
 0x194   : > { %v4870_v60 = vpop.f32.mrf.mxu0  ;;  %v2428_v41 = vadd.f32 %v4836_v36, %v6270_v52 }
 0x195   : > { %v6371_v2 = vadd.f32 %v4870_v60, %v2424_v30  ;;  %v2295_v35 = vpop.f32.mrf.mxu1 }
 0x196   : > { %v2718_v26 = vpop.f32.mrf.mxu0  ;;  %v2426_v42 = vadd.f32 %v2295_v35, %v6276_v58 }
 0x197   : > { %v6374_v48 = vadd.f32 %v2718_v26, %v2422_v34  ;;  %v4837_v44 = vpop.f32.mrf.mxu1 }
 0x198   : > { %v4871_v39 = vpop.f32.mrf.mxu0  ;;  %v2429_v51 = vadd.f32 %v4837_v44, %v6279_v9 }
 0x199   : > { %v6377_v7 = vadd.f32 %v4871_v39, %v2425_v38  ;;  %v2298_v21 = vpop.f32.mrf.mxu1 }
 0x19a   : > { %v2721_v1 = vpop.f32.mrf.mxu0  ;;  %v2427_v18 = vadd.f32 %v2298_v21, %v6283_v8 }
 0x19b   : > { %v6380_v45 = vadd.f32 %v2721_v1, %v2423_v56  ;;  %v4840_v52 = vpop.f32.mrf.mxu1 }
 0x19c   : > { %v4874_v43 = vpop.f32.mrf.mxu0  ;;  %v2432_v47 = vadd.f32 %v4840_v52, %v6287_v23 }
 0x19d   : > { %v6383_v27 = vadd.f32 %v4874_v43, %v2428_v41  ;;  %v2311_v58 = vpop.f32.mrf.mxu1 }
 0x19e   : > { %v2734_v32 = vpop.f32.mrf.mxu0  ;;  %v2430_v50 = vadd.f32 %v2311_v58, %v6290_v17 }
 0x19f   : > { %v6386_v4 = vadd.f32 %v2734_v32, %v2426_v42  ;;  %v4841_v9 = vpop.f32.mrf.mxu1 }
 0x1a0   : > { %v4875_v59 = vpop.f32.mrf.mxu0  ;;  %v2433_v28 = vadd.f32 %v4841_v9, %v6293_v54 }
 0x1a1   : > { %v6389_v30 = vadd.f32 %v4875_v59, %v2429_v51  ;;  %v2314_v8 = vpop.f32.mrf.mxu1 }
 0x1a2   : > { %v2737_v11 = vpop.f32.mrf.mxu0  ;;  %v2431_v57 = vadd.f32 %v2314_v8, %v6296_v37 }
 0x1a3   : > { %v6392_v34 = vadd.f32 %v2737_v11, %v2427_v18  ;;  %v4844_v23 = vpop.f32.mrf.mxu1 }
 0x1a4   : > { %v4878_v10 = vpop.f32.mrf.mxu0  ;;  %v2436_v60 = vadd.f32 %v4844_v23, %v6299_v12 }
 0x1a5   : > { %v6395_v38 = vadd.f32 %v4878_v10, %v2432_v47  ;;  %v2327_v17 = vpop.f32.mrf.mxu1 }
 0x1a6   : > { %v2750_v5 = vpop.f32.mrf.mxu0  ;;  %v2434_v26 = vadd.f32 %v2327_v17, %v6302_v0 }
 0x1a7   : > { %v6398_v56 = vadd.f32 %v2750_v5, %v2430_v50  ;;  %v4845_v54 = vpop.f32.mrf.mxu1 }
 0x1a8   : > { %v4879_v36 = vpop.f32.mrf.mxu0  ;;  %v2437_v39 = vadd.f32 %v4845_v54, %v6305_v31 }
 0x1a9   : > { %v6401_v41 = vadd.f32 %v4879_v36, %v2433_v28  ;;  %v2330_v37 = vpop.f32.mrf.mxu1 }
 0x1aa   : > { %v2753_v35 = vpop.f32.mrf.mxu0  ;;  %v2435_v1 = vadd.f32 %v2330_v37, %v6308_v55 }
 0x1ab   : > { %v6404_v42 = vadd.f32 %v2753_v35, %v2431_v57  ;;  %v4848_v12 = vpop.f32.mrf.mxu1  ;;  %v6430_v35 = vpop.permute.xlu0 %3732 }
 0x1ac   : > { %v4882_v44 = vpop.f32.mrf.mxu0  ;;  %v2440_v43 = vadd.f32 %v4848_v12, %v6311_v61 }
 0x1ad   : > { %v6407_v51 = vadd.f32 %v4882_v44, %v2436_v60  ;;  %v2343_v0 = vpop.f32.mrf.mxu1 }
 0x1ae   : > { %v2766_v21 = vpop.f32.mrf.mxu0  ;;  %v2438_v32 = vadd.f32 %v2343_v0, %v6314_v40 }
 0x1af   : > { %v6410_v18 = vadd.f32 %v2766_v21, %v2434_v26  ;;  %v4849_v31 = vpop.f32.mrf.mxu1 }
 0x1b0   : > { %v4883_v52 = vpop.f32.mrf.mxu0  ;;  %v2441_v59 = vadd.f32 %v4849_v31, %v6317_v53  ;;  %v6443_v31 = vpop.permute.xlu0 %3737 }
 0x1b1   : > { %v6413_v47 = vadd.f32 %v4883_v52, %v2437_v39  ;;  %v2346_v55 = vpop.f32.mrf.mxu1 }
 0x1b2   : > { %v2769_v58 = vpop.f32.mrf.mxu0  ;;  %v2439_v11 = vadd.f32 %v2346_v55, %v6320_v25 }
 0x1b3   : > { %v6416_v50 = vadd.f32 %v2769_v58, %v2435_v1  ;;  %v4852_v61 = vpop.f32.mrf.mxu1  ;;  %v6435_v1 = vpop.permute.xlu1 %3742 }
 0x1b4   : > { %v4886_v9 = vpop.f32.mrf.mxu0  ;;  %v2444_v10 = vadd.f32 %v4852_v61, %v6323_v63 }
 0x1b5   : > { %v6419_v28 = vadd.f32 %v4886_v9, %v2440_v43  ;;  %v2359_v40 = vpop.f32.mrf.mxu1 }
 0x1b6   : > { %v2782_v8 = vpop.f32.mrf.mxu0  ;;  %v2442_v5 = vadd.f32 %v2359_v40, %v6326_v14 }
 0x1b7   : > { %v6422_v57 = vadd.f32 %v2782_v8, %v2438_v32  ;;  %v4853_v53 = vpop.f32.mrf.mxu1  ;;  %v6448_v9 = vpop.permute.xlu1 %3747 }
 0x1b8   : > { %v4887_v23 = vpop.f32.mrf.mxu0  ;;  %v2445_v36 = vadd.f32 %v4853_v53, %v6329_v46 }
 0x1b9   : > { %v6425_v60 = vadd.f32 %v4887_v23, %v2441_v59  ;;  %v2362_v25 = vpop.f32.mrf.mxu1 }
 0x1ba   : > { %v2785_v17 = vpop.f32.mrf.mxu0  ;;  %v2443_v63 = vadd.f32 %v2362_v25, %v6332_v33 }
 0x1bb   : > { %v6428_v26 = vadd.f32 %v2785_v17, %v2439_v11  ;;  %v4856_v37 = vpop.f32.mrf.mxu1  ;;  %v6461_v25 = vpop.permute.xlu1 %3757 }
 0x1bc   : > { %v4890_v54 = vpop.f32.mrf.mxu0  ;;  %v2448_v14 = vadd.f32 %v4856_v37, %v6335_v49 }
 0x1bd   : > { %v6433_v39 = vadd.f32 %v4890_v54, %v2444_v10  ;;  %v2375_v21 = vpop.f32.mrf.mxu1 }
 0x1be   : > { %v2798_v44 = vpop.f32.mrf.mxu0  ;;  %v2446_v43 = vadd.f32 %v2375_v21, %v6338_v3 }
 0x1bf   : > { %v6438_v12 = vadd.f32 %v2798_v44, %v2442_v5  ;;  %v4857_v52 = vpop.f32.mrf.mxu1  ;;  %v6456_v5 = vpop.permute.xlu0 %3752 }
 0x1c0   : > { %v4891_v46 = vpop.f32.mrf.mxu0  ;;  %v2449_v33 = vadd.f32 %v4857_v52, %v6341_v20 }
 0x1c1   : > { %v6441_v0 = vadd.f32 %v4891_v46, %v2445_v36  ;;  %v2378_v59 = vpop.f32.mrf.mxu1 }
 0x1c2   : > { %v2801_v32 = vpop.f32.mrf.mxu0  ;;  %v2447_v49 = vadd.f32 %v2378_v59, %v6344_v19 }
 0x1c3   : > { %v6446_v58 = vadd.f32 %v2801_v32, %v2443_v63  ;;  %v4860_v61 = vpop.f32.mrf.mxu1  ;;  %v6469_v46 = vpop.permute.xlu0 %3762 }
 0x1c4   : > { %v4894_v55 = vpop.f32.mrf.mxu0  ;;  %v2452_v8 = vadd.f32 %v4860_v61, %v6347_v16 }
 0x1c5   : > { %v6451_v11 = vadd.f32 %v4894_v55, %v2448_v14  ;;  %v2391_v40 = vpop.f32.mrf.mxu1 }
 0x1c6   : > { %v2814_v3 = vpop.f32.mrf.mxu0  ;;  %v2450_v20 = vadd.f32 %v2391_v40, %v6350_v13 }
 0x1c7   : > { %v6454_v10 = vadd.f32 %v2814_v3, %v2446_v43  ;;  %v4861_v17 = vpop.f32.mrf.mxu1 }
 0x1c8   : > { %v4895_v23 = vpop.f32.mrf.mxu0  ;;  %v2453_v19 = vadd.f32 %v4861_v17, %v6353_v62 }
 0x1c9   : > { %v6459_v53 = vadd.f32 %v4895_v23, %v2449_v33  ;;  %v2394_v63 = vpop.f32.mrf.mxu1  ;;  %v6474_v33 = vpop.permute.xlu1 %3767 }
 0x1ca   : > { %v2817_v36 = vpop.f32.mrf.mxu0  ;;  %v2451_v37 = vadd.f32 %v2394_v63, %v6356_v6 }
 0x1cb   : > { %v6464_v54 = vadd.f32 %v2817_v36, %v2447_v49  ;;  %v4864_v14 = vpop.f32.mrf.mxu1 }
 0x1cc   : > { %v4898_v16 = vpop.f32.mrf.mxu0  ;;  %v2456_v13 = vadd.f32 %v4864_v14, %v6359_v22  ;;  %v6482_v22 = vpop.permute.xlu0 %3772 }
 0x1cd   : > { %v6467_v44 = vadd.f32 %v4898_v16, %v2452_v8  ;;  %v2407_v52 = vpop.f32.mrf.mxu1 }
 0x1ce   : > { %v2830_v21 = vpop.f32.mrf.mxu0  ;;  %v2454_v62 = vadd.f32 %v2407_v52, %v6362_v24  ;;  %v6487_v24 = vpop.permute.xlu1 %3777 }
 0x1cf   : > { %v6472_v43 = vadd.f32 %v2830_v21, %v2450_v20  ;;  %v4865_v6 = vpop.f32.mrf.mxu1 }
 0x1d0   : > { %v4899_v32 = vpop.f32.mrf.mxu0  ;;  %v2457_v49 = vadd.f32 %v4865_v6, %v6365_v15  ;;  %v6494_v14 = vpop.permute.xlu0 %3782 }
 0x1d1   : > { %v6477_v59 = vadd.f32 %v4899_v32, %v2453_v19  ;;  %v2410_v3 = vpop.f32.mrf.mxu1 }
 0x1d2   : > { %v2833_v55 = vpop.f32.mrf.mxu0  ;;  %v2455_v40 = vadd.f32 %v2410_v3, %v6368_v29  ;;  %v6504_v32 = vpop.permute.xlu1 %3787 }
 0x1d3   : > { %v6480_v61 = vadd.f32 %v2833_v55, %v2451_v37  ;;  %v4908_v20 = vpop.f32.mrf.mxu1 }
 0x1d4   : > { %v4902_v8 = vpop.f32.mrf.mxu0  ;;  %v3310_v21 = vadd.f32 %v4908_v20, %v6371_v2  ;;  %v6510_v20 = vpop.permute.xlu0 %3792 }
 0x1d5   : > { %v6485_v23 = vadd.f32 %v4902_v8, %v2456_v13  ;;  %v3165_v19 = vpop.f32.mrf.mxu1 }
 0x1d6   : > { %v2846_v17 = vpop.f32.mrf.mxu0 }
 0x1d7   : > { %6792 = vst [vmem:[#allocation2_spill] sm:$0xff] %v6485_v23  ;;  %v6489_v36 = vadd.f32 %v2846_v17, %v2454_v62  ;;  %v4909_v16 = vpop.f32.mrf.mxu1  ;;  %v3308_v62 = vadd.f32 %v3165_v19, %v6374_v48 }
 0x1d8   : > { %v4903_v63 = vpop.f32.mrf.mxu0  ;;  %v3311_v3 = vadd.f32 %v4909_v16, %v6377_v7 }
 0x1d9   : > { %6793 = vst [vmem:[#allocation10_spill] sm:$0xff] %v6489_v36  ;;  %v6492_v15 = vadd.f32 %v4903_v63, %v2457_v49  ;;  %v3168_v13 = vpop.f32.mrf.mxu1 }
 0x1da   : > { %v2849_v37 = vpop.f32.mrf.mxu0  ;;  %v3309_v48 = vadd.f32 %v3168_v13, %v6380_v45 }
 0x1db   : > { %6794 = vst [vmem:[#allocation12_spill] sm:$0xff] %v6492_v15  ;;  %v6497_v29 = vadd.f32 %v2849_v37, %v2455_v40  ;;  %v4912_v55 = vpop.f32.mrf.mxu1 }
 0x1dc   : > { %v4946_v52 = vpop.f32.mrf.mxu0 }
 0x1dd   : > { %6795 = vst [vmem:[#allocation3_spill] sm:$0xff] %v6497_v29  ;;  %v3624_v6 = vadd.f32 %v4946_v52, %v3310_v21  ;;  %v3181_v8 = vpop.f32.mrf.mxu1  ;;  %v6516_v21 = vpop.permute.xlu1 %3797  ;;  %v3314_v52 = vadd.f32 %v4912_v55, %v6383_v27 }
 0x1de   : > { %v3479_v49 = vpop.f32.mrf.mxu0  ;;  %v6527_v55 = vpop.permute.xlu0 %3802 }
 0x1df   : > { %3660 = vst.msk [vmem:[%s6502_s20 + $0x10] sm:$0xff] %vm492_vm2, %v3624_v6  ;;  %v3622_v2 = vadd.f32 %v3479_v49, %v3308_v62  ;;  %v4913_v19 = vpop.f32.mrf.mxu1  ;;  %v3912_v7 = vmul.f32 %v6435_v1, %v3624_v6 }
 0x1e0   : > { %v4947_v40 = vpop.f32.mrf.mxu0 }
 0x1e1   : > { %3658 = vst.msk [vmem:[%s6502_s20] sm:$0xff] %vm492_vm2, %v3622_v2  ;;  %v3910_v17 = vmul.f32 %v6430_v35, %v3622_v2  ;;  %v3625_v63 = vadd.f32 %v4947_v40, %v3311_v3  ;;  %v3184_v16 = vpop.f32.mrf.mxu1  ;;  %v3312_v35 = vadd.f32 %v3181_v8, %v6386_v4  ;;  %v4027_v1 = vmul.f32 %v3912_v7, %v3624_v6 }
 0x1e2   : > { %v3482_v37 = vpop.f32.mrf.mxu0  ;;  %v3315_v4 = vadd.f32 %v4913_v19, %v6389_v30  ;;  %v3313_v6 = vadd.f32 %v3184_v16, %v6392_v34 }
 0x1e3   : > { %3661 = vst.msk [vmem:[%s6502_s20 + $0x18] sm:$0xff] %vm492_vm2, %v3625_v63  ;;  %v3623_v62 = vadd.f32 %v3482_v37, %v3309_v48  ;;  %v4025_v29 = vmul.f32 %v3910_v17, %v3622_v2  ;;  %v3913_v45 = vmul.f32 %v6448_v9, %v3625_v63  ;;  %v4916_v3 = vpop.f32.mrf.mxu1  ;;  %v3946_v48 = vsel %vm492_vm2, %v3910_v17, 0.0 }
 0x1e4   : > { %v4950_v49 = vpop.f32.mrf.mxu0  ;;  %v4064_v34 = vsel %vm492_vm2, %v4027_v1, 0.0 }
 0x1e5   : > { %v3628_v15 = vadd.f32 %v4950_v49, %v3314_v52  ;;  %3659 = vst.msk [vmem:[%s6502_s20 + $0x8] sm:$0xff] %vm492_vm2, %v3623_v62  ;;  %v3911_v13 = vmul.f32 %v6443_v31, %v3623_v62  ;;  %v3197_v8 = vpop.f32.mrf.mxu1  ;;  %v6534_v52 = vpop.permute.xlu1 %3807  ;;  %v3949_v31 = vsel %vm492_vm2, %v3912_v7, 0.0  ;;  %v4061_v49 = vsel %vm492_vm2, %v4025_v29, 0.0 }
 0x1e6   : > { %v3495_v27 = vpop.f32.mrf.mxu0  ;;  %v4028_v17 = vmul.f32 %v3913_v45, %v3625_v63  ;;  %v3318_v7 = vadd.f32 %v4916_v3, %v6395_v38  ;;  %v3951_v16 = vsel %vm492_vm2, %v3913_v45, 0.0  ;;  %v3316_v1 = vadd.f32 %v3197_v8, %v6398_v56 }
 0x1e7   : > { %3664 = vst.msk [vmem:[%s6502_s20 + $0x30] sm:$0xff] %vm492_vm2, %v3628_v15  ;;  %v3626_v40 = vadd.f32 %v3495_v27, %v3312_v35  ;;  %v3947_v2 = vsel %vm492_vm2, %v3911_v13, 0.0  ;;  %v4026_v9 = vmul.f32 %v3911_v13, %v3623_v62  ;;  %v4917_v62 = vpop.f32.mrf.mxu1  ;;  %v3916_v29 = vmul.f32 %v6469_v46, %v3628_v15 }
 0x1e8   : > { %v4951_v37 = vpop.f32.mrf.mxu0  ;;  %v3948_v36 = vadd.f32 %v3947_v2, %v3946_v48  ;;  %v4066_v46 = vsel %vm492_vm2, %v4028_v17, 0.0 }
 0x1e9   : > { %3662 = vst.msk [vmem:[%s6502_s20 + $0x20] sm:$0xff] %vm492_vm2, %v3626_v40  ;;  %v4062_v30 = vsel %vm492_vm2, %v4026_v9, 0.0  ;;  %v3914_v19 = vmul.f32 %v6456_v5, %v3626_v40  ;;  %v3629_v35 = vadd.f32 %v4951_v37, %v3315_v4  ;;  %v3200_v63 = vpop.f32.mrf.mxu1  ;;  %v6549_v9 = vpop.permute.xlu0 %3812 }
 0x1ea   : > { %v3498_v13 = vpop.f32.mrf.mxu0  ;;  %v3950_v27 = vadd.f32 %v3949_v31, %v3948_v36  ;;  %v4063_v23 = vadd.f32 %v4062_v30, %v4061_v49  ;;  %v6558_v49 = vpop.permute.xlu1 %3817 }
 0x1eb   : > { %v4029_v48 = vmul.f32 %v3914_v19, %v3626_v40  ;;  %3665 = vst.msk [vmem:[%s6502_s20 + $0x38] sm:$0xff] %vm492_vm2, %v3629_v35  ;;  %v3627_v2 = vadd.f32 %v3498_v13, %v3313_v6  ;;  %v3917_v38 = vmul.f32 %v6474_v33, %v3629_v35  ;;  %v3953_v45 = vsel %vm492_vm2, %v3914_v19, 0.0  ;;  %v4920_v37 = vpop.f32.mrf.mxu1 }
 0x1ec   : > { %v4954_v5 = vpop.f32.mrf.mxu0  ;;  %v4065_v4 = vadd.f32 %v4064_v34, %v4063_v23  ;;  %v3952_v36 = vadd.f32 %v3951_v16, %v3950_v27  ;;  %v4031_v23 = vmul.f32 %v3916_v29, %v3628_v15  ;;  %v3319_v33 = vadd.f32 %v4917_v62, %v6401_v41 }
 0x1ed   : > { %v3632_v3 = vadd.f32 %v4954_v5, %v3318_v7  ;;  %3663 = vst.msk [vmem:[%s6502_s20 + $0x28] sm:$0xff] %vm492_vm2, %v3627_v2  ;;  %v3915_v40 = vmul.f32 %v6461_v25, %v3627_v2  ;;  %v4068_v56 = vsel %vm492_vm2, %v4029_v48, 0.0  ;;  %v3213_v19 = vpop.f32.mrf.mxu1  ;;  %v3957_v27 = vsel %vm492_vm2, %v3916_v29, 0.0 }
 0x1ee   : > { %v3511_v31 = vpop.f32.mrf.mxu0  ;;  %v3954_v6 = vadd.f32 %v3953_v45, %v3952_v36  ;;  %v4067_v30 = vadd.f32 %v4066_v46, %v4065_v4  ;;  %v4032_v34 = vmul.f32 %v3917_v38, %v3629_v35  ;;  %v3317_v16 = vadd.f32 %v3200_v63, %v6404_v42  ;;  %v6571_v4 = vpop.permute.xlu0 %3822 }
 0x1ef   : > { %3668 = vst.msk [vmem:[%s6502_s20 + $0x50] sm:$0xff] %vm492_vm2, %v3632_v3  ;;  %v3955_v8 = vsel %vm492_vm2, %v3915_v40, 0.0  ;;  %v4030_v17 = vmul.f32 %v3915_v40, %v3627_v2  ;;  %v3630_v13 = vadd.f32 %v3511_v31, %v3316_v1  ;;  %v4921_v48 = vpop.f32.mrf.mxu1  ;;  %v3322_v29 = vadd.f32 %v4920_v37, %v6407_v51  ;;  %v6579_v31 = vpop.permute.xlu1 %3827 }
 0x1f0   : > { %v4955_v25 = vpop.f32.mrf.mxu0  ;;  %v4069_v7 = vadd.f32 %v4068_v56, %v4067_v30  ;;  %v3956_v15 = vadd.f32 %v3955_v8, %v3954_v6  ;;  %v3920_v35 = vmul.f32 %v6494_v14, %v3632_v3  ;;  %v4072_v42 = vsel %vm492_vm2, %v4031_v23, 0.0 }
 0x1f1   : > { %v4070_v41 = vsel %vm492_vm2, %v4030_v17, 0.0  ;;  %3666 = vst.msk [vmem:[%s6502_s20 + $0x40] sm:$0xff] %vm492_vm2, %v3630_v13  ;;  %v3918_v62 = vmul.f32 %v6482_v22, %v3630_v13  ;;  %v3633_v5 = vadd.f32 %v4955_v25, %v3319_v33  ;;  %v3959_v63 = vsel %vm492_vm2, %v3917_v38, 0.0  ;;  %v3216_v22 = vpop.f32.mrf.mxu1 }
 0x1f2   : > { %v3514_v2 = vpop.f32.mrf.mxu0  ;;  %v3958_v36 = vadd.f32 %v3957_v27, %v3956_v15  ;;  %v4071_v46 = vadd.f32 %v4070_v41, %v4069_v7  ;;  %v4074_v6 = vsel %vm492_vm2, %v4032_v34, 0.0  ;;  %v3320_v14 = vadd.f32 %v3213_v19, %v6410_v18 }
 0x1f3   : > { %v4033_v1 = vmul.f32 %v3918_v62, %v3630_v13  ;;  %3669 = vst.msk [vmem:[%s6502_s20 + $0x58] sm:$0xff] %vm492_vm2, %v3633_v5  ;;  %v3631_v45 = vadd.f32 %v3514_v2, %v3317_v16  ;;  %v3961_v23 = vsel %vm492_vm2, %v3918_v62, 0.0  ;;  %v3921_v38 = vmul.f32 %v6504_v32, %v3633_v5  ;;  %v4924_v56 = vpop.f32.mrf.mxu1  ;;  %v6593_v16 = vpop.permute.xlu0 %3832 }
 0x1f4   : > { %v4958_v40 = vpop.f32.mrf.mxu0  ;;  %v4073_v30 = vadd.f32 %v4072_v42, %v4071_v46  ;;  %v3960_v51 = vadd.f32 %v3959_v63, %v3958_v36  ;;  %v4035_v17 = vmul.f32 %v3920_v35, %v3632_v3  ;;  %v3323_v27 = vadd.f32 %v4921_v48, %v6413_v47  ;;  %v6601_v42 = vpop.permute.xlu1 %3837 }
 0x1f5   : > { %v3636_v37 = vadd.f32 %v4958_v40, %v3322_v29  ;;  %3667 = vst.msk [vmem:[%s6502_s20 + $0x48] sm:$0xff] %vm492_vm2, %v3631_v45  ;;  %v3919_v33 = vmul.f32 %v6487_v24, %v3631_v45  ;;  %v4076_v18 = vsel %vm492_vm2, %v4033_v1, 0.0  ;;  %v3229_v32 = vpop.f32.mrf.mxu1  ;;  %v3965_v24 = vsel %vm492_vm2, %v3920_v35, 0.0 }
 0x1f6   : > { %v3527_v8 = vpop.f32.mrf.mxu0  ;;  %v3962_v13 = vadd.f32 %v3961_v23, %v3960_v51  ;;  %v4075_v25 = vadd.f32 %v4074_v6, %v4073_v30  ;;  %v3321_v41 = vadd.f32 %v3216_v22, %v6416_v50  ;;  %v4036_v47 = vmul.f32 %v3921_v38, %v3633_v5 }
 0x1f7   : > { %3672 = vst.msk [vmem:[%s6502_s20 + $0x70] sm:$0xff] %vm492_vm2, %v3636_v37  ;;  %v3963_v19 = vsel %vm492_vm2, %v3919_v33, 0.0  ;;  %v4034_v7 = vmul.f32 %v3919_v33, %v3631_v45  ;;  %v3634_v34 = vadd.f32 %v3527_v8, %v3320_v14  ;;  %v4925_v36 = vpop.f32.mrf.mxu1  ;;  %v3326_v35 = vadd.f32 %v4924_v56, %v6419_v28 }
 0x1f8   : > { %v4959_v15 = vpop.f32.mrf.mxu0  ;;  %v4077_v3 = vadd.f32 %v4076_v18, %v4075_v25  ;;  %v3964_v62 = vadd.f32 %v3963_v19, %v3962_v13  ;;  %v3924_v50 = vmul.f32 %v6527_v55, %v3636_v37  ;;  %v4080_v5 = vsel %vm492_vm2, %v4035_v17, 0.0  ;;  %v6616_v17 = vpop.permute.xlu0 %3842 }
 0x1f9   : > { %v4078_v48 = vsel %vm492_vm2, %v4034_v7, 0.0  ;;  %3670 = vst.msk [vmem:[%s6502_s20 + $0x60] sm:$0xff] %vm492_vm2, %v3634_v34  ;;  %v3922_v2 = vmul.f32 %v6510_v20, %v3634_v34  ;;  %v3637_v46 = vadd.f32 %v4959_v15, %v3323_v27  ;;  %v3967_v22 = vsel %vm492_vm2, %v3921_v38, 0.0  ;;  %v3232_v20 = vpop.f32.mrf.mxu1 }
 0x1fa   : > { %v3530_v29 = vpop.f32.mrf.mxu0  ;;  %v3966_v63 = vadd.f32 %v3965_v24, %v3964_v62  ;;  %v4079_v1 = vadd.f32 %v4078_v48, %v4077_v3  ;;  %v4082_v28 = vsel %vm492_vm2, %v4036_v47, 0.0  ;;  %v3324_v55 = vadd.f32 %v3229_v32, %v6422_v57 }
 0x1fb   : > { %v4037_v45 = vmul.f32 %v3922_v2, %v3634_v34  ;;  %3673 = vst.msk [vmem:[%s6502_s20 + $0x78] sm:$0xff] %vm492_vm2, %v3637_v46  ;;  %v3635_v40 = vadd.f32 %v3530_v29, %v3321_v41  ;;  %v3925_v14 = vmul.f32 %v6534_v52, %v3637_v46  ;;  %v3969_v33 = vsel %vm492_vm2, %v3922_v2, 0.0  ;;  %v4928_v56 = vpop.f32.mrf.mxu1  ;;  %v6623_v34 = vpop.permute.xlu1 %3847 }
 0x1fc   : > { %v4962_v6 = vpop.f32.mrf.mxu0  ;;  %v4081_v30 = vadd.f32 %v4080_v5, %v4079_v1  ;;  %v3968_v51 = vadd.f32 %v3967_v22, %v3966_v63  ;;  %v4039_v13 = vmul.f32 %v3924_v50, %v3636_v37  ;;  %v3327_v52 = vadd.f32 %v4925_v36, %v6425_v60  ;;  %v6637_v22 = vpop.permute.xlu0 %3852 }
 0x1fd   : > { %v3640_v23 = vadd.f32 %v4962_v6, %v3326_v35  ;;  %3671 = vst.msk [vmem:[%s6502_s20 + $0x68] sm:$0xff] %vm492_vm2, %v3635_v40  ;;  %v3923_v38 = vmul.f32 %v6516_v21, %v3635_v40  ;;  %v4084_v57 = vsel %vm492_vm2, %v4037_v45, 0.0  ;;  %v3245_v7 = vpop.f32.mrf.mxu1  ;;  %v3973_v15 = vsel %vm492_vm2, %v3924_v50, 0.0 }
 0x1fe   : > { %v3543_v8 = vpop.f32.mrf.mxu0  ;;  %v3970_v25 = vadd.f32 %v3969_v33, %v3968_v51  ;;  %v4083_v27 = vadd.f32 %v4082_v28, %v4081_v30  ;;  %v4040_v24 = vmul.f32 %v3925_v14, %v3637_v46  ;;  %v3325_v60 = vadd.f32 %v3232_v20, %v6428_v26 }
 0x1ff   : > { %3676 = vst.msk [vmem:[%s6502_s20 + $0x90] sm:$0xff] %vm492_vm2, %v3640_v23  ;;  %v3971_v18 = vsel %vm492_vm2, %v3923_v38, 0.0  ;;  %v4038_v19 = vmul.f32 %v3923_v38, %v3635_v40  ;;  %v3638_v32 = vadd.f32 %v3543_v8, %v3324_v55  ;;  %v4929_v47 = vpop.f32.mrf.mxu1  ;;  %v3330_v63 = vadd.f32 %v4928_v56, %v6433_v39  ;;  %v6646_v55 = vpop.permute.xlu1 %3857 }
 0x200   : > { %v4963_v21 = vpop.f32.mrf.mxu0  ;;  %v4085_v37 = vadd.f32 %v4084_v57, %v4083_v27  ;;  %v3972_v3 = vadd.f32 %v3971_v18, %v3970_v25  ;;  %v3928_v1 = vmul.f32 %v6571_v4, %v3640_v23  ;;  %v4088_v46 = vsel %vm492_vm2, %v4039_v13, 0.0 }
 0x201   : > { %v4086_v41 = vsel %vm492_vm2, %v4038_v19, 0.0  ;;  %3674 = vst.msk [vmem:[%s6502_s20 + $0x80] sm:$0xff] %vm492_vm2, %v3638_v32  ;;  %v3926_v62 = vmul.f32 %v6549_v9, %v3638_v32  ;;  %v3641_v48 = vadd.f32 %v4963_v21, %v3327_v52  ;;  %v3975_v26 = vsel %vm492_vm2, %v3925_v14, 0.0  ;;  %v3248_v50 = vpop.f32.mrf.mxu1 }
 0x202   : > { %v3546_v2 = vpop.f32.mrf.mxu0  ;;  %v3974_v36 = vadd.f32 %v3973_v15, %v3972_v3  ;;  %v4087_v29 = vadd.f32 %v4086_v41, %v4085_v37  ;;  %v4090_v45 = vsel %vm492_vm2, %v4040_v24, 0.0  ;;  %v3328_v4 = vadd.f32 %v3245_v7, %v6438_v12  ;;  %v3863_v37 = vpop.permute.xlu0 %3862 }
 0x203   : > { %v4041_v35 = vmul.f32 %v3926_v62, %v3638_v32  ;;  %3677 = vst.msk [vmem:[%s6502_s20 + $0x98] sm:$0xff] %vm492_vm2, %v3641_v48  ;;  %v3639_v5 = vadd.f32 %v3546_v2, %v3325_v60  ;;  %v3977_v6 = vsel %vm492_vm2, %v3926_v62, 0.0  ;;  %v3929_v30 = vmul.f32 %v6579_v31, %v3641_v48  ;;  %v4932_v14 = vpop.f32.mrf.mxu1 }
 0x204   : > { %v4966_v9 = vpop.f32.mrf.mxu0  ;;  %v4089_v20 = vadd.f32 %v4088_v46, %v4087_v29  ;;  %v3976_v39 = vadd.f32 %v3975_v26, %v3974_v36  ;;  %v4043_v33 = vmul.f32 %v3928_v1, %v3640_v23  ;;  %v3331_v8 = vadd.f32 %v4929_v47, %v6441_v0  ;;  %v3868_v36 = vpop.permute.xlu1 %3867 }
 0x205   : > { %v3644_v40 = vadd.f32 %v4966_v9, %v3330_v63  ;;  %3675 = vst.msk [vmem:[%s6502_s20 + $0x88] sm:$0xff] %vm492_vm2, %v3639_v5  ;;  %v3927_v51 = vmul.f32 %v6558_v49, %v3639_v5  ;;  %v4092_v12 = vsel %vm492_vm2, %v4041_v35, 0.0  ;;  %v3261_v25 = vpop.f32.mrf.mxu1  ;;  %v3981_v52 = vsel %vm492_vm2, %v3928_v1, 0.0 }
 0x206   : > { %v3559_v28 = vpop.f32.mrf.mxu0  ;;  %v3978_v38 = vadd.f32 %v3977_v6, %v3976_v39  ;;  %v4091_v56 = vadd.f32 %v4090_v45, %v4089_v20  ;;  %v3329_v23 = vadd.f32 %v3248_v50, %v6446_v58  ;;  %v4044_v19 = vmul.f32 %v3929_v30, %v3641_v48 }
 0x207   : > { %3680 = vst.msk [vmem:[%s6502_s20 + $0xb0] sm:$0xff] %vm492_vm2, %v3644_v40  ;;  %v3979_v31 = vsel %vm492_vm2, %v3927_v51, 0.0  ;;  %v4042_v13 = vmul.f32 %v3927_v51, %v3639_v5  ;;  %v3642_v27 = vadd.f32 %v3559_v28, %v3328_v4  ;;  %v4933_v32 = vpop.f32.mrf.mxu1  ;;  %v3334_v60 = vadd.f32 %v4932_v14, %v6451_v11  ;;  %v3873_v14 = vpop.permute.xlu0 %3872 }
 0x208   : > { %v4967_v49 = vpop.f32.mrf.mxu0  ;;  %v4093_v57 = vadd.f32 %v4092_v12, %v4091_v56  ;;  %v3980_v18 = vadd.f32 %v3979_v31, %v3978_v38  ;;  %v3932_v41 = vmul.f32 %v6616_v17, %v3644_v40  ;;  %v4096_v58 = vsel %vm492_vm2, %v4043_v33, 0.0 }
 0x209   : > { %v4094_v0 = vsel %vm492_vm2, %v4042_v13, 0.0  ;;  %3678 = vst.msk [vmem:[%s6502_s20 + $0xa0] sm:$0xff] %vm492_vm2, %v3642_v27  ;;  %v3930_v7 = vmul.f32 %v6593_v16, %v3642_v27  ;;  %v3645_v21 = vadd.f32 %v4967_v49, %v3331_v8  ;;  %v3983_v62 = vsel %vm492_vm2, %v3929_v30, 0.0  ;;  %v3264_v48 = vpop.f32.mrf.mxu1  ;;  %v6683_v13 = vpop.permute.xlu1 %3877 }
 0x20a   : > { %v3562_v15 = vpop.f32.mrf.mxu0  ;;  %v3982_v24 = vadd.f32 %v3981_v52, %v3980_v18  ;;  %v4095_v3 = vadd.f32 %v4094_v0, %v4093_v57  ;;  %v4098_v17 = vsel %vm492_vm2, %v4044_v19, 0.0  ;;  %v3332_v46 = vadd.f32 %v3261_v25, %v6454_v10 }
 0x20b   : > { %v4045_v47 = vmul.f32 %v3930_v7, %v3642_v27  ;;  %3681 = vst.msk [vmem:[%s6502_s20 + $0xb8] sm:$0xff] %vm492_vm2, %v3645_v21  ;;  %v3643_v16 = vadd.f32 %v3562_v15, %v3329_v23  ;;  %v3933_v1 = vmul.f32 %v6623_v34, %v3645_v21  ;;  %v3985_v26 = vsel %vm492_vm2, %v3930_v7, 0.0  ;;  %v4936_v50 = vpop.f32.mrf.mxu1 }
 0x20c   : > { %v4970_v2 = vpop.f32.mrf.mxu0  ;;  %v4097_v29 = vadd.f32 %v4096_v58, %v4095_v3  ;;  %v3984_v63 = vadd.f32 %v3983_v62, %v3982_v24  ;;  %v4047_v9 = vmul.f32 %v3932_v41, %v3644_v40  ;;  %v3335_v39 = vadd.f32 %v4933_v32, %v6459_v53 }
 0x20d   : > { %v3648_v11 = vadd.f32 %v4970_v2, %v3334_v60  ;;  %3679 = vst.msk [vmem:[%s6502_s20 + $0xa8] sm:$0xff] %vm492_vm2, %v3643_v16  ;;  %v3931_v35 = vmul.f32 %v6601_v42, %v3643_v16  ;;  %v4100_v34 = vsel %vm492_vm2, %v4045_v47, 0.0  ;;  %v3277_v6 = vpop.f32.mrf.mxu1  ;;  %v3989_v42 = vsel %vm492_vm2, %v3932_v41, 0.0  ;;  %v3883_v41 = vpop.permute.xlu0 %3882 }
 0x20e   : > { %v3575_v5 = vpop.f32.mrf.mxu0  ;;  %v3986_v45 = vadd.f32 %v3985_v26, %v3984_v63  ;;  %v4099_v20 = vadd.f32 %v4098_v17, %v4097_v29  ;;  %v4048_v40 = vmul.f32 %v3933_v1, %v3645_v21  ;;  %v3333_v38 = vadd.f32 %v3264_v48, %v6464_v54 }
 0x20f   : > { %3684 = vst.msk [vmem:[%s6502_s20 + $0xd0] sm:$0xff] %vm492_vm2, %v3648_v11  ;;  %v3987_v10 = vsel %vm492_vm2, %v3931_v35, 0.0  ;;  %v4046_v4 = vmul.f32 %v3931_v35, %v3643_v16  ;;  %v3646_v30 = vadd.f32 %v3575_v5, %v3332_v46  ;;  %v4937_v8 = vpop.f32.mrf.mxu1  ;;  %v3338_v49 = vadd.f32 %v4936_v50, %v6467_v44 }
 0x210   : > { %v4971_v51 = vpop.f32.mrf.mxu0  ;;  %v4101_v28 = vadd.f32 %v4100_v34, %v4099_v20  ;;  %v3988_v33 = vadd.f32 %v3987_v10, %v3986_v45  ;;  %v3936_v52 = vmul.f32 %v3863_v37, %v3648_v11  ;;  %v4104_v57 = vsel %vm492_vm2, %v4047_v9, 0.0 }
 0x211   : > { %v4102_v53 = vsel %vm492_vm2, %v4046_v4, 0.0  ;;  %3682 = vst.msk [vmem:[%s6502_s20 + $0xc0] sm:$0xff] %vm492_vm2, %v3646_v30  ;;  %v3934_v56 = vmul.f32 %v6637_v22, %v3646_v30  ;;  %v3649_v12 = vadd.f32 %v4971_v51, %v3335_v39  ;;  %v3991_v54 = vsel %vm492_vm2, %v3933_v1, 0.0  ;;  %v3280_v18 = vpop.f32.mrf.mxu1  ;;  %v6796_v39 = vld [vmem:[#allocation2_spill] sm:$0xff] }
 0x212   : > { %v3578_v31 = vpop.f32.mrf.mxu0  ;;  %v3990_v25 = vadd.f32 %v3989_v42, %v3988_v33  ;;  %v4103_v27 = vadd.f32 %v4102_v53, %v4101_v28  ;;  %v4106_v0 = vsel %vm492_vm2, %v4048_v40, 0.0  ;;  %v3336_v44 = vadd.f32 %v3277_v6, %v6472_v43  ;;  %v3893_v42 = vpop.permute.xlu0 %3892  ;;  %v6797_v28 = vld [vmem:[#allocation10_spill] sm:$0xff] }
 0x213   : > { %v4049_v23 = vmul.f32 %v3934_v56, %v3646_v30  ;;  %3685 = vst.msk [vmem:[%s6502_s20 + $0xd8] sm:$0xff] %vm492_vm2, %v3649_v12  ;;  %v3647_v22 = vadd.f32 %v3578_v31, %v3333_v38  ;;  %v3993_v15 = vsel %vm492_vm2, %v3934_v56, 0.0  ;;  %v3937_v37 = vmul.f32 %v3868_v36, %v3649_v12  ;;  %v4940_v3 = vpop.f32.mrf.mxu1 }
 0x214   : > { %v4974_v19 = vpop.f32.mrf.mxu0  ;;  %v4105_v7 = vadd.f32 %v4104_v57, %v4103_v27  ;;  %v3992_v32 = vadd.f32 %v3991_v54, %v3990_v25  ;;  %v4051_v58 = vmul.f32 %v3936_v52, %v3648_v11  ;;  %v3339_v48 = vadd.f32 %v4937_v8, %v6477_v59 }
 0x215   : > { %v3652_v21 = vadd.f32 %v4974_v19, %v3338_v49  ;;  %3683 = vst.msk [vmem:[%s6502_s20 + $0xc8] sm:$0xff] %vm492_vm2, %v3647_v22  ;;  %v3935_v24 = vmul.f32 %v6646_v55, %v3647_v22  ;;  %v4108_v43 = vsel %vm492_vm2, %v4049_v23, 0.0  ;;  %v3293_v36 = vpop.f32.mrf.mxu1  ;;  %v3888_v55 = vpop.permute.xlu1 %3887  ;;  %v3997_v1 = vsel %vm492_vm2, %v3936_v52, 0.0 }
 0x216   : > { %v3591_v60 = vpop.f32.mrf.mxu0  ;;  %v3994_v62 = vadd.f32 %v3993_v15, %v3992_v32  ;;  %v4107_v47 = vadd.f32 %v4106_v0, %v4105_v7  ;;  %v3337_v11 = vadd.f32 %v3280_v18, %v6480_v61  ;;  %v4052_v26 = vmul.f32 %v3937_v37, %v3649_v12  ;;  %v6798_v18 = vld [vmem:[#allocation12_spill] sm:$0xff] }
 0x217   : > { %3688 = vst.msk [vmem:[%s6502_s20 + $0xf0] sm:$0xff] %vm492_vm2, %v3652_v21  ;;  %v3995_v16 = vsel %vm492_vm2, %v3935_v24, 0.0  ;;  %v4050_v2 = vmul.f32 %v3935_v24, %v3647_v22  ;;  %v3650_v29 = vadd.f32 %v3591_v60, %v3336_v44  ;;  %v4941_v50 = vpop.f32.mrf.mxu1  ;;  %v3342_v34 = vadd.f32 %v4940_v3, %v6796_v39  ;;  %v6799_v44 = vld [vmem:[#allocation3_spill] sm:$0xff] }
 0x218   : > { %v4975_v63 = vpop.f32.mrf.mxu0  ;;  %v4109_v17 = vadd.f32 %v4108_v43, %v4107_v47  ;;  %v3996_v46 = vadd.f32 %v3995_v16, %v3994_v62  ;;  %v3940_v10 = vmul.f32 %v3883_v41, %v3652_v21  ;;  %v4112_v4 = vsel %vm492_vm2, %v4051_v58, 0.0  ;;  %v3903_v58 = vpop.permute.xlu0 %3902 }
 0x219   : > { %v4110_v59 = vsel %vm492_vm2, %v4050_v2, 0.0  ;;  %3686 = vst.msk [vmem:[%s6502_s20 + $0xe0] sm:$0xff] %vm492_vm2, %v3650_v29  ;;  %v3938_v35 = vmul.f32 %v3873_v14, %v3650_v29  ;;  %v3653_v5 = vadd.f32 %v4975_v63, %v3339_v48  ;;  %v3999_v61 = vsel %vm492_vm2, %v3937_v37, 0.0  ;;  %v3296_v12 = vpop.f32.mrf.mxu1  ;;  %v3898_v27 = vpop.permute.xlu1 %3897 }
 0x21a   : > { %v3594_v9 = vpop.f32.mrf.mxu0  ;;  %v3998_v45 = vadd.f32 %v3997_v1, %v3996_v46  ;;  %v4111_v20 = vadd.f32 %v4110_v59, %v4109_v17  ;;  %v3340_v40 = vadd.f32 %v3293_v36, %v6797_v28  ;;  %v4114_v53 = vsel %vm492_vm2, %v4052_v26, 0.0 }
 0x21b   : > { %v4053_v6 = vmul.f32 %v3938_v35, %v3650_v29  ;;  %3689 = vst.msk [vmem:[%s6502_s20 + $0xf8] sm:$0xff] %vm492_vm2, %v3653_v5  ;;  %v3651_v30 = vadd.f32 %v3594_v9, %v3337_v11  ;;  %v4001_v56 = vsel %vm492_vm2, %v3938_v35, 0.0  ;;  %v3941_v8 = vmul.f32 %v3888_v55, %v3653_v5 }
 0x21c   : > { %v4978_v51 = vpop.f32.mrf.mxu0  ;;  %v4113_v14 = vadd.f32 %v4112_v4, %v4111_v20  ;;  %v4000_v33 = vadd.f32 %v3999_v61, %v3998_v45  ;;  %v4055_v49 = vmul.f32 %v3940_v10, %v3652_v21  ;;  %v3343_v22 = vadd.f32 %v4941_v50, %v6798_v18 }
 0x21d   : > { %v3656_v38 = vadd.f32 %v4978_v51, %v3342_v34  ;;  %3687 = vst.msk [vmem:[%s6502_s20 + $0xe8] sm:$0xff] %vm492_vm2, %v3651_v30  ;;  %v3939_v31 = vmul.f32 %v6683_v13, %v3651_v30  ;;  %v4116_v23 = vsel %vm492_vm2, %v4053_v6, 0.0  ;;  %v4005_v32 = vsel %vm492_vm2, %v3940_v10, 0.0  ;;  %v3908_v29 = vpop.permute.xlu1 %3907 }
 0x21e   : > { %v3607_v25 = vpop.f32.mrf.mxu0  ;;  %v4002_v52 = vadd.f32 %v4001_v56, %v4000_v33  ;;  %v4115_v57 = vadd.f32 %v4114_v53, %v4113_v14  ;;  %v3341_v15 = vadd.f32 %v3296_v12, %v6799_v44  ;;  %v4056_v37 = vmul.f32 %v3941_v8, %v3653_v5 }
 0x21f   : > { %3692 = vst.msk [vmem:[%s6502_s20 + $0x110] sm:$0xff] %vm492_vm2, %v3656_v38  ;;  %v3654_v54 = vadd.f32 %v3607_v25, %v3340_v40  ;;  %v4003_v19 = vsel %vm492_vm2, %v3939_v31, 0.0  ;;  %v4054_v0 = vmul.f32 %v3939_v31, %v3651_v30  ;;  %v4120_v43 = vsel %vm492_vm2, %v4055_v49, 0.0 }
 0x220   : > { %v4979_v7 = vpop.f32.mrf.mxu0  ;;  %v4117_v13 = vadd.f32 %v4116_v23, %v4115_v57  ;;  %v4004_v21 = vadd.f32 %v4003_v19, %v4002_v52  ;;  %v4007_v16 = vsel %vm492_vm2, %v3941_v8, 0.0  ;;  %v3944_v2 = vmul.f32 %v3903_v58, %v3656_v38 }
 0x221   : > { %3690 = vst.msk [vmem:[%s6502_s20 + $0x100] sm:$0xff] %vm492_vm2, %v3654_v54  ;;  %v4118_v24 = vsel %vm492_vm2, %v4054_v0, 0.0  ;;  %v3942_v3 = vmul.f32 %v3893_v42, %v3654_v54  ;;  %v3657_v60 = vadd.f32 %v4979_v7, %v3343_v22  ;;  %v4122_v17 = vsel %vm492_vm2, %v4056_v37, 0.0 }
 0x222   : > { %v3610_v41 = vpop.f32.mrf.mxu0  ;;  %v4006_v62 = vadd.f32 %v4005_v32, %v4004_v21  ;;  %v4119_v47 = vadd.f32 %v4118_v24, %v4117_v13  ;;  %v4059_v5 = vmul.f32 %v3944_v2, %v3656_v38  ;;  %v4013_v34 = vsel %vm492_vm2, %v3944_v2, 0.0 }
 0x223   : > { %v3655_v48 = vadd.f32 %v3610_v41, %v3341_v15  ;;  %v4057_v36 = vmul.f32 %v3942_v3, %v3654_v54  ;;  %3693 = vst.msk [vmem:[%s6502_s20 + $0x118] sm:$0xff] %vm492_vm2, %v3657_v60  ;;  %v4009_v11 = vsel %vm492_vm2, %v3942_v3, 0.0  ;;  %v3945_v46 = vmul.f32 %v3908_v29, %v3657_v60 }
 0x224   : > { %v4121_v63 = vadd.f32 %v4120_v43, %v4119_v47  ;;  %v4008_v55 = vadd.f32 %v4007_v16, %v4006_v62  ;;  %v4128_v6 = vsel %vm492_vm2, %v4059_v5, 0.0 }
 0x225   : > { %3691 = vst.msk [vmem:[%s6502_s20 + $0x108] sm:$0xff] %vm492_vm2, %v3655_v48  ;;  %v3943_v1 = vmul.f32 %v3898_v27, %v3655_v48  ;;  %v4124_v9 = vsel %vm492_vm2, %v4057_v36, 0.0  ;;  %v4060_v10 = vmul.f32 %v3945_v46, %v3657_v60  ;;  %v4015_v30 = vsel %vm492_vm2, %v3945_v46, 0.0 }
 0x226   : > { %v4010_v26 = vadd.f32 %v4009_v11, %v4008_v55  ;;  %v4123_v59 = vadd.f32 %v4122_v17, %v4121_v63 }
 0x227   : > { %v4011_v35 = vsel %vm492_vm2, %v3943_v1, 0.0  ;;  %v4058_v50 = vmul.f32 %v3943_v1, %v3655_v48  ;;  %v4130_v14 = vsel %vm492_vm2, %v4060_v10, 0.0 }
 0x228   : > { %v4125_v45 = vadd.f32 %v4124_v9, %v4123_v59  ;;  %v4012_v20 = vadd.f32 %v4011_v35, %v4010_v26 }
 0x229   : > { %v4126_v39 = vsel %vm492_vm2, %v4058_v50, 0.0 }
 0x22a   : > { %v4014_v4 = vadd.f32 %v4013_v34, %v4012_v20  ;;  %v4127_v61 = vadd.f32 %v4126_v39, %v4125_v45 }
 0x22c   : > { %v4016_v51 = vadd.f32 %v4015_v30, %v4014_v4  ;;  %v4129_v42 = vadd.f32 %v4128_v6, %v4127_v61 }
 0x22e   : > { %v4017_v28 = vrot.slane %v4016_v51, 4  ;;  %v4131_v40 = vadd.f32 %v4130_v14, %v4129_v42 }
 0x230   : > { %v4018_v33 = vadd.f32 %v4017_v28, %v4016_v51  ;;  %v4132_v38 = vrot.slane %v4131_v40, 4 }
 0x232   : > { %v4019_v53 = vrot.slane %v4018_v33, 2  ;;  %v4133_v56 = vadd.f32 %v4132_v38, %v4131_v40 }
 0x234   : > { %v4020_v8 = vadd.f32 %v4019_v53, %v4018_v33  ;;  %v4134_v12 = vrot.slane %v4133_v56, 2 }
 0x236   : > { %v4021_v31 = vrot.slane %v4020_v8, 1  ;;  %v4135_v25 = vadd.f32 %v4134_v12, %v4133_v56 }
 0x238   : > { %v4022_v27 = vadd.f32 %v4021_v31, %v4020_v8  ;;  %v4136_v49 = vrot.slane %v4135_v25, 1 }
 0x23a   : > { %4024 = vst.msk [vmem:[%s208_s24] sm:$0x1] %vm4023_vm8, %v4022_v27  ;;  %v4137_v52 = vadd.f32 %v4136_v49, %v4135_v25 }
 0x23c   : > { %4138 = vst.msk [vmem:[%s208_s24 + $0x1] sm:$0x1] %vm4023_vm8, %v4137_v52 }
 0x23d PF: > { %s15_s15 = sadd.s32 1, %s5073_s15  }
 0x23e   : > { %p12_p4 = scmp.ge.s32.totalorder %s15_s15, 4  }
 0x240   :  { %14 = sbr.rel (!%p12_p4) target bundleno = 1 (0x1), region = 82 }

</bundles_post_ra>
